<compile_context>
chip_gen: v5e
topology: v5e:2x2
jax: 0.10.0
libtpu: 0.0.40
codegen_flags: <defaults>
</compile_context>

<pallas_src>
import jax
import jax.numpy as jnp
from jax import lax
from jax.experimental import pallas as pl
from jax.experimental.pallas import tpu as pltpu


def _basic_block_kernel(x_ref, w1_ref, b1_ref, w2_ref, b2_ref, out_ref,
                        xpad, hpad):
    # Shapes (per grid step == one image):
    #   x_ref  : (1, H, W, Cin)     bf16 activation (also the residual)
    #   w1_ref : (9*Cin, Cout)      bf16 conv1 weights, BN1 scale folded in
    #   b1_ref : (1, Cout)          f32 folded BN1 bias
    #   w2_ref : (9*Cout, Cout)     bf16 conv2 weights, BN2 scale folded in
    #   b2_ref : (1, Cout)          f32 folded BN2 bias
    #   out_ref: (1, H*W, Cout)     f32 output (flat spatial view)
    #   xpad   : (H+2, W+2, Cin)    f32 VMEM scratch, zero-padded conv1 input
    #   hpad   : (H+2, W+2, Cout)   f32 VMEM scratch, zero-padded conv2 input
    _, H, W, Cin = x_ref.shape
    Cout = out_ref.shape[-1]

    def zero_border(pad, C):
        # Only the 1-element border ring must be zero; the interior is fully
        # overwritten every step, so no full-buffer memset.  Done every step
        # (not just at program_id == 0) so it stays correct if the batch grid
        # axis is sharded across TensorCores.
        zrow = jnp.zeros((1, W + 2, C), jnp.float32)
        zcol = jnp.zeros((H, 1, C), jnp.float32)
        pad[0:1, :, :] = zrow
        pad[H + 1:H + 2, :, :] = zrow
        pad[1:H + 1, 0:1, :] = zcol
        pad[1:H + 1, W + 1:W + 2, :] = zcol

    def im2col(pad, C):
        # (H*W, 9*C) patch matrix: tap (dy, dx) occupies columns
        # (dy*3 + dx)*C : +C, matching the (3,3,Ci,Co) -> (9*Ci, Co) weight
        # reshape done in the wrapper.  One MXU matmul per conv.
        taps = [pad[dy:dy + H, dx:dx + W, :]
                for dy in range(3) for dx in range(3)]
        return jnp.concatenate(taps, axis=-1).reshape(H * W, 9 * C)

    x = x_ref[0].astype(jnp.float32)                      # (H, W, Cin)

    # ---- conv1 (3x3, stride 1, pad 1) + bn1 + relu ----
    zero_border(xpad, Cin)
    xpad[1:H + 1, 1:W + 1, :] = x
    acc1 = jnp.dot(im2col(xpad, Cin).astype(jnp.bfloat16), w1_ref[...],
                   preferred_element_type=jnp.float32)    # (H*W, Cout)
    h1 = jnp.maximum(acc1 + b1_ref[...], 0.0)

    # ---- conv2 (3x3, stride 1, pad 1) + bn2 + residual + relu ----
    zero_border(hpad, Cout)
    hpad[1:H + 1, 1:W + 1, :] = h1.reshape(H, W, Cout)
    acc2 = jnp.dot(im2col(hpad, Cout).astype(jnp.bfloat16), w2_ref[...],
                   preferred_element_type=jnp.float32)    # (H*W, Cout)

    res = x.reshape(H * W, Cin)
    out = jnp.maximum(acc2 + b2_ref[...] + res, 0.0)
    out_ref[0] = out.astype(out_ref.dtype)


def _round_up(a, b):
    return -(-a // b) * b


def _vmem_limit_bytes(H, W, Cin, Cout):
    """Rough padded-VMEM footprint: double-buffered blocks + scratch + slack."""
    def tile(rows, cols, elt_bytes, sublane):
        return _round_up(rows, sublane) * _round_up(cols, 128) * elt_bytes
    x_blk = H * tile(W, Cin, 2, 16)                       # bf16 input block
    o_blk = tile(H * W, Cout, 4, 8)                       # f32 output block
    w_blk = tile(9 * Cin, Cout, 2, 16) + tile(9 * Cout, Cout, 2, 16)
    b_blk = 2 * tile(1, Cout, 4, 8)
    scr = (H + 2) * (tile(W + 2, Cin, 4, 8) + tile(W + 2, Cout, 4, 8))
    est = 2 * (x_blk + w_blk + b_blk + o_blk) + scr + (8 << 20)
    return int(min(max(est, 16 << 20), 64 << 20))         # keep v7x-safe


def basic_block(x, w1_hwio, gamma1, beta1, mean1, var1,
                w2_hwio, gamma2, beta2, mean2, var2, eps=1e-5):
    """Fused ResNet BasicBlock forward (eval-mode BN, stride=1, no downsample).

    x       : (N, H, W, Cin) float32, NHWC
    w*_hwio : (3, 3, Cin/Cout, Cout) float32 conv weights (HWIO layout)
    gamma/beta/mean/var : (Cout,) BatchNorm params / running statistics
    """
    N, H, W, Cin = x.shape
    Cout = w1_hwio.shape[-1]
    assert Cin == Cout, "stride=1 / downsample=None requires inplanes == planes"

    # Fold eval-mode BN into per-channel scale/bias; fold the scale into the
    # conv weights so the kernel epilogue is only bias (+ residual) + relu.
    s1 = gamma1 / jnp.sqrt(var1 + eps)
    s2 = gamma2 / jnp.sqrt(var2 + eps)
    b1 = (beta1 - mean1 * s1).reshape(1, Cout).astype(jnp.float32)
    b2 = (beta2 - mean2 * s2).reshape(1, Cout).astype(jnp.float32)
    w1 = (w1_hwio * s1).reshape(9 * Cin, Cout).astype(jnp.bfloat16)
    w2 = (w2_hwio * s2).reshape(9 * Cout, Cout).astype(jnp.bfloat16)

    x_bf = x.astype(jnp.bfloat16)   # halves activation HBM traffic

    flops = 2 * 9 * H * W * (Cin + Cout) * Cout * N
    bytes_accessed = (x_bf.size * 2 + N * H * W * Cout * 4
                      + (w1.size + w2.size) * 2 + (b1.size + b2.size) * 4)

    out_flat = pl.pallas_call(
        _basic_block_kernel,
        out_shape=jax.ShapeDtypeStruct((N, H * W, Cout), jnp.float32),
        grid_spec=pltpu.PrefetchScalarGridSpec(
            num_scalar_prefetch=0,
            grid=(N,),
            in_specs=[
                pl.BlockSpec((1, H, W, Cin), lambda n: (n, 0, 0, 0)),
                pl.BlockSpec((9 * Cin, Cout), lambda n: (0, 0)),
                pl.BlockSpec((1, Cout), lambda n: (0, 0)),
                pl.BlockSpec((9 * Cout, Cout), lambda n: (0, 0)),
                pl.BlockSpec((1, Cout), lambda n: (0, 0)),
            ],
            out_specs=pl.BlockSpec((1, H * W, Cout), lambda n: (n, 0, 0)),
            scratch_shapes=[
                pltpu.VMEM((H + 2, W + 2, Cin), jnp.float32),
                pltpu.VMEM((H + 2, W + 2, Cout), jnp.float32),
            ],
        ),
        compiler_params=pltpu.CompilerParams(
            dimension_semantics=("parallel",),
            vmem_limit_bytes=_vmem_limit_bytes(H, W, Cin, Cout)),
        cost_estimate=pl.CostEstimate(
            flops=flops, transcendentals=0, bytes_accessed=bytes_accessed),
    )(x_bf, w1, b1, w2, b2)

    return out_flat.reshape(N, H, W, Cout)


def _reference(x, w1_hwio, g1, be1, m1, v1, w2_hwio, g2, be2, m2, v2, eps):
    dn = lax.conv_dimension_numbers(x.shape, w1_hwio.shape,
                                    ('NHWC', 'HWIO', 'NHWC'))
    out = lax.conv_general_dilated(x, w1_hwio, (1, 1), ((1, 1), (1, 1)),
                                   dimension_numbers=dn)
    out = (out - m1) / jnp.sqrt(v1 + eps) * g1 + be1
    out = jnp.maximum(out, 0.0)
    out = lax.conv_general_dilated(out, w2_hwio, (1, 1), ((1, 1), (1, 1)),
                                   dimension_numbers=dn)
    out = (out - m2) / jnp.sqrt(v2 + eps) * g2 + be2
    out = jnp.maximum(out + x, 0.0)
    return out


if __name__ == "__main__":
    # Small, deterministic shapes: N=2, inplanes=planes=4, H=W=16, stride=1.
    N, H, W = 2, 16, 16
    inplanes = planes = 4
    eps = 1e-5

    key = jax.random.PRNGKey(0)
    kx, k1, k2, kg1, kb1, km1, kv1, kg2, kb2, km2, kv2 = jax.random.split(key, 11)

    x = jax.random.normal(kx, (N, H, W, inplanes), dtype=jnp.float32)

    # Conv weights in HWIO layout (equivalent content to PyTorch OIHW weights).
    w1_hwio = 0.1 * jax.random.normal(k1, (3, 3, inplanes, planes), jnp.float32)
    w2_hwio = 0.1 * jax.random.normal(k2, (3, 3, planes, planes), jnp.float32)

    # BatchNorm parameters / running statistics (eval-mode semantics).
    gamma1 = 1.0 + 0.1 * jax.random.normal(kg1, (planes,), jnp.float32)
    beta1 = 0.1 * jax.random.normal(kb1, (planes,), jnp.float32)
    mean1 = 0.1 * jax.random.normal(km1, (planes,), jnp.float32)
    var1 = jax.random.uniform(kv1, (planes,), jnp.float32, 0.5, 1.5)
    gamma2 = 1.0 + 0.1 * jax.random.normal(kg2, (planes,), jnp.float32)
    beta2 = 0.1 * jax.random.normal(kb2, (planes,), jnp.float32)
    mean2 = 0.1 * jax.random.normal(km2, (planes,), jnp.float32)
    var2 = jax.random.uniform(kv2, (planes,), jnp.float32, 0.5, 1.5)

    out = basic_block(x, w1_hwio, gamma1, beta1, mean1, var1,
                      w2_hwio, gamma2, beta2, mean2, var2, eps)
    out = jax.block_until_ready(out)

    ref = _reference(x, w1_hwio, gamma1, beta1, mean1, var1,
                     w2_hwio, gamma2, beta2, mean2, var2, eps)
    ref = jax.block_until_ready(ref)

    assert out.shape == (N, H, W, planes)
    # Tolerance accounts for bf16 rounding of activations/weights on the MXU
    # path (accumulation and epilogue are f32); reference is pure f32.
    max_err = float(jnp.max(jnp.abs(out - ref)))
    assert jnp.allclose(out, ref, atol=5e-2, rtol=5e-2), max_err

    print("KERNEL_OK")
</pallas_src>

<mosaic_0001>
module attributes {stable_mosaic.version = 11 : i64} {
  func.func @_basic_block_kernel(%arg0: i32, %arg1: memref<1x16x16x4xbf16, #tpu.memory_space<vmem>>, %arg2: memref<36x4xbf16, #tpu.memory_space<vmem>>, %arg3: memref<1x4xf32, #tpu.memory_space<vmem>>, %arg4: memref<36x4xbf16, #tpu.memory_space<vmem>>, %arg5: memref<1x4xf32, #tpu.memory_space<vmem>>, %arg6: memref<1x256x4xf32, #tpu.memory_space<vmem>>, %arg7: memref<18x18x4xf32, #tpu.memory_space<vmem>>, %arg8: memref<18x18x4xf32, #tpu.memory_space<vmem>>) attributes {dimension_semantics = [#tpu.dimension_semantics<parallel>], iteration_bounds = array<i64: 2>, scalar_prefetch = 0 : i64, scratch_operands = 2 : i64, tpu.core_type = #tpu.core_type<tc>, window_params = [{transform_indices = @transform_0, window_bounds = array<i64: 1, 16, 16, 4>}, {pipeline_mode = #tpu.pipeline_mode<synchronous>, transform_indices = @transform_1, window_bounds = array<i64: 36, 4>}, {pipeline_mode = #tpu.pipeline_mode<synchronous>, transform_indices = @transform_2, window_bounds = array<i64: 1, 4>}, {pipeline_mode = #tpu.pipeline_mode<synchronous>, transform_indices = @transform_3, window_bounds = array<i64: 36, 4>}, {pipeline_mode = #tpu.pipeline_mode<synchronous>, transform_indices = @transform_4, window_bounds = array<i64: 1, 4>}, {transform_indices = @transform_5, window_bounds = array<i64: 1, 256, 4>}]} {
    %c0 = arith.constant 0 : index
    %c0_0 = arith.constant 0 : index
    %c0_1 = arith.constant 0 : index
    %c0_2 = arith.constant 0 : index
    %0 = vector.load %arg1[%c0, %c0_0, %c0_1, %c0_2] : memref<1x16x16x4xbf16, #tpu.memory_space<vmem>>, vector<1x16x16x4xbf16>
    %1 = vector.shape_cast %0 : vector<1x16x16x4xbf16> to vector<16x16x4xbf16>
    %2 = arith.extf %1 : vector<16x16x4xbf16> to vector<16x16x4xf32>
    %cst = arith.constant 0.000000e+00 : f32
    %3 = vector.broadcast %cst : f32 to vector<1x18x4xf32>
    %cst_3 = arith.constant 0.000000e+00 : f32
    %4 = vector.broadcast %cst_3 : f32 to vector<16x1x4xf32>
    %c0_4 = arith.constant 0 : index
    %c0_5 = arith.constant 0 : index
    %c0_6 = arith.constant 0 : index
    %5 = vector.load %arg7[%c0_4, %c0_5, %c0_6] : memref<18x18x4xf32, #tpu.memory_space<vmem>>, vector<1x18x4xf32>
    tpu.vector_store %arg7[%c0_4, %c0_5, %c0_6], %3 {strides = array<i32>} : memref<18x18x4xf32, #tpu.memory_space<vmem>>, vector<1x18x4xf32>,
    %c17 = arith.constant 17 : index
    %c0_7 = arith.constant 0 : index
    %c0_8 = arith.constant 0 : index
    %6 = vector.load %arg7[%c17, %c0_7, %c0_8] : memref<18x18x4xf32, #tpu.memory_space<vmem>>, vector<1x18x4xf32>
    tpu.vector_store %arg7[%c17, %c0_7, %c0_8], %3 {strides = array<i32>} : memref<18x18x4xf32, #tpu.memory_space<vmem>>, vector<1x18x4xf32>,
    %c1 = arith.constant 1 : index
    %c0_9 = arith.constant 0 : index
    %c0_10 = arith.constant 0 : index
    %7 = vector.load %arg7[%c1, %c0_9, %c0_10] : memref<18x18x4xf32, #tpu.memory_space<vmem>>, vector<16x1x4xf32>
    tpu.vector_store %arg7[%c1, %c0_9, %c0_10], %4 {strides = array<i32>} : memref<18x18x4xf32, #tpu.memory_space<vmem>>, vector<16x1x4xf32>,
    %c1_11 = arith.constant 1 : index
    %c17_12 = arith.constant 17 : index
    %c0_13 = arith.constant 0 : index
    %8 = vector.load %arg7[%c1_11, %c17_12, %c0_13] : memref<18x18x4xf32, #tpu.memory_space<vmem>>, vector<16x1x4xf32>
    tpu.vector_store %arg7[%c1_11, %c17_12, %c0_13], %4 {strides = array<i32>} : memref<18x18x4xf32, #tpu.memory_space<vmem>>, vector<16x1x4xf32>,
    %c1_14 = arith.constant 1 : index
    %c1_15 = arith.constant 1 : index
    %c0_16 = arith.constant 0 : index
    %9 = vector.load %arg7[%c1_14, %c1_15, %c0_16] : memref<18x18x4xf32, #tpu.memory_space<vmem>>, vector<16x16x4xf32>
    tpu.vector_store %arg7[%c1_14, %c1_15, %c0_16], %2 {strides = array<i32>} : memref<18x18x4xf32, #tpu.memory_space<vmem>>, vector<16x16x4xf32>,
    %c0_17 = arith.constant 0 : index
    %c0_18 = arith.constant 0 : index
    %c0_19 = arith.constant 0 : index
    %10 = vector.load %arg7[%c0_17, %c0_18, %c0_19] : memref<18x18x4xf32, #tpu.memory_space<vmem>>, vector<16x16x4xf32>
    %c0_20 = arith.constant 0 : index
    %c1_21 = arith.constant 1 : index
    %c0_22 = arith.constant 0 : index
    %11 = vector.load %arg7[%c0_20, %c1_21, %c0_22] : memref<18x18x4xf32, #tpu.memory_space<vmem>>, vector<16x16x4xf32>
    %c0_23 = arith.constant 0 : index
    %c2 = arith.constant 2 : index
    %c0_24 = arith.constant 0 : index
    %12 = vector.load %arg7[%c0_23, %c2, %c0_24] : memref<18x18x4xf32, #tpu.memory_space<vmem>>, vector<16x16x4xf32>
    %c1_25 = arith.constant 1 : index
    %c0_26 = arith.constant 0 : index
    %c0_27 = arith.constant 0 : index
    %13 = vector.load %arg7[%c1_25, %c0_26, %c0_27] : memref<18x18x4xf32, #tpu.memory_space<vmem>>, vector<16x16x4xf32>
    %c1_28 = arith.constant 1 : index
    %c1_29 = arith.constant 1 : index
    %c0_30 = arith.constant 0 : index
    %14 = vector.load %arg7[%c1_28, %c1_29, %c0_30] : memref<18x18x4xf32, #tpu.memory_space<vmem>>, vector<16x16x4xf32>
    %c1_31 = arith.constant 1 : index
    %c2_32 = arith.constant 2 : index
    %c0_33 = arith.constant 0 : index
    %15 = vector.load %arg7[%c1_31, %c2_32, %c0_33] : memref<18x18x4xf32, #tpu.memory_space<vmem>>, vector<16x16x4xf32>
    %c2_34 = arith.constant 2 : index
    %c0_35 = arith.constant 0 : index
    %c0_36 = arith.constant 0 : index
    %16 = vector.load %arg7[%c2_34, %c0_35, %c0_36] : memref<18x18x4xf32, #tpu.memory_space<vmem>>, vector<16x16x4xf32>
    %c2_37 = arith.constant 2 : index
    %c1_38 = arith.constant 1 : index
    %c0_39 = arith.constant 0 : index
    %17 = vector.load %arg7[%c2_37, %c1_38, %c0_39] : memref<18x18x4xf32, #tpu.memory_space<vmem>>, vector<16x16x4xf32>
    %c2_40 = arith.constant 2 : index
    %c2_41 = arith.constant 2 : index
    %c0_42 = arith.constant 0 : index
    %18 = vector.load %arg7[%c2_40, %c2_41, %c0_42] : memref<18x18x4xf32, #tpu.memory_space<vmem>>, vector<16x16x4xf32>
    %19 = tpu.concatenate %10, %11, %12, %13, %14, %15, %16, %17, %18 in 2 : vector<16x16x4xf32>, vector<16x16x4xf32>, vector<16x16x4xf32>, vector<16x16x4xf32>, vector<16x16x4xf32>, vector<16x16x4xf32>, vector<16x16x4xf32>, vector<16x16x4xf32>, vector<16x16x4xf32> -> vector<16x16x36xf32>
    %20 = vector.shape_cast %19 : vector<16x16x36xf32> to vector<256x36xf32>
    %21 = arith.truncf %20 : vector<256x36xf32> to vector<256x36xbf16>
    %c0_43 = arith.constant 0 : index
    %c0_44 = arith.constant 0 : index
    %22 = vector.load %arg2[%c0_43, %c0_44] : memref<36x4xbf16, #tpu.memory_space<vmem>>, vector<36x4xbf16>
    %cst_45 = arith.constant dense<0.000000e+00> : vector<256x4xf32>
    %23 = tpu.matmul %21, %22, %cst_45 {dimension_numbers = #tpu.dot_dimension_numbers<[1], [0], [0], [1], [0, 0, 1, 1], [], []>} : vector<256x36xbf16>, vector<36x4xbf16>, vector<256x4xf32> -> vector<256x4xf32>
    %c0_46 = arith.constant 0 : index
    %c0_47 = arith.constant 0 : index
    %24 = vector.load %arg3[%c0_46, %c0_47] : memref<1x4xf32, #tpu.memory_space<vmem>>, vector<1x4xf32>
    %25 = vector.broadcast %24 : vector<1x4xf32> to vector<256x4xf32>
    %26 = arith.addf %23, %25 : vector<256x4xf32>
    %cst_48 = arith.constant 0.000000e+00 : f32
    %27 = vector.broadcast %cst_48 : f32 to vector<256x4xf32>
    %28 = arith.maximumf %26, %27 : vector<256x4xf32>
    %cst_49 = arith.constant 0.000000e+00 : f32
    %29 = vector.broadcast %cst_49 : f32 to vector<1x18x4xf32>
    %cst_50 = arith.constant 0.000000e+00 : f32
    %30 = vector.broadcast %cst_50 : f32 to vector<16x1x4xf32>
    %c0_51 = arith.constant 0 : index
    %c0_52 = arith.constant 0 : index
    %c0_53 = arith.constant 0 : index
    %31 = vector.load %arg8[%c0_51, %c0_52, %c0_53] : memref<18x18x4xf32, #tpu.memory_space<vmem>>, vector<1x18x4xf32>
    tpu.vector_store %arg8[%c0_51, %c0_52, %c0_53], %29 {strides = array<i32>} : memref<18x18x4xf32, #tpu.memory_space<vmem>>, vector<1x18x4xf32>,
    %c17_54 = arith.constant 17 : index
    %c0_55 = arith.constant 0 : index
    %c0_56 = arith.constant 0 : index
    %32 = vector.load %arg8[%c17_54, %c0_55, %c0_56] : memref<18x18x4xf32, #tpu.memory_space<vmem>>, vector<1x18x4xf32>
    tpu.vector_store %arg8[%c17_54, %c0_55, %c0_56], %29 {strides = array<i32>} : memref<18x18x4xf32, #tpu.memory_space<vmem>>, vector<1x18x4xf32>,
    %c1_57 = arith.constant 1 : index
    %c0_58 = arith.constant 0 : index
    %c0_59 = arith.constant 0 : index
    %33 = vector.load %arg8[%c1_57, %c0_58, %c0_59] : memref<18x18x4xf32, #tpu.memory_space<vmem>>, vector<16x1x4xf32>
    tpu.vector_store %arg8[%c1_57, %c0_58, %c0_59], %30 {strides = array<i32>} : memref<18x18x4xf32, #tpu.memory_space<vmem>>, vector<16x1x4xf32>,
    %c1_60 = arith.constant 1 : index
    %c17_61 = arith.constant 17 : index
    %c0_62 = arith.constant 0 : index
    %34 = vector.load %arg8[%c1_60, %c17_61, %c0_62] : memref<18x18x4xf32, #tpu.memory_space<vmem>>, vector<16x1x4xf32>
    tpu.vector_store %arg8[%c1_60, %c17_61, %c0_62], %30 {strides = array<i32>} : memref<18x18x4xf32, #tpu.memory_space<vmem>>, vector<16x1x4xf32>,
    %35 = vector.shape_cast %28 : vector<256x4xf32> to vector<16x16x4xf32>
    %c1_63 = arith.constant 1 : index
    %c1_64 = arith.constant 1 : index
    %c0_65 = arith.constant 0 : index
    %36 = vector.load %arg8[%c1_63, %c1_64, %c0_65] : memref<18x18x4xf32, #tpu.memory_space<vmem>>, vector<16x16x4xf32>
    tpu.vector_store %arg8[%c1_63, %c1_64, %c0_65], %35 {strides = array<i32>} : memref<18x18x4xf32, #tpu.memory_space<vmem>>, vector<16x16x4xf32>,
    %c0_66 = arith.constant 0 : index
    %c0_67 = arith.constant 0 : index
    %c0_68 = arith.constant 0 : index
    %37 = vector.load %arg8[%c0_66, %c0_67, %c0_68] : memref<18x18x4xf32, #tpu.memory_space<vmem>>, vector<16x16x4xf32>
    %c0_69 = arith.constant 0 : index
    %c1_70 = arith.constant 1 : index
    %c0_71 = arith.constant 0 : index
    %38 = vector.load %arg8[%c0_69, %c1_70, %c0_71] : memref<18x18x4xf32, #tpu.memory_space<vmem>>, vector<16x16x4xf32>
    %c0_72 = arith.constant 0 : index
    %c2_73 = arith.constant 2 : index
    %c0_74 = arith.constant 0 : index
    %39 = vector.load %arg8[%c0_72, %c2_73, %c0_74] : memref<18x18x4xf32, #tpu.memory_space<vmem>>, vector<16x16x4xf32>
    %c1_75 = arith.constant 1 : index
    %c0_76 = arith.constant 0 : index
    %c0_77 = arith.constant 0 : index
    %40 = vector.load %arg8[%c1_75, %c0_76, %c0_77] : memref<18x18x4xf32, #tpu.memory_space<vmem>>, vector<16x16x4xf32>
    %c1_78 = arith.constant 1 : index
    %c1_79 = arith.constant 1 : index
    %c0_80 = arith.constant 0 : index
    %41 = vector.load %arg8[%c1_78, %c1_79, %c0_80] : memref<18x18x4xf32, #tpu.memory_space<vmem>>, vector<16x16x4xf32>
    %c1_81 = arith.constant 1 : index
    %c2_82 = arith.constant 2 : index
    %c0_83 = arith.constant 0 : index
    %42 = vector.load %arg8[%c1_81, %c2_82, %c0_83] : memref<18x18x4xf32, #tpu.memory_space<vmem>>, vector<16x16x4xf32>
    %c2_84 = arith.constant 2 : index
    %c0_85 = arith.constant 0 : index
    %c0_86 = arith.constant 0 : index
    %43 = vector.load %arg8[%c2_84, %c0_85, %c0_86] : memref<18x18x4xf32, #tpu.memory_space<vmem>>, vector<16x16x4xf32>
    %c2_87 = arith.constant 2 : index
    %c1_88 = arith.constant 1 : index
    %c0_89 = arith.constant 0 : index
    %44 = vector.load %arg8[%c2_87, %c1_88, %c0_89] : memref<18x18x4xf32, #tpu.memory_space<vmem>>, vector<16x16x4xf32>
    %c2_90 = arith.constant 2 : index
    %c2_91 = arith.constant 2 : index
    %c0_92 = arith.constant 0 : index
    %45 = vector.load %arg8[%c2_90, %c2_91, %c0_92] : memref<18x18x4xf32, #tpu.memory_space<vmem>>, vector<16x16x4xf32>
    %46 = tpu.concatenate %37, %38, %39, %40, %41, %42, %43, %44, %45 in 2 : vector<16x16x4xf32>, vector<16x16x4xf32>, vector<16x16x4xf32>, vector<16x16x4xf32>, vector<16x16x4xf32>, vector<16x16x4xf32>, vector<16x16x4xf32>, vector<16x16x4xf32>, vector<16x16x4xf32> -> vector<16x16x36xf32>
    %47 = vector.shape_cast %46 : vector<16x16x36xf32> to vector<256x36xf32>
    %48 = arith.truncf %47 : vector<256x36xf32> to vector<256x36xbf16>
    %c0_93 = arith.constant 0 : index
    %c0_94 = arith.constant 0 : index
    %49 = vector.load %arg4[%c0_93, %c0_94] : memref<36x4xbf16, #tpu.memory_space<vmem>>, vector<36x4xbf16>
    %cst_95 = arith.constant dense<0.000000e+00> : vector<256x4xf32>
    %50 = tpu.matmul %48, %49, %cst_95 {dimension_numbers = #tpu.dot_dimension_numbers<[1], [0], [0], [1], [0, 0, 1, 1], [], []>} : vector<256x36xbf16>, vector<36x4xbf16>, vector<256x4xf32> -> vector<256x4xf32>
    %51 = vector.shape_cast %2 : vector<16x16x4xf32> to vector<256x4xf32>
    %c0_96 = arith.constant 0 : index
    %c0_97 = arith.constant 0 : index
    %52 = vector.load %arg5[%c0_96, %c0_97] : memref<1x4xf32, #tpu.memory_space<vmem>>, vector<1x4xf32>
    %53 = vector.broadcast %52 : vector<1x4xf32> to vector<256x4xf32>
    %54 = arith.addf %50, %53 : vector<256x4xf32>
    %55 = arith.addf %54, %51 : vector<256x4xf32>
    %cst_98 = arith.constant 0.000000e+00 : f32
    %56 = vector.broadcast %cst_98 : f32 to vector<256x4xf32>
    %57 = arith.maximumf %55, %56 : vector<256x4xf32>
    %c0_99 = arith.constant 0 : index
    %c0_100 = arith.constant 0 : index
    %c0_101 = arith.constant 0 : index
    %58 = vector.load %arg6[%c0_99, %c0_100, %c0_101] : memref<1x256x4xf32, #tpu.memory_space<vmem>>, vector<1x256x4xf32>
    %59 = vector.shape_cast %58 : vector<1x256x4xf32> to vector<256x4xf32>
    %60 = vector.shape_cast %57 : vector<256x4xf32> to vector<1x256x4xf32>
    tpu.vector_store %arg6[%c0_99, %c0_100, %c0_101], %60 {strides = array<i32>} : memref<1x256x4xf32, #tpu.memory_space<vmem>>, vector<1x256x4xf32>,
    return
  }
  func.func @transform_0(%arg0: i32) -> (i32, i32, i32, i32) {
    %c0_i32 = arith.constant 0 : i32
    %c0_i32_0 = arith.constant 0 : i32
    %c0_i32_1 = arith.constant 0 : i32
    %c0_i32_2 = arith.constant 0 : i32
    return %arg0, %c0_i32, %c0_i32_0, %c0_i32_1 : i32, i32, i32, i32
  }
  func.func @transform_1(%arg0: i32) -> (i32, i32) {
    %c0_i32 = arith.constant 0 : i32
    %c0_i32_0 = arith.constant 0 : i32
    %c0_i32_1 = arith.constant 0 : i32
    return %c0_i32, %c0_i32_0 : i32, i32
  }
  func.func @transform_2(%arg0: i32) -> (i32, i32) {
    %c0_i32 = arith.constant 0 : i32
    %c0_i32_0 = arith.constant 0 : i32
    %c0_i32_1 = arith.constant 0 : i32
    return %c0_i32, %c0_i32_0 : i32, i32
  }
  func.func @transform_3(%arg0: i32) -> (i32, i32) {
    %c0_i32 = arith.constant 0 : i32
    %c0_i32_0 = arith.constant 0 : i32
    %c0_i32_1 = arith.constant 0 : i32
    return %c0_i32, %c0_i32_0 : i32, i32
  }
  func.func @transform_4(%arg0: i32) -> (i32, i32) {
    %c0_i32 = arith.constant 0 : i32
    %c0_i32_0 = arith.constant 0 : i32
    %c0_i32_1 = arith.constant 0 : i32
    return %c0_i32, %c0_i32_0 : i32, i32
  }
  func.func @transform_5(%arg0: i32) -> (i32, i32, i32) {
    %c0_i32 = arith.constant 0 : i32
    %c0_i32_0 = arith.constant 0 : i32
    %c0_i32_1 = arith.constant 0 : i32
    return %arg0, %c0_i32, %c0_i32_0 : i32, i32, i32
  }
}

</mosaic_0001>

<bundles_post_ra>
// kernel: tpu_custom_call.1
= control target key start
LH: loop header
LB: loop body
LE: loop exit
PB: predicated region body
PF: predicated region fallthrough
CT: control target
= control target key end

     0   :  { %s5631_s18 = smov 0   ;;  %s8591_s0 = inlined_call_operand.vmem [shape: bf16[2,16,16,4], index: 0, kind: input, shape index: {}]   ;;  %s8592_s1 = inlined_call_operand.vmem [shape: bf16[36,4], index: 1, kind: input, shape index: {}]   ;;  %s8593_s2 = inlined_call_operand.vmem [shape: f32[1,4], index: 2, kind: input, shape index: {}]   ;;  %s8594_s3 = inlined_call_operand.vmem [shape: bf16[36,4], index: 3, kind: input, shape index: {}]   ;;  %s8595_s4 = inlined_call_operand.vmem [shape: f32[1,4], index: 4, kind: input, shape index: {}]   ;;  %s8596_s5 = inlined_call_operand.vmem [shape: f32[2,256,4], index: 5, kind: output, shape index: {}]  }
   0x1 LB: > { %s4127_s19 = sadd.s32 4294967295, %s5590_s18   ;;  %p4131_p0 = scmp.ge.s32.totalorder %s5590_s18, 1  ;;  %s5590_s18 = sphi %s5631_s18, %s15_s18  }
   0x2   : > { %p187_p1 = scmp.lt.s32.totalorder %s5590_s18, 3 }
   0x4   : > { %p188_p2 = pnand %p4131_p0, %p187_p1 }
   0x6   : > { %191 = sbr.rel (%p188_p2) target bundleno = 1289 (0x509), region = 40 }
   0xb   : > { %vm290_vm0 = vcmask 31744   ;;  %vm293_vm1 = vcmask 25600   ;;  %p215_p3 = scmp.lt.s32.totalorder %s4127_s19, 1  ;;  %v5592_v0 = vmov 0.0   ;;  %s5593_s24 = smov 4   ;;  %vm300_vm2 = vcmask 24576  }
   0xc   : > { %291 = vst.msk [vmem:[#allocation2] sm:$0xff] %vm290_vm0, %v5592_v0  ;;  %s5594_s25 = smov 8   ;;  %s5595_s26 = smov 12   ;;  %vm1710_vm3 = vcmask 64512   ;;  %vm1743_vm4 = vcmask 97280   ;;  %vm1776_vm5 = vcmask 130048  }
   0xd   : > { %292 = vst.msk [vmem:[#allocation2 + $0x8] sm:$0xff] %vm290_vm0, %v5592_v0  ;;  %s9036_s19 = smov (!%p215_p3, %s4127_s19), 1  ;;  %s5596_s27 = smov 16   ;;  %vm1809_vm6 = vcmask 162816   ;;  %vm2030_vm7 = vcmask 1041408   ;;  %vm1842_vm8 = vcmask 195584  }
   0xe   : > { %294 = vst.msk [vmem:[#allocation2 + $0x10] sm:$0x3] %vm293_vm1, %v5592_v0  ;;  %s4186_s20 = sshll.u32 %s9036_s19, 7  ;;  %s5597_s28 = smov 20   ;;  %vm1875_vm9 = vcmask 228352   ;;  %vm1908_vm10 = vcmask 261120  }
   0xf   : > { %296 = vst.msk [vmem:[#allocation2 + $0x198] sm:$0xff] %vm290_vm0, %v5592_v0  ;;  %s5655_s23 = scalar_lea.vmem %s8591_s0, %s4186_s20  ;;  %s5598_s29 = smov 24   ;;  %vm1981_vm11 = vcmask 293888  }
  0x10   : > { %297 = vst.msk [vmem:[#allocation2 + $0x1a0] sm:$0xff] %vm290_vm0, %v5592_v0  ;;  %v5660_v1 = vld [vmem:[%s5655_s23 + $0x18] sm:$0xff]   ;;  %v5667_v2 = vld [vmem:[%s5655_s23 + $0x8] sm:$0xff]   ;;  %v5676_v7 = vld [vmem:[%s5655_s23] sm:$0xff]   ;;  %s5599_s30 = smov 28   ;;  %s5600_s6 = smov 32  }
  0x11   : > { %298 = vst.msk [vmem:[#allocation2 + $0x1a8] sm:$0x3] %vm293_vm1, %v5592_v0  ;;  %v8613_v4 = vunpack.c.l.bf16 %v5660_v1  ;;  %v8611_v6 = vunpack.c.h.bf16 %v5660_v1  ;;  %v8621_v9 = vunpack.c.l.bf16 %v5667_v2  ;;  %v8619_v10 = vunpack.c.h.bf16 %v5667_v2  ;;  %v5685_v11 = vld [vmem:[%s5655_s23 + $0x20] sm:$0xff]   ;;  %v5697_v14 = vld [vmem:[%s5655_s23 + $0x10] sm:$0xff]   ;;  %v5708_v17 = vld [vmem:[%s5655_s23 + $0x28] sm:$0xff]  }
  0x12   : > { %8763 = vst [vmem:[#allocation4_spill] sm:$0xff] %v5660_v1  ;;  %v8627_v12 = vunpack.c.l.bf16 %v5676_v7  ;;  %v8623_v13 = vunpack.c.h.bf16 %v5676_v7  ;;  %v8609_v15 = vunpack.c.l.bf16 %v5685_v11  ;;  %v8607_v16 = vunpack.c.h.bf16 %v5685_v11  ;;  %v5719_v20 = vld [vmem:[%s5655_s23 + $0x38] sm:$0xff]   ;;  %v5730_v24 = vld [vmem:[%s5655_s23 + $0x30] sm:$0xff]   ;;  %v5743_v30 = vld [vmem:[%s5655_s23 + $0x40] sm:$0xff]  }
  0x13   : > { %2155 = vst.msk [vmem:[#allocation3] sm:$0xff] %vm290_vm0, %v5592_v0  ;;  %v8617_v18 = vunpack.c.l.bf16 %v5697_v14  ;;  %v8615_v19 = vunpack.c.h.bf16 %v5697_v14  ;;  %v8605_v21 = vunpack.c.l.bf16 %v5708_v17  ;;  %v8603_v23 = vunpack.c.h.bf16 %v5708_v17  ;;  %v5758_v36 = vld [vmem:[%s5655_s23 + $0x50] sm:$0xff]   ;;  %v5773_v42 = vld [vmem:[%s5655_s23 + $0x48] sm:$0xff]   ;;  %v5788_v48 = vld [vmem:[%s5655_s23 + $0x58] sm:$0xff]  }
  0x14   : > { %2156 = vst.msk [vmem:[#allocation3 + $0x8] sm:$0xff] %vm290_vm0, %v5592_v0  ;;  %v397_v3 = vld [vmem:[#allocation2 + $0x1] sm:$0xff]  ;;  %v8598_v26 = vunpack.c.l.bf16 %v5719_v20  ;;  %v8597_v29 = vunpack.c.h.bf16 %v5719_v20  ;;  %v8601_v32 = vunpack.c.l.bf16 %v5730_v24  ;;  %v8599_v35 = vunpack.c.h.bf16 %v5730_v24 }
  0x15   : > { %8764 = vst [vmem:[#allocation5_spill] sm:$0xff] %v5667_v2  ;;  %v398_v5 = vld [vmem:[#allocation2 + $0x9] sm:$0xff]  ;;  %v8628_v38 = vunpack.c.l.bf16 %v5743_v30  ;;  %v8624_v41 = vunpack.c.h.bf16 %v5743_v30  ;;  %v8618_v44 = vunpack.c.l.bf16 %v5758_v36  ;;  %v8616_v47 = vunpack.c.h.bf16 %v5758_v36  ;;  %v5816_v59 = vld [vmem:[%s5655_s23 + $0x60] sm:$0xff]  }
  0x16   : > { %2157 = vst.msk [vmem:[#allocation3 + $0x10] sm:$0x3] %vm293_vm1, %v5592_v0  ;;  %v4294_v8 = vpack.i.bf16 %v398_v5, %v397_v3  ;;  %v8622_v50 = vunpack.c.l.bf16 %v5773_v42  ;;  %v8620_v53 = vunpack.c.h.bf16 %v5773_v42  ;;  %v5801_v54 = vld [vmem:[%s5655_s23 + $0x68] sm:$0xff]   ;;  %v8614_v56 = vunpack.c.l.bf16 %v5788_v48  ;;  %v5829_v3 = vld [vmem:[%s5655_s23 + $0x70] sm:$0xff]  }
  0x17   : > { %2159 = vst.msk [vmem:[#allocation3 + $0x198] sm:$0xff] %vm290_vm0, %v5592_v0  ;;  %v8612_v58 = vunpack.c.h.bf16 %v5788_v48  ;;  %v8606_v62 = vunpack.c.l.bf16 %v5801_v54  ;;  %v8604_v63 = vunpack.c.h.bf16 %v5801_v54 }
  0x18   : > { %8765 = vst [vmem:[#allocation6_spill] sm:$0xff] %v5676_v7  ;;  %4295 = vrot.lane.b32.xlu0 %v4294_v8, %s5593_s24 }
  0x19   : > { %2160 = vst.msk [vmem:[#allocation3 + $0x1a0] sm:$0xff] %vm290_vm0, %v5592_v0 }
  0x1a   : > { %2161 = vst.msk [vmem:[#allocation3 + $0x1a8] sm:$0x3] %vm293_vm1, %v5592_v0 }
  0x1b   : > { %8766 = vst [vmem:[#allocation7_spill] sm:$0xff] %v5685_v11 }
  0x1c   : > { %339 = vst.msk [vmem:[#allocation2 + $0x61] sm:$0xff] %vm290_vm0, %v8613_v4 }
  0x1d   : > { %340 = vst.msk [vmem:[#allocation2 + $0x69] sm:$0xff] %vm290_vm0, %v8611_v6 }
  0x1e   : > { %8767 = vst [vmem:[#allocation8_spill] sm:$0xff] %v5697_v14 }
  0x1f   : > { %335 = vst.msk [vmem:[#allocation2 + $0x31] sm:$0xff] %vm290_vm0, %v8621_v9 }
  0x20   : > { %336 = vst.msk [vmem:[#allocation2 + $0x39] sm:$0xff] %vm290_vm0, %v8619_v10 }
  0x21   : > { %8768 = vst [vmem:[#allocation9_spill] sm:$0xff] %v5708_v17 }
  0x22   : > { %333 = vst.msk [vmem:[#allocation2 + $0x19] sm:$0xff] %vm290_vm0, %v8627_v12 }
  0x23   : > { %334 = vst.msk [vmem:[#allocation2 + $0x21] sm:$0xff] %vm290_vm0, %v8623_v13  ;;  %v405_v22 = vld [vmem:[#allocation2 + $0x61] sm:$0xff] }
  0x24   : > { %8769 = vst [vmem:[#allocation10_spill] sm:$0xff] %v5719_v20  ;;  %v406_v25 = vld [vmem:[#allocation2 + $0x69] sm:$0xff] }
  0x25   : > { %341 = vst.msk [vmem:[#allocation2 + $0x79] sm:$0xff] %vm290_vm0, %v8609_v15  ;;  %v5736_v27 = vpack.i.bf16 %v406_v25, %v405_v22  ;;  %v8610_v22 = vunpack.c.l.bf16 %v5816_v59 }
  0x26   : > { %342 = vst.msk [vmem:[#allocation2 + $0x81] sm:$0xff] %vm290_vm0, %v8607_v16  ;;  %v401_v28 = vld [vmem:[#allocation2 + $0x31] sm:$0xff] }
  0x27   : > { %8770 = vst [vmem:[#allocation11_spill] sm:$0xff] %v5730_v24  ;;  %v402_v31 = vld [vmem:[#allocation2 + $0x39] sm:$0xff]  ;;  %4315 = vrot.lane.b32.xlu2 %v5736_v27, %s5593_s24 }
  0x28   : > { %337 = vst.msk [vmem:[#allocation2 + $0x49] sm:$0xff] %vm290_vm0, %v8617_v18  ;;  %v5751_v33 = vpack.i.bf16 %v402_v31, %v401_v28  ;;  %v8608_v28 = vunpack.c.h.bf16 %v5816_v59 }
  0x29   : > { %338 = vst.msk [vmem:[#allocation2 + $0x51] sm:$0xff] %vm290_vm0, %v8615_v19  ;;  %v399_v34 = vld [vmem:[#allocation2 + $0x19] sm:$0xff] }
  0x2a   : > { %8771 = vst [vmem:[#allocation12_spill] sm:$0xff] %v5743_v30  ;;  %v400_v37 = vld [vmem:[#allocation2 + $0x21] sm:$0xff]  ;;  %4305 = vrot.lane.b32.xlu1 %v5751_v33, %s5593_s24  ;;  %v6086_v19 = vld [vmem:[#allocation2 + $0x38] sm:$0xff] }
  0x2b   : > { %343 = vst.msk [vmem:[#allocation2 + $0x91] sm:$0xff] %vm290_vm0, %v8605_v21  ;;  %v5766_v39 = vpack.i.bf16 %v400_v37, %v399_v34  ;;  %v8602_v37 = vunpack.c.l.bf16 %v5829_v3 }
  0x2c   : > { %344 = vst.msk [vmem:[#allocation2 + $0x99] sm:$0xff] %vm290_vm0, %v8603_v23  ;;  %v407_v40 = vld [vmem:[#allocation2 + $0x79] sm:$0xff] }
  0x2d   : > { %8772 = vst [vmem:[#allocation13_spill] sm:$0xff] %v5758_v36  ;;  %v408_v43 = vld [vmem:[#allocation2 + $0x81] sm:$0xff]  ;;  %4300 = vrot.lane.b32.xlu0 %v5766_v39, %s5593_s24 }
  0x2e   : > { %347 = vst.msk [vmem:[#allocation2 + $0xc1] sm:$0xff] %vm290_vm0, %v8598_v26  ;;  %v5781_v45 = vpack.i.bf16 %v408_v43, %v407_v40  ;;  %v8600_v43 = vunpack.c.h.bf16 %v5829_v3  ;;  %v6132_v13 = vld [vmem:[#allocation2 + $0x80] sm:$0xff] }
  0x2f   : > { %348 = vst.msk [vmem:[#allocation2 + $0xc9] sm:$0xff] %vm290_vm0, %v8597_v29  ;;  %v403_v46 = vld [vmem:[#allocation2 + $0x49] sm:$0xff] }
  0x30   : > { %8773 = vst [vmem:[#allocation14_spill] sm:$0xff] %v5773_v42  ;;  %v404_v49 = vld [vmem:[#allocation2 + $0x51] sm:$0xff]  ;;  %4320 = vrot.lane.b32.xlu2 %v5781_v45, %s5593_s24 }
  0x31   : > { %345 = vst.msk [vmem:[#allocation2 + $0xa9] sm:$0xff] %vm290_vm0, %v8601_v32  ;;  %v5794_v51 = vpack.i.bf16 %v404_v49, %v403_v46 }
  0x32   : > { %346 = vst.msk [vmem:[#allocation2 + $0xb1] sm:$0xff] %vm290_vm0, %v8599_v35  ;;  %v409_v52 = vld [vmem:[#allocation2 + $0x91] sm:$0xff] }
  0x33   : > { %8774 = vst [vmem:[#allocation15_spill] sm:$0xff] %v5788_v48  ;;  %v410_v55 = vld [vmem:[#allocation2 + $0x99] sm:$0xff]  ;;  %4310 = vrot.lane.b32.xlu1 %v5794_v51, %s5593_s24 }
  0x34   : > { %349 = vst.msk [vmem:[#allocation2 + $0xd9] sm:$0xff] %vm290_vm0, %v8628_v38  ;;  %v5809_v57 = vpack.i.bf16 %v410_v55, %v409_v52  ;;  %v472_v20 = vld [vmem:[#allocation2 + $0x98] sm:$0xff] }
  0x35   : > { %350 = vst.msk [vmem:[#allocation2 + $0xe1] sm:$0xff] %vm290_vm0, %v8624_v41  ;;  %v413_v60 = vld [vmem:[#allocation2 + $0xc1] sm:$0xff] }
  0x36   : > { %8775 = vst [vmem:[#allocation16_spill] sm:$0xff] %v5801_v54  ;;  %v414_v61 = vld [vmem:[#allocation2 + $0xc9] sm:$0xff]  ;;  %4325 = vrot.lane.b32.xlu0 %v5809_v57, %s5593_s24 }
  0x37   : > { %353 = vst.msk [vmem:[#allocation2 + $0x109] sm:$0xff] %vm290_vm0, %v8618_v44  ;;  %v5837_v25 = vpack.i.bf16 %v414_v61, %v413_v60  ;;  %v6152_v17 = vld [vmem:[#allocation2 + $0xc8] sm:$0xff] }
  0x38   : > { %354 = vst.msk [vmem:[#allocation2 + $0x111] sm:$0xff] %vm290_vm0, %v8616_v47  ;;  %v411_v5 = vld [vmem:[#allocation2 + $0xa9] sm:$0xff] }
  0x39   : > { %8776 = vst [vmem:[#allocation17_spill] sm:$0xff] %v5816_v59  ;;  %v412_v8 = vld [vmem:[#allocation2 + $0xb1] sm:$0xff]  ;;  %4335 = vrot.lane.b32.xlu2 %v5837_v25, %s5593_s24 }
  0x3a   : > { %351 = vst.msk [vmem:[#allocation2 + $0xf1] sm:$0xff] %vm290_vm0, %v8622_v50  ;;  %v5847_v40 = vpack.i.bf16 %v412_v8, %v411_v5 }
  0x3b   : > { %352 = vst.msk [vmem:[#allocation2 + $0xf9] sm:$0xff] %vm290_vm0, %v8620_v53  ;;  %v415_v31 = vld [vmem:[#allocation2 + $0xd9] sm:$0xff]  ;;  %v6112_v53 = vld [vmem:[#allocation2 + $0x50] sm:$0xff] }
  0x3c   : > { %8777 = vst [vmem:[#allocation18_spill] sm:$0xff] %v5829_v3  ;;  %v416_v34 = vld [vmem:[#allocation2 + $0xe1] sm:$0xff]  ;;  %4330 = vrot.lane.b32.xlu1 %v5847_v40, %s5593_s24 }
  0x3d   : > { %355 = vst.msk [vmem:[#allocation2 + $0x121] sm:$0xff] %vm290_vm0, %v8614_v56  ;;  %v5858_v46 = vpack.i.bf16 %v416_v34, %v415_v31 }
  0x3e   : > { %356 = vst.msk [vmem:[#allocation2 + $0x129] sm:$0xff] %vm290_vm0, %v8612_v58  ;;  %v419_v49 = vld [vmem:[#allocation2 + $0x109] sm:$0xff] }
  0x3f   : > { %359 = vst.msk [vmem:[#allocation2 + $0x151] sm:$0xff] %vm290_vm0, %v8606_v62  ;;  %v420_v52 = vld [vmem:[#allocation2 + $0x111] sm:$0xff]  ;;  %4340 = vrot.lane.b32.xlu0 %v5858_v46, %s5593_s24 }
  0x40   : > { %360 = vst.msk [vmem:[#allocation2 + $0x159] sm:$0xff] %vm290_vm0, %v8604_v63  ;;  %v5875_v61 = vpack.i.bf16 %v420_v52, %v419_v49  ;;  %v443_v63 = vld [vmem:[#allocation2 + $0xaa] sm:$0xff] }
  0x41   : > { %357 = vst.msk [vmem:[#allocation2 + $0x139] sm:$0xff] %vm290_vm0, %v8610_v22  ;;  %v417_v55 = vld [vmem:[#allocation2 + $0xf1] sm:$0xff] }
  0x42   : > { %358 = vst.msk [vmem:[#allocation2 + $0x141] sm:$0xff] %vm290_vm0, %v8608_v28  ;;  %v418_v60 = vld [vmem:[#allocation2 + $0xf9] sm:$0xff]  ;;  %4350 = vrot.lane.b32.xlu2 %v5875_v61, %s5593_s24  ;;  %v6184_v14 = vld [vmem:[#allocation2 + $0x110] sm:$0xff] }
  0x43   : > { %361 = vst.msk [vmem:[#allocation2 + $0x169] sm:$0xff] %vm290_vm0, %v8602_v37  ;;  %v5881_v31 = vpack.i.bf16 %v418_v60, %v417_v55  ;;  %v6158_v11 = vld [vmem:[#allocation2 + $0xf8] sm:$0xff] }
  0x44   : > { %362 = vst.msk [vmem:[#allocation2 + $0x171] sm:$0xff] %vm290_vm0, %v8600_v43  ;;  %v421_v5 = vld [vmem:[#allocation2 + $0x121] sm:$0xff] }
  0x45   : > { %317 = vst.msk [vmem:[#allocation2 + $0x29] sm:$0x1] %vm300_vm2, %v5592_v0  ;;  %v422_v8 = vld [vmem:[#allocation2 + $0x129] sm:$0xff]  ;;  %4345 = vrot.lane.b32.xlu1 %v5881_v31, %s5593_s24 }
  0x46   : > { %301 = vst.msk [vmem:[#allocation2 + $0x18] sm:$0x1] %vm300_vm2, %v5592_v0  ;;  %v5889_v34 = vpack.i.bf16 %v422_v8, %v421_v5  ;;  %v425_v49 = vld [vmem:[#allocation2 + $0x151] sm:$0xff] }
  0x47   : > { %302 = vst.msk [vmem:[#allocation2 + $0x30] sm:$0x1] %vm300_vm2, %v5592_v0  ;;  %v426_v52 = vld [vmem:[#allocation2 + $0x159] sm:$0xff] }
  0x48   : > { %303 = vst.msk [vmem:[#allocation2 + $0x48] sm:$0x1] %vm300_vm2, %v5592_v0  ;;  %v423_v55 = vld [vmem:[#allocation2 + $0x139] sm:$0xff]  ;;  %4355 = vrot.lane.b32.xlu0 %v5889_v34, %s5593_s24  ;;  %v5903_v5 = vpack.i.bf16 %v426_v52, %v425_v49 }
  0x49   : > { %304 = vst.msk [vmem:[#allocation2 + $0x60] sm:$0x1] %vm300_vm2, %v5592_v0  ;;  %v424_v60 = vld [vmem:[#allocation2 + $0x141] sm:$0xff] }
  0x4a   : > { %305 = vst.msk [vmem:[#allocation2 + $0x78] sm:$0x1] %vm300_vm2, %v5592_v0  ;;  %v427_v8 = vld [vmem:[#allocation2 + $0x169] sm:$0xff]  ;;  %v5909_v26 = vpack.i.bf16 %v424_v60, %v423_v55  ;;  %4365 = vrot.lane.b32.xlu2 %v5903_v5, %s5593_s24  ;;  %v431_v52 = vld [vmem:[#allocation2 + $0x1a] sm:$0xff] }
  0x4b   : > { %306 = vst.msk [vmem:[#allocation2 + $0x90] sm:$0x1] %vm300_vm2, %v5592_v0  ;;  %v428_v29 = vld [vmem:[#allocation2 + $0x171] sm:$0xff]  ;;  %v429_v55 = vld [vmem:[#allocation2 + $0x2] sm:$0xff] }
  0x4c   : > { %307 = vst.msk [vmem:[#allocation2 + $0xa8] sm:$0x1] %vm300_vm2, %v5592_v0  ;;  %v5917_v49 = vpack.i.bf16 %v428_v29, %v427_v8  ;;  %v432_v35 = vld [vmem:[#allocation2 + $0x22] sm:$0xff]  ;;  %v430_v60 = vld [vmem:[#allocation2 + $0xa] sm:$0xff] }
  0x4d   : > { %308 = vst.msk [vmem:[#allocation2 + $0xc0] sm:$0x1] %vm300_vm2, %v5592_v0  ;;  %4360 = vrot.lane.b32.xlu1 %v5909_v26, %s5593_s24  ;;  %v5931_v29 = vpack.i.bf16 %v432_v35, %v431_v52  ;;  %v4374_v8 = vpack.i.bf16 %v430_v60, %v429_v55  ;;  %v433_v35 = vld [vmem:[#allocation2 + $0x32] sm:$0xff]  ;;  %v435_v55 = vld [vmem:[#allocation2 + $0x4a] sm:$0xff]  ;;  %v437_v60 = vld [vmem:[#allocation2 + $0x62] sm:$0xff] }
  0x4e   : > { %309 = vst.msk [vmem:[#allocation2 + $0xd8] sm:$0x1] %vm300_vm2, %v5592_v0  ;;  %v486_v2 = vld [vmem:[#allocation2 + $0x140] sm:$0xff] }
  0x4f   : > { %310 = vst.msk [vmem:[#allocation2 + $0xf0] sm:$0x1] %vm300_vm2, %v5592_v0  ;;  %v6110_v10 = vld [vmem:[#allocation2 + $0x48] sm:$0xff] }
  0x50   : > { %311 = vst.msk [vmem:[#allocation2 + $0x108] sm:$0x1] %vm300_vm2, %v5592_v0  ;;  %4370 = vrot.lane.b32.xlu0 %v5917_v49, %s5593_s24  ;;  %v6093_v47 = vld [vmem:[#allocation2 + $0x60] sm:$0xff] }
  0x51   : > { %312 = vst.msk [vmem:[#allocation2 + $0x120] sm:$0x1] %vm300_vm2, %v5592_v0  ;;  %v6130_v50 = vld [vmem:[#allocation2 + $0x78] sm:$0xff] }
  0x52   : > { %313 = vst.msk [vmem:[#allocation2 + $0x138] sm:$0x1] %vm300_vm2, %v5592_v0  ;;  %4380 = vrot.lane.b32.xlu2 %v5931_v29, %s5594_s25  ;;  %v471_v38 = vld [vmem:[#allocation2 + $0x90] sm:$0xff] }
  0x53   : > { %314 = vst.msk [vmem:[#allocation2 + $0x150] sm:$0x1] %vm300_vm2, %v5592_v0  ;;  %v473_v41 = vld [vmem:[#allocation2 + $0xa8] sm:$0xff]  ;;  %v6148_v24 = vpack.i.bf16 %v472_v20, %v471_v38 }
  0x54   : > { %315 = vst.msk [vmem:[#allocation2 + $0x168] sm:$0x1] %vm300_vm2, %v5592_v0  ;;  %v6150_v3 = vld [vmem:[#allocation2 + $0xc0] sm:$0xff] }
  0x55   : > { %316 = vst.msk [vmem:[#allocation2 + $0x180] sm:$0x1] %vm300_vm2, %v5592_v0  ;;  %4375 = vrot.lane.b32.xlu1 %v4374_v8, %s5594_s25  ;;  %v6168_v38 = vld [vmem:[#allocation2 + $0xd8] sm:$0xff] }
  0x56   : > { %318 = vst.msk [vmem:[#allocation2 + $0x41] sm:$0x1] %vm300_vm2, %v5592_v0  ;;  %v6156_v54 = vld [vmem:[#allocation2 + $0xf0] sm:$0xff] }
  0x57   : > { %319 = vst.msk [vmem:[#allocation2 + $0x59] sm:$0x1] %vm300_vm2, %v5592_v0  ;;  %v6174_v59 = vpack.i.bf16 %v6158_v11, %v6156_v54  ;;  %v6182_v48 = vld [vmem:[#allocation2 + $0x108] sm:$0xff] }
  0x58   : > { %320 = vst.msk [vmem:[#allocation2 + $0x71] sm:$0x1] %vm300_vm2, %v5592_v0  ;;  %v6192_v42 = vpack.i.bf16 %v6184_v14, %v6182_v48  ;;  %v483_v30 = vld [vmem:[#allocation2 + $0x120] sm:$0xff] }
  0x59   : > { %321 = vst.msk [vmem:[#allocation2 + $0x89] sm:$0x1] %vm300_vm2, %v5592_v0  ;;  %v485_v36 = vld [vmem:[#allocation2 + $0x138] sm:$0xff] }
  0x5a   : > { %322 = vst.msk [vmem:[#allocation2 + $0xa1] sm:$0x1] %vm300_vm2, %v5592_v0 }
  0x5b   : > { %323 = vst.msk [vmem:[#allocation2 + $0xb9] sm:$0x1] %vm300_vm2, %v5592_v0 }
  0x5c   : > { %324 = vst.msk [vmem:[#allocation2 + $0xd1] sm:$0x1] %vm300_vm2, %v5592_v0 }
  0x5d   : > { %325 = vst.msk [vmem:[#allocation2 + $0xe9] sm:$0x1] %vm300_vm2, %v5592_v0  ;;  %v434_v52 = vld [vmem:[#allocation2 + $0x3a] sm:$0xff] }
  0x5e   : > { %326 = vst.msk [vmem:[#allocation2 + $0x101] sm:$0x1] %vm300_vm2, %v5592_v0  ;;  %v5954_v43 = vpack.i.bf16 %v434_v52, %v433_v35  ;;  %v436_v32 = vld [vmem:[#allocation2 + $0x52] sm:$0xff]  ;;  %v439_v35 = vld [vmem:[#allocation2 + $0x7a] sm:$0xff] }
  0x5f   : > { %327 = vst.msk [vmem:[#allocation2 + $0x119] sm:$0x1] %vm300_vm2, %v5592_v0  ;;  %v438_v37 = vld [vmem:[#allocation2 + $0x6a] sm:$0xff]  ;;  %v5962_v8 = vpack.i.bf16 %v436_v32, %v435_v55 }
  0x60   : > { %328 = vst.msk [vmem:[#allocation2 + $0x131] sm:$0x1] %vm300_vm2, %v5592_v0  ;;  %4385 = vrot.lane.b32.xlu0 %v5954_v43, %s5594_s25  ;;  %v5964_v23 = vpack.i.bf16 %v438_v37, %v437_v60  ;;  %v440_v52 = vld [vmem:[#allocation2 + $0x82] sm:$0xff]  ;;  %v441_v37 = vld [vmem:[#allocation2 + $0x92] sm:$0xff] }
  0x61   : > { %329 = vst.msk [vmem:[#allocation2 + $0x149] sm:$0x1] %vm300_vm2, %v5592_v0  ;;  %4390 = vrot.lane.b32.xlu1 %v5962_v8, %s5594_s25  ;;  %v5978_v32 = vpack.i.bf16 %v440_v52, %v439_v35  ;;  %v442_v55 = vld [vmem:[#allocation2 + $0x9a] sm:$0xff]  ;;  %v445_v52 = vld [vmem:[#allocation2 + $0xc2] sm:$0xff] }
  0x62   : > { %330 = vst.msk [vmem:[#allocation2 + $0x161] sm:$0x1] %vm300_vm2, %v5592_v0  ;;  %4395 = vrot.lane.b32.xlu2 %v5964_v23, %s5594_s25  ;;  %v444_v21 = vld [vmem:[#allocation2 + $0xb2] sm:$0xff]  ;;  %v5992_v35 = vpack.i.bf16 %v442_v55, %v441_v37  ;;  %v447_v55 = vld [vmem:[#allocation2 + $0xda] sm:$0xff] }
  0x63   : > { %331 = vst.msk [vmem:[#allocation2 + $0x179] sm:$0x1] %vm300_vm2, %v5592_v0  ;;  %v5984_v60 = vpack.i.bf16 %v444_v21, %v443_v63  ;;  %v446_v62 = vld [vmem:[#allocation2 + $0xca] sm:$0xff]  ;;  %v449_v21 = vld [vmem:[#allocation2 + $0xf2] sm:$0xff] }
  0x64   : > { %332 = vst.msk [vmem:[#allocation2 + $0x191] sm:$0x1] %vm300_vm2, %v5592_v0  ;;  %v6006_v37 = vpack.i.bf16 %v446_v62, %v445_v52  ;;  %v448_v16 = vld [vmem:[#allocation2 + $0xe2] sm:$0xff]  ;;  %v451_v52 = vld [vmem:[#allocation2 + $0x10a] sm:$0xff] }
  0x65   : > { %2163 = vst.msk [vmem:[#allocation3 + $0x18] sm:$0x1] %vm300_vm2, %v5592_v0  ;;  %v450_v63 = vld [vmem:[#allocation2 + $0xfa] sm:$0xff]  ;;  %v6020_v62 = vpack.i.bf16 %v448_v16, %v447_v55  ;;  %v453_v55 = vld [vmem:[#allocation2 + $0x122] sm:$0xff] }
  0x66   : > { %2164 = vst.msk [vmem:[#allocation3 + $0x30] sm:$0x1] %vm300_vm2, %v5592_v0  ;;  %v6012_v28 = vpack.i.bf16 %v450_v63, %v449_v21  ;;  %v452_v15 = vld [vmem:[#allocation2 + $0x112] sm:$0xff]  ;;  %v455_v21 = vld [vmem:[#allocation2 + $0x13a] sm:$0xff] }
  0x67   : > { %2165 = vst.msk [vmem:[#allocation3 + $0x48] sm:$0x1] %vm300_vm2, %v5592_v0  ;;  %v6034_v16 = vpack.i.bf16 %v452_v15, %v451_v52  ;;  %v454_v22 = vld [vmem:[#allocation2 + $0x12a] sm:$0xff]  ;;  %v457_v52 = vld [vmem:[#allocation2 + $0x152] sm:$0xff] }
  0x68   : > { %2166 = vst.msk [vmem:[#allocation3 + $0x60] sm:$0x1] %vm300_vm2, %v5592_v0  ;;  %4400 = vrot.lane.b32.xlu0 %v5978_v32, %s5594_s25  ;;  %v456_v63 = vld [vmem:[#allocation2 + $0x142] sm:$0xff]  ;;  %v6048_v15 = vpack.i.bf16 %v454_v22, %v453_v55  ;;  %v459_v55 = vld [vmem:[#allocation2 + $0x16a] sm:$0xff] }
  0x69   : > { %2167 = vst.msk [vmem:[#allocation3 + $0x78] sm:$0x1] %vm300_vm2, %v5592_v0  ;;  %4405 = vrot.lane.b32.xlu1 %v5992_v35, %s5594_s25  ;;  %v6040_v6 = vpack.i.bf16 %v456_v63, %v455_v21  ;;  %v458_v58 = vld [vmem:[#allocation2 + $0x15a] sm:$0xff] }
  0x6a   : > { %2168 = vst.msk [vmem:[#allocation3 + $0x90] sm:$0x1] %vm300_vm2, %v5592_v0  ;;  %4410 = vrot.lane.b32.xlu2 %v5984_v60, %s5594_s25  ;;  %v6058_v21 = vld [vmem:[#allocation2 + $0x18] sm:$0xff]  ;;  %v6060_v63 = vld [vmem:[#allocation2 + $0x20] sm:$0xff]  ;;  %v6066_v22 = vpack.i.bf16 %v458_v58, %v457_v52  ;;  %v6084_v52 = vld [vmem:[#allocation2 + $0x30] sm:$0xff] }
  0x6b   : > { %2169 = vst.msk [vmem:[#allocation3 + $0xa8] sm:$0x1] %vm300_vm2, %v5592_v0  ;;  %v460_v4 = vld [vmem:[#allocation2 + $0x172] sm:$0xff]  ;;  %v4454_v56 = vpack.i.bf16 %v6060_v63, %v6058_v21  ;;  %v6106_v18 = vpack.i.bf16 %v6086_v19, %v6084_v52 }
  0x6c   : > { %2170 = vst.msk [vmem:[#allocation3 + $0xc0] sm:$0x1] %vm300_vm2, %v5592_v0  ;;  %v6080_v58 = vpack.i.bf16 %v460_v4, %v459_v55  ;;  %v6095_v4 = vld [vmem:[#allocation2 + $0x68] sm:$0xff]  ;;  %v6098_v55 = vld [vmem:[%s5655_s23 + $0x78] sm:$0xff]  }
  0x6d   : > { %2171 = vst.msk [vmem:[#allocation3 + $0xd8] sm:$0x1] %vm300_vm2, %v5592_v0  ;;  %v8626_v44 = vunpack.c.h.bf16 %v6098_v55  ;;  %v6116_v9 = vpack.i.bf16 %v6095_v4, %v6093_v47 }
  0x6e   : > { %2172 = vst.msk [vmem:[#allocation3 + $0xf0] sm:$0x1] %vm300_vm2, %v5592_v0 }
  0x6f   : > { %2173 = vst.msk [vmem:[#allocation3 + $0x108] sm:$0x1] %vm300_vm2, %v5592_v0 }
  0x70   : > { %2174 = vst.msk [vmem:[#allocation3 + $0x120] sm:$0x1] %vm300_vm2, %v5592_v0  ;;  %4415 = vrot.lane.b32.xlu0 %v6006_v37, %s5594_s25 }
  0x71   : > { %2175 = vst.msk [vmem:[#allocation3 + $0x138] sm:$0x1] %vm300_vm2, %v5592_v0  ;;  %4420 = vrot.lane.b32.xlu1 %v6020_v62, %s5594_s25 }
  0x72   : > { %2176 = vst.msk [vmem:[#allocation3 + $0x150] sm:$0x1] %vm300_vm2, %v5592_v0  ;;  %4425 = vrot.lane.b32.xlu2 %v6012_v28, %s5594_s25 }
  0x73   : > { %2177 = vst.msk [vmem:[#allocation3 + $0x168] sm:$0x1] %vm300_vm2, %v5592_v0 }
  0x74   : > { %2178 = vst.msk [vmem:[#allocation3 + $0x180] sm:$0x1] %vm300_vm2, %v5592_v0 }
  0x75   : > { %2179 = vst.msk [vmem:[#allocation3 + $0x29] sm:$0x1] %vm300_vm2, %v5592_v0 }
  0x76   : > { %2180 = vst.msk [vmem:[#allocation3 + $0x41] sm:$0x1] %vm300_vm2, %v5592_v0 }
  0x77   : > { %2181 = vst.msk [vmem:[#allocation3 + $0x59] sm:$0x1] %vm300_vm2, %v5592_v0 }
  0x78   : > { %2182 = vst.msk [vmem:[#allocation3 + $0x71] sm:$0x1] %vm300_vm2, %v5592_v0  ;;  %4430 = vrot.lane.b32.xlu0 %v6034_v16, %s5594_s25 }
  0x79   : > { %2183 = vst.msk [vmem:[#allocation3 + $0x89] sm:$0x1] %vm300_vm2, %v5592_v0  ;;  %4435 = vrot.lane.b32.xlu1 %v6048_v15, %s5594_s25 }
  0x7a   : > { %2184 = vst.msk [vmem:[#allocation3 + $0xa1] sm:$0x1] %vm300_vm2, %v5592_v0  ;;  %4440 = vrot.lane.b32.xlu2 %v6040_v6, %s5594_s25 }
  0x7b   : > { %2185 = vst.msk [vmem:[#allocation3 + $0xb9] sm:$0x1] %vm300_vm2, %v5592_v0 }
  0x7c   : > { %8778 = vst [vmem:[#allocation19_spill] sm:$0xff] %v6058_v21 }
  0x7d   : > { %8779 = vst [vmem:[#allocation20_spill] sm:$0xff] %v6060_v63 }
  0x7e   : > { %2186 = vst.msk [vmem:[#allocation3 + $0xd1] sm:$0x1] %vm300_vm2, %v5592_v0 }
  0x7f   : > { %2187 = vst.msk [vmem:[#allocation3 + $0xe9] sm:$0x1] %vm300_vm2, %v5592_v0 }
  0x80   : > { %2188 = vst.msk [vmem:[#allocation3 + $0x101] sm:$0x1] %vm300_vm2, %v5592_v0  ;;  %4445 = vrot.lane.b32.xlu0 %v6066_v22, %s5594_s25 }
  0x81   : > { %2189 = vst.msk [vmem:[#allocation3 + $0x119] sm:$0x1] %vm300_vm2, %v5592_v0  ;;  %4450 = vrot.lane.b32.xlu1 %v6080_v58, %s5594_s25  ;;  %v6142_v12 = vpop.permute.xlu2 %4315 }
  0x82   : > { %2190 = vst.msk [vmem:[#allocation3 + $0x131] sm:$0x1] %vm300_vm2, %v5592_v0  ;;  %4455 = vrot.lane.b32.xlu2 %v4454_v56, %s5595_s26  ;;  %v8625_v56 = vunpack.c.l.bf16 %v6098_v55 }
  0x83   : > { %2191 = vst.msk [vmem:[#allocation3 + $0x149] sm:$0x1] %vm300_vm2, %v5592_v0 }
  0x84   : > { %8780 = vst [vmem:[#allocation21_spill] sm:$0xff] %v6084_v52 }
  0x85   : > { %8781 = vst [vmem:[#allocation22_spill] sm:$0xff] %v6086_v19 }
  0x86   : > { %2192 = vst.msk [vmem:[#allocation3 + $0x161] sm:$0x1] %vm300_vm2, %v5592_v0 }
  0x87   : > { %2193 = vst.msk [vmem:[#allocation3 + $0x179] sm:$0x1] %vm300_vm2, %v5592_v0 }
  0x88   : > { %8782 = vst [vmem:[#allocation23_spill] sm:$0xff] %v6098_v55  ;;  %4460 = vrot.lane.b32.xlu0 %v6106_v18, %s5595_s26 }
  0x89   : > { %2194 = vst.msk [vmem:[#allocation3 + $0x191] sm:$0x1] %vm300_vm2, %v5592_v0  ;;  %v6128_v0 = vpack.i.bf16 %v6112_v53, %v6110_v10 }
  0x8a   : > { %8783 = vst [vmem:[#allocation24_spill] sm:$0xff] %v6110_v10  ;;  %4470 = vrot.lane.b32.xlu2 %v6116_v9, %s5595_s26  ;;  %v6166_v20 = vpop.permute.xlu2 %4320  ;;  %v6204_v10 = vld [vmem:[#allocation2 + $0x150] sm:$0xff] }
  0x8b   : > { %8784 = vst [vmem:[#allocation25_spill] sm:$0xff] %v6112_v53  ;;  %4465 = vrot.lane.b32.xlu1 %v6128_v0, %s5595_s26  ;;  %v6206_v53 = vld [vmem:[#allocation2 + $0x158] sm:$0xff] }
  0x8c   : > { %363 = vst.msk [vmem:[#allocation2 + $0x181] sm:$0xff] %vm290_vm0, %v8625_v56  ;;  %v474_v56 = vld [vmem:[#allocation2 + $0xb0] sm:$0xff] }
  0x8d   : > { %364 = vst.msk [vmem:[#allocation2 + $0x189] sm:$0xff] %vm290_vm0, %v8626_v44  ;;  %v6140_v44 = vpack.i.bf16 %v6132_v13, %v6130_v50  ;;  %v6144_v55 = vpack.i.bf16 %v474_v56, %v473_v41  ;;  %v6164_v41 = vpack.i.bf16 %v6152_v17, %v6150_v3  ;;  %v6170_v56 = vld [vmem:[#allocation2 + $0xe0] sm:$0xff] }
  0x8e   : > { %8785 = vst [vmem:[#allocation26_spill] sm:$0xff] %v6156_v54  ;;  %v6180_v1 = vpack.i.bf16 %v6170_v56, %v6168_v38  ;;  %v484_v54 = vld [vmem:[#allocation2 + $0x128] sm:$0xff] }
  0x8f   : > { %8786 = vst [vmem:[#allocation27_spill] sm:$0xff] %v6158_v11  ;;  %v6196_v11 = vpop.permute.xlu0 %4295 }
  0x90   : > { %4475 = vrot.lane.b32.xlu0 %v6140_v44, %s5595_s26  ;;  %8787 = vst [vmem:[#allocation28_spill] sm:$0xff] %v6168_v38  ;;  %v6198_v38 = vpack.i.bf16 %v486_v2, %v485_v36  ;;  %v6214_v2 = vpack.i.bf16 %v6206_v53, %v6204_v10 }
  0x91   : > { %8788 = vst [vmem:[#allocation29_spill] sm:$0xff] %v6170_v56  ;;  %v6202_v56 = vpack.i.bf16 %v484_v54, %v483_v30  ;;  %v6218_v30 = vld [vmem:[#allocation2 + $0x168] sm:$0xff]  ;;  %v6220_v54 = vld [vmem:[#allocation2 + $0x170] sm:$0xff] }
  0x92   : > { %4485 = vrot.lane.b32.xlu2 %v6144_v55, %s5595_s26  ;;  %8789 = vst [vmem:[#allocation30_spill] sm:$0xff] %v6182_v48 }
  0x93   : > { %4480 = vrot.lane.b32.xlu1 %v6148_v24, %s5595_s26  ;;  %8790 = vst [vmem:[#allocation31_spill] sm:$0xff] %v6184_v14  ;;  %v6194_v7 = vpop.permute.xlu2 %4335  ;;  %v491_v63 = vld [vmem:[#allocation2 + $0x180] sm:$0xff]  ;;  %v6232_v14 = vpack.i.bf16 %v6220_v54, %v6218_v30 }
  0x94   : > { %8791 = vst [vmem:[#allocation32_spill] sm:$0xff] %v6204_v10  ;;  %v492_v21 = vld [vmem:[#allocation2 + $0x188] sm:$0xff] }
  0x95   : > { %8792 = vst [vmem:[#allocation33_spill] sm:$0xff] %v6206_v53  ;;  %v6224_v52 = vpack.i.bf16 %v492_v21, %v491_v63 }
  0x96   : > { %8793 = vst [vmem:[#allocation34_spill] sm:$0xff] %v6218_v30 }
  0x97   : > { %8794 = vst [vmem:[#allocation35_spill] sm:$0xff] %v6220_v54 }
  0x98   : > { %4490 = vrot.lane.b32.xlu0 %v6164_v41, %s5595_s26 }
  0x9a   : > { %4500 = vrot.lane.b32.xlu2 %v6174_v59, %s5595_s26 }
  0x9b   : > { %4495 = vrot.lane.b32.xlu1 %v6180_v1, %s5595_s26 }
  0x9c   : > { %v6216_v36 = vpop.permute.xlu2 %4350  ;;  %v6222_v19 = vpop.permute.xlu1 %4305 }
  0x9f   : > { %v6228_v48 = vpop.permute.xlu0 %4300 }
  0xa0   : > { %4505 = vrot.lane.b32.xlu0 %v6192_v42, %s5595_s26 }
  0xa2   : > { %4515 = vrot.lane.b32.xlu2 %v6198_v38, %s5595_s26 }
  0xa3   : > { %4510 = vrot.lane.b32.xlu1 %v6202_v56, %s5595_s26 }
  0xa4   : > { %v6238_v10 = vpop.permute.xlu2 %4365 }
  0xa5   : > { %v6240_v53 = vpop.permute.xlu1 %4310 }
  0xa8   : > { %4520 = vrot.lane.b32.xlu0 %v6214_v2, %s5595_s26  ;;  %v6244_v21 = vpop.permute.xlu0 %4325 }
  0xa9   : > { %8795 = vst [vmem:[#allocation36_spill] sm:$0xff] %v6244_v21  ;;  %v595_v21 = vld [vmem:[#allocation2 + $0x69] sm:$0xff] }
  0xaa   : > { %4530 = vrot.lane.b32.xlu2 %v6224_v52, %s5595_s26 }
  0xab   : > { %4525 = vrot.lane.b32.xlu1 %v6232_v14, %s5595_s26 }
  0xac   : > { %v6250_v63 = vpop.permute.xlu2 %4380 }
  0xae   : > { %v6252_v30 = vpop.permute.xlu1 %4330 }
  0xaf   : > { %8796 = vst [vmem:[#allocation37_spill] sm:$0xff] %v6252_v30 }
  0xb0   : > { %4535 = vrot.lane.b32.xlu0 %v5766_v39, %s5596_s27 }
  0xb1   : > { %v6256_v54 = vpop.permute.xlu0 %4340 }
  0xb2   : > { %4545 = vrot.lane.b32.xlu2 %v5794_v51, %s5596_s27 }
  0xb3   : > { %4540 = vrot.lane.b32.xlu1 %v5751_v33, %s5596_s27 }
  0xb7   : > { %v6264_v51 = vpop.permute.xlu1 %4345 }
  0xb8   : > { %4550 = vrot.lane.b32.xlu0 %v5736_v27, %s5596_s27 }
  0xba   : > { %4560 = vrot.lane.b32.xlu2 %v5809_v57, %s5596_s27  ;;  %v6268_v33 = vpop.permute.xlu0 %4355 }
  0xbb   : > { %4555 = vrot.lane.b32.xlu1 %v5781_v45, %s5596_s27  ;;  %8797 = vst [vmem:[#allocation38_spill] sm:$0xff] %v6268_v33  ;;  %v593_v33 = vld [vmem:[#allocation2 + $0x51] sm:$0xff] }
  0xbc   : > { %v6262_v39 = vpop.permute.xlu2 %4395 }
  0xbf   : > { %v6276_v57 = vpop.permute.xlu1 %4360 }
  0xc0   : > { %4565 = vrot.lane.b32.xlu0 %v5847_v40, %s5596_s27  ;;  %8799 = vst [vmem:[#allocation40_spill] sm:$0xff] %v6276_v57 }
  0xc2   : > { %4575 = vrot.lane.b32.xlu2 %v5858_v46, %s5596_s27  ;;  %v6280_v45 = vpop.permute.xlu0 %4370 }
  0xc3   : > { %4570 = vrot.lane.b32.xlu1 %v5837_v25, %s5596_s27  ;;  %v523_v25 = vld [vmem:[#allocation2 + $0x181] sm:$0xff] }
  0xc4   : > { %v6274_v27 = vpop.permute.xlu2 %4410 }
  0xc5   : > { %8798 = vst [vmem:[#allocation39_spill] sm:$0xff] %v6274_v27  ;;  %v524_v27 = vld [vmem:[#allocation2 + $0x189] sm:$0xff] }
  0xc7   : > { %v6288_v46 = vpop.permute.xlu1 %4375 }
  0xc8   : > { %4580 = vrot.lane.b32.xlu0 %v5881_v31, %s5596_s27  ;;  %v6298_v31 = vpack.i.bf16 %v524_v27, %v523_v25 }
  0xca   : > { %4590 = vrot.lane.b32.xlu2 %v5889_v34, %s5596_s27 }
  0xcb   : > { %4585 = vrot.lane.b32.xlu1 %v5875_v61, %s5596_s27 }
  0xcc   : > { %v6286_v40 = vpop.permute.xlu2 %4425 }
  0xd0   : > { %4595 = vrot.lane.b32.xlu0 %v5909_v26, %s5596_s27 }
  0xd2   : > { %v6292_v30 = vpop.permute.xlu0 %4385  ;;  %4605 = vrot.lane.b32.xlu2 %v5917_v49, %s5596_s27 }
  0xd3   : > { %4600 = vrot.lane.b32.xlu1 %v5903_v5, %s5596_s27  ;;  %v6302_v34 = vpop.permute.xlu1 %4390 }
  0xd4   : > { %v6300_v61 = vpop.permute.xlu2 %4440  ;;  %8801 = vst [vmem:[#allocation42_spill] sm:$0xff] %v6302_v34  ;;  %v598_v34 = vld [vmem:[#allocation2 + $0x91] sm:$0xff] }
  0xd5   : > { %8800 = vst [vmem:[#allocation41_spill] sm:$0xff] %v6300_v61 }
  0xd8   : > { %4610 = vrot.lane.b32.xlu0 %v6298_v31, %s5596_s27 }
  0xda   : > { %v6306_v26 = vpop.permute.xlu0 %4400  ;;  %4620 = vrot.lane.b32.xlu2 %v5954_v43, %s5597_s28 }
  0xdb   : > { %4615 = vrot.lane.b32.xlu1 %v5931_v29, %s5597_s28  ;;  %v6314_v5 = vpop.permute.xlu1 %4405 }
  0xdc   : > { %v6312_v49 = vpop.permute.xlu2 %4455  ;;  %8802 = vst [vmem:[#allocation43_spill] sm:$0xff] %v6314_v5 }
  0xe0   : > { %4625 = vrot.lane.b32.xlu0 %v5962_v8, %s5597_s28 }
  0xe2   : > { %v6318_v27 = vpop.permute.xlu0 %4415  ;;  %4635 = vrot.lane.b32.xlu2 %v5978_v32, %s5597_s28 }
  0xe3   : > { %4630 = vrot.lane.b32.xlu1 %v5964_v23, %s5597_s28  ;;  %v6326_v43 = vpop.permute.xlu1 %4420 }
  0xe4   : > { %v6324_v25 = vpop.permute.xlu2 %4470 }
  0xe5   : > { %8803 = vst [vmem:[#allocation44_spill] sm:$0xff] %v6324_v25  ;;  %v600_v25 = vld [vmem:[#allocation2 + $0xa9] sm:$0xff] }
  0xe8   : > { %4640 = vrot.lane.b32.xlu0 %v5992_v35, %s5597_s28 }
  0xea   : > { %v6330_v29 = vpop.permute.xlu0 %4430  ;;  %4650 = vrot.lane.b32.xlu2 %v6006_v37, %s5597_s28 }
  0xeb   : > { %4645 = vrot.lane.b32.xlu1 %v5984_v60, %s5597_s28  ;;  %v6338_v32 = vpop.permute.xlu1 %4435 }
  0xec   : > { %v6336_v8 = vpop.permute.xlu2 %4485  ;;  %8805 = vst [vmem:[#allocation46_spill] sm:$0xff] %v6338_v32  ;;  %v592_v32 = vld [vmem:[#allocation2 + $0x49] sm:$0xff] }
  0xed   : > { %8804 = vst [vmem:[#allocation45_spill] sm:$0xff] %v6336_v8  ;;  %v556_v8 = vld [vmem:[#allocation2 + $0x18a] sm:$0xff] }
  0xf0   : > { %4655 = vrot.lane.b32.xlu0 %v6020_v62, %s5597_s28 }
  0xf2   : > { %v6342_v23 = vpop.permute.xlu0 %4445  ;;  %4665 = vrot.lane.b32.xlu2 %v6034_v16, %s5597_s28  ;;  %v555_v16 = vld [vmem:[#allocation2 + $0x182] sm:$0xff] }
  0xf3   : > { %4660 = vrot.lane.b32.xlu1 %v6012_v28, %s5597_s28  ;;  %v6350_v37 = vpop.permute.xlu1 %4450  ;;  %v6366_v5 = vpack.i.bf16 %v556_v8, %v555_v16  ;;  %v589_v16 = vld [vmem:[#allocation2 + $0x1a0] sm:$0xff] }
  0xf4   : > { %v6348_v35 = vpop.permute.xlu2 %4500 }
  0xf8   : > { %4670 = vrot.lane.b32.xlu0 %v6048_v15, %s5597_s28 }
  0xfa   : > { %v6354_v60 = vpop.permute.xlu0 %4460  ;;  %4680 = vrot.lane.b32.xlu2 %v6066_v22, %s5597_s28 }
  0xfb   : > { %4675 = vrot.lane.b32.xlu1 %v6040_v6, %s5597_s28 }
  0xfc   : > { %v6360_v62 = vpop.permute.xlu2 %4515 }
  0xfd   : > { %8806 = vst [vmem:[#allocation47_spill] sm:$0xff] %v6360_v62  ;;  %v6362_v28 = vpop.permute.xlu1 %4465 }
 0x100   : > { %4685 = vrot.lane.b32.xlu0 %v6080_v58, %s5597_s28 }
 0x102   : > { %v6368_v15 = vpop.permute.xlu0 %4475  ;;  %4695 = vrot.lane.b32.xlu2 %v6106_v18, %s5598_s29 }
 0x103   : > { %4690 = vrot.lane.b32.xlu1 %v6366_v5, %s5597_s28 }
 0x104   : > { %v6374_v6 = vpop.permute.xlu2 %4530 }
 0x105   : > { %v6376_v22 = vpop.permute.xlu1 %4480 }
 0x108   : > { %4700 = vrot.lane.b32.xlu0 %v6128_v0, %s5598_s29 }
 0x10a   : > { %v6380_v61 = vpop.permute.xlu0 %4490  ;;  %4710 = vrot.lane.b32.xlu2 %v6140_v44, %s5598_s29 }
 0x10b   : > { %8807 = vst [vmem:[#allocation48_spill] sm:$0xff] %v6380_v61  ;;  %4705 = vrot.lane.b32.xlu1 %v6116_v9, %s5598_s29 }
 0x10c   : > { %v6386_v58 = vpop.permute.xlu2 %4545 }
 0x10d   : > { %8808 = vst [vmem:[#allocation49_spill] sm:$0xff] %v6386_v58  ;;  %v6388_v18 = vpop.permute.xlu1 %4495 }
 0x10e   : > { %8809 = vst [vmem:[#allocation50_spill] sm:$0xff] %v6388_v18 }
 0x110   : > { %4715 = vrot.lane.b32.xlu0 %v6148_v24, %s5598_s29 }
 0x112   : > { %v6392_v8 = vpop.permute.xlu0 %4505  ;;  %4725 = vrot.lane.b32.xlu2 %v6164_v41, %s5598_s29 }
 0x113   : > { %8810 = vst [vmem:[#allocation51_spill] sm:$0xff] %v6392_v8  ;;  %4720 = vrot.lane.b32.xlu1 %v6144_v55, %s5598_s29  ;;  %v597_v8 = vld [vmem:[#allocation2 + $0x81] sm:$0xff] }
 0x114   : > { %v6398_v0 = vpop.permute.xlu2 %4560 }
 0x115   : > { %8811 = vst [vmem:[#allocation52_spill] sm:$0xff] %v6398_v0  ;;  %v6400_v44 = vpop.permute.xlu1 %4510  ;;  %v635_v0 = vld [vmem:[#allocation2 + $0xca] sm:$0xff] }
 0x116   : > { %8812 = vst [vmem:[#allocation53_spill] sm:$0xff] %v6400_v44  ;;  %v637_v44 = vld [vmem:[#allocation2 + $0xe2] sm:$0xff] }
 0x118   : > { %4730 = vrot.lane.b32.xlu0 %v6180_v1, %s5598_s29  ;;  %v588_v1 = vld [vmem:[#allocation2 + $0x198] sm:$0xff] }
 0x119   : > { %v4769_v61 = vpack.i.bf16 %v589_v16, %v588_v1 }
 0x11a   : > { %v6404_v9 = vpop.permute.xlu0 %4520  ;;  %4740 = vrot.lane.b32.xlu2 %v6192_v42, %s5598_s29 }
 0x11b   : > { %8813 = vst [vmem:[#allocation54_spill] sm:$0xff] %v6404_v9  ;;  %4735 = vrot.lane.b32.xlu1 %v6174_v59, %s5598_s29  ;;  %v590_v9 = vld [vmem:[#allocation2 + $0x31] sm:$0xff] }
 0x11c   : > { %v6410_v24 = vpop.permute.xlu2 %4575 }
 0x11d   : > { %8814 = vst [vmem:[#allocation55_spill] sm:$0xff] %v6410_v24  ;;  %v6412_v41 = vpop.permute.xlu1 %4525  ;;  %v611_v24 = vld [vmem:[#allocation2 + $0x129] sm:$0xff] }
 0x120   : > { %4745 = vrot.lane.b32.xlu0 %v6202_v56, %s5598_s29  ;;  %v591_v56 = vld [vmem:[#allocation2 + $0x39] sm:$0xff] }
 0x122   : > { %v6416_v55 = vpop.permute.xlu0 %4535  ;;  %4755 = vrot.lane.b32.xlu2 %v6214_v2, %s5598_s29  ;;  %v594_v2 = vld [vmem:[#allocation2 + $0x61] sm:$0xff] }
 0x123   : > { %8815 = vst [vmem:[#allocation56_spill] sm:$0xff] %v6416_v55  ;;  %4750 = vrot.lane.b32.xlu1 %v6198_v38, %s5598_s29  ;;  %v4774_v38 = vpack.i.bf16 %v591_v56, %v590_v9  ;;  %v4784_v16 = vpack.i.bf16 %v595_v21, %v594_v2 }
 0x124   : > { %v6422_v42 = vpop.permute.xlu2 %4590 }
 0x125   : > { %8816 = vst [vmem:[#allocation57_spill] sm:$0xff] %v6422_v42  ;;  %v6424_v59 = vpop.permute.xlu1 %4540  ;;  %v599_v42 = vld [vmem:[#allocation2 + $0x99] sm:$0xff] }
 0x126   : > { %8817 = vst [vmem:[#allocation58_spill] sm:$0xff] %v6424_v59  ;;  %v607_v59 = vld [vmem:[#allocation2 + $0xf9] sm:$0xff] }
 0x128   : > { %4760 = vrot.lane.b32.xlu0 %v6232_v14, %s5598_s29  ;;  %v4779_v14 = vpack.i.bf16 %v593_v33, %v592_v32  ;;  %v4794_v33 = vpack.i.bf16 %v599_v42, %v598_v34  ;;  %v602_v32 = vld [vmem:[#allocation2 + $0xc1] sm:$0xff]  ;;  %v608_v42 = vld [vmem:[#allocation2 + $0x109] sm:$0xff] }
 0x12a   : > { %v6428_v57 = vpop.permute.xlu0 %4550  ;;  %4770 = vrot.lane.b32.xlu2 %v4769_v61, %s5598_s29 }
 0x12b   : > { %8818 = vst [vmem:[#allocation59_spill] sm:$0xff] %v6428_v57  ;;  %4765 = vrot.lane.b32.xlu1 %v6224_v52, %s5598_s29  ;;  %v596_v57 = vld [vmem:[#allocation2 + $0x79] sm:$0xff]  ;;  %v601_v52 = vld [vmem:[#allocation2 + $0xb1] sm:$0xff] }
 0x12c   : > { %v6433_v62 = vpop.permute.xlu2 %4605  ;;  %v4789_v9 = vpack.i.bf16 %v597_v8, %v596_v57  ;;  %v4799_v2 = vpack.i.bf16 %v601_v52, %v600_v25  ;;  %v609_v52 = vld [vmem:[#allocation2 + $0x111] sm:$0xff] }
 0x12d   : > { %v6435_v1 = vpop.permute.xlu1 %4555 }
 0x130   : > { %4775 = vrot.lane.b32.xlu0 %v4774_v38, %s5599_s30  ;;  %v603_v38 = vld [vmem:[#allocation2 + $0xc9] sm:$0xff] }
 0x131   : > { %v4804_v57 = vpack.i.bf16 %v603_v38, %v602_v32  ;;  %v610_v38 = vld [vmem:[#allocation2 + $0x121] sm:$0xff] }
 0x132   : > { %v6438_v61 = vpop.permute.xlu0 %4565  ;;  %4785 = vrot.lane.b32.xlu2 %v4784_v16, %s5599_s30  ;;  %v606_v16 = vld [vmem:[#allocation2 + $0xf1] sm:$0xff] }
 0x133   : > { %8819 = vst [vmem:[#allocation60_spill] sm:$0xff] %v6438_v61  ;;  %4780 = vrot.lane.b32.xlu1 %v4779_v14, %s5599_s30  ;;  %v604_v14 = vld [vmem:[#allocation2 + $0xd9] sm:$0xff]  ;;  %v4814_v25 = vpack.i.bf16 %v607_v59, %v606_v16  ;;  %v614_v16 = vld [vmem:[#allocation2 + $0x151] sm:$0xff] }
 0x134   : > { %v6442_v56 = vpop.permute.xlu2 %4620 }
 0x135   : > { %8820 = vst [vmem:[#allocation61_spill] sm:$0xff] %v6442_v56  ;;  %v6444_v21 = vpop.permute.xlu1 %4570  ;;  %v605_v56 = vld [vmem:[#allocation2 + $0xe1] sm:$0xff] }
 0x136   : > { %8821 = vst [vmem:[#allocation62_spill] sm:$0xff] %v6444_v21  ;;  %v4809_v34 = vpack.i.bf16 %v605_v56, %v604_v14  ;;  %v4824_v56 = vpack.i.bf16 %v611_v24, %v610_v38  ;;  %v621_v24 = vld [vmem:[#allocation2 + $0x1a1] sm:$0xff]  ;;  %v624_v38 = vld [vmem:[#allocation2 + $0x4a] sm:$0xff] }
 0x138   : > { %4790 = vrot.lane.b32.xlu0 %v4789_v9, %s5599_s30 }
 0x13a   : > { %v6447_v61 = vpop.permute.xlu0 %4580  ;;  %4800 = vrot.lane.b32.xlu2 %v4799_v2, %s5599_s30  ;;  %v612_v2 = vld [vmem:[#allocation2 + $0x139] sm:$0xff] }
 0x13b   : > { %8822 = vst [vmem:[#allocation63_spill] sm:$0xff] %v6447_v61  ;;  %4795 = vrot.lane.b32.xlu1 %v4794_v33, %s5599_s30  ;;  %v613_v61 = vld [vmem:[#allocation2 + $0x141] sm:$0xff]  ;;  %v4819_v33 = vpack.i.bf16 %v609_v52, %v608_v42  ;;  %v616_v42 = vld [vmem:[#allocation2 + $0x169] sm:$0xff]  ;;  %v617_v52 = vld [vmem:[#allocation2 + $0x171] sm:$0xff] }
 0x13c   : > { %v6451_v8 = vpop.permute.xlu2 %4635  ;;  %v4829_v59 = vpack.i.bf16 %v613_v61, %v612_v2  ;;  %v4839_v61 = vpack.i.bf16 %v617_v52, %v616_v42  ;;  %v620_v2 = vld [vmem:[#allocation2 + $0x199] sm:$0xff]  ;;  %v626_v52 = vld [vmem:[#allocation2 + $0x62] sm:$0xff] }
 0x13d   : > { %v6453_v21 = vpop.permute.xlu1 %4585 }
 0x13e   : > { %8823 = vst [vmem:[#allocation64_spill] sm:$0xff] %v6453_v21 }
 0x140   : > { %4805 = vrot.lane.b32.xlu0 %v4804_v57, %s5599_s30  ;;  %v615_v57 = vld [vmem:[#allocation2 + $0x159] sm:$0xff] }
 0x142   : > { %v6456_v9 = vpop.permute.xlu0 %4595  ;;  %4815 = vrot.lane.b32.xlu2 %v4814_v25, %s5599_s30  ;;  %v4834_v25 = vpack.i.bf16 %v615_v57, %v614_v16  ;;  %v622_v57 = vld [vmem:[#allocation2 + $0x32] sm:$0xff] }
 0x143   : > { %8824 = vst [vmem:[#allocation65_spill] sm:$0xff] %v6456_v9  ;;  %4810 = vrot.lane.b32.xlu1 %v4809_v34, %s5599_s30 }
 0x144   : > { %v6460_v32 = vpop.permute.xlu2 %4650 }
 0x145   : > { %8825 = vst [vmem:[#allocation66_spill] sm:$0xff] %v6460_v32  ;;  %v6462_v21 = vpop.permute.xlu1 %4600 }
 0x146   : > { %8826 = vst [vmem:[#allocation67_spill] sm:$0xff] %v6462_v21  ;;  %v623_v21 = vld [vmem:[#allocation2 + $0x3a] sm:$0xff] }
 0x147   : > { %v4854_v42 = vpack.i.bf16 %v623_v21, %v622_v57  ;;  %v633_v57 = vld [vmem:[#allocation2 + $0xb2] sm:$0xff] }
 0x148   : > { %4820 = vrot.lane.b32.xlu0 %v4819_v33, %s5599_s30 }
 0x14a   : > { %v6465_v14 = vpop.permute.xlu0 %4610  ;;  %4830 = vrot.lane.b32.xlu2 %v4829_v59, %s5599_s30  ;;  %v625_v59 = vld [vmem:[#allocation2 + $0x52] sm:$0xff] }
 0x14b   : > { %4825 = vrot.lane.b32.xlu1 %v4824_v56, %s5599_s30  ;;  %v4849_v56 = vpack.i.bf16 %v621_v24, %v620_v2 }
 0x14c   : > { %v6469_v34 = vpop.permute.xlu2 %4665 }
 0x14d   : > { %8827 = vst [vmem:[#allocation68_spill] sm:$0xff] %v6469_v34  ;;  %v6471_v32 = vpop.permute.xlu1 %4615  ;;  %v627_v34 = vld [vmem:[#allocation2 + $0x6a] sm:$0xff] }
 0x14e   : > { %8828 = vst [vmem:[#allocation69_spill] sm:$0xff] %v6471_v32  ;;  %v4864_v2 = vpack.i.bf16 %v627_v34, %v626_v52  ;;  %v634_v52 = vld [vmem:[#allocation2 + $0xc2] sm:$0xff] }
 0x150   : > { %4835 = vrot.lane.b32.xlu0 %v4834_v25, %s5599_s30  ;;  %v4859_v25 = vpack.i.bf16 %v625_v59, %v624_v38 }
 0x152   : > { %v6474_v33 = vpop.permute.xlu0 %4625  ;;  %4845 = vrot.lane.b32.xlu2 %v6298_v31, %s5599_s30  ;;  %v630_v31 = vld [vmem:[#allocation2 + $0x92] sm:$0xff] }
 0x153   : > { %8829 = vst [vmem:[#allocation70_spill] sm:$0xff] %v6474_v33  ;;  %4840 = vrot.lane.b32.xlu1 %v4839_v61, %s5599_s30  ;;  %v631_v61 = vld [vmem:[#allocation2 + $0x9a] sm:$0xff] }
 0x154   : > { %v6479_v16 = vpop.permute.xlu2 %4680  ;;  %v4874_v59 = vpack.i.bf16 %v631_v61, %v630_v31  ;;  %v639_v61 = vld [vmem:[#allocation2 + $0xfa] sm:$0xff] }
 0x155   : > { %8830 = vst [vmem:[#allocation71_spill] sm:$0xff] %v6479_v16  ;;  %v6481_v9 = vpop.permute.xlu1 %4630  ;;  %v628_v16 = vld [vmem:[#allocation2 + $0x7a] sm:$0xff] }
 0x156   : > { %8831 = vst [vmem:[#allocation72_spill] sm:$0xff] %v6481_v9  ;;  %v629_v9 = vld [vmem:[#allocation2 + $0x82] sm:$0xff] }
 0x157   : > { %v4869_v21 = vpack.i.bf16 %v629_v9, %v628_v16  ;;  %v4884_v9 = vpack.i.bf16 %v635_v0, %v634_v52  ;;  %v638_v16 = vld [vmem:[#allocation2 + $0xf2] sm:$0xff] }
 0x158   : > { %4850 = vrot.lane.b32.xlu0 %v4849_v56, %s5599_s30  ;;  %v632_v56 = vld [vmem:[#allocation2 + $0xaa] sm:$0xff] }
 0x159   : > { %v4879_v34 = vpack.i.bf16 %v633_v57, %v632_v56  ;;  %v640_v57 = vld [vmem:[#allocation2 + $0x10a] sm:$0xff] }
 0x15a   : > { %v6484_v33 = vpop.permute.xlu0 %4640  ;;  %4860 = vrot.lane.b32.xlu2 %v4859_v25, %s5600_s6  ;;  %v636_v25 = vld [vmem:[#allocation2 + $0xda] sm:$0xff] }
 0x15b   : > { %8832 = vst [vmem:[#allocation73_spill] sm:$0xff] %v6484_v33  ;;  %4855 = vrot.lane.b32.xlu1 %v4854_v42, %s5600_s6  ;;  %v4889_v31 = vpack.i.bf16 %v637_v44, %v636_v25  ;;  %v644_v25 = vld [vmem:[#allocation2 + $0x13a] sm:$0xff] }
 0x15c   : > { %v6488_v24 = vpop.permute.xlu2 %4695 }
 0x15d   : > { %8833 = vst [vmem:[#allocation74_spill] sm:$0xff] %v6488_v24  ;;  %v6490_v38 = vpop.permute.xlu1 %4645 }
 0x15e   : > { %8834 = vst [vmem:[#allocation75_spill] sm:$0xff] %v6490_v38 }
 0x160   : > { %4865 = vrot.lane.b32.xlu0 %v4864_v2, %s5600_s6 }
 0x162   : > { %v6493_v33 = vpop.permute.xlu0 %4655  ;;  %4875 = vrot.lane.b32.xlu2 %v4874_v59, %s5600_s6  ;;  %v642_v59 = vld [vmem:[#allocation2 + $0x122] sm:$0xff] }
 0x163   : > { %8835 = vst [vmem:[#allocation76_spill] sm:$0xff] %v6493_v33  ;;  %4870 = vrot.lane.b32.xlu1 %v4869_v21, %s5600_s6  ;;  %v643_v33 = vld [vmem:[#allocation2 + $0x12a] sm:$0xff]  ;;  %v4894_v21 = vpack.i.bf16 %v639_v61, %v638_v16  ;;  %v646_v61 = vld [vmem:[#allocation2 + $0x152] sm:$0xff] }
 0x164   : > { %v6497_v42 = vpop.permute.xlu2 %4710  ;;  %v4904_v44 = vpack.i.bf16 %v643_v33, %v642_v59 }
 0x165   : > { %8836 = vst [vmem:[#allocation77_spill] sm:$0xff] %v6497_v42  ;;  %v6499_v38 = vpop.permute.xlu1 %4660  ;;  %v641_v42 = vld [vmem:[#allocation2 + $0x112] sm:$0xff] }
 0x166   : > { %8837 = vst [vmem:[#allocation78_spill] sm:$0xff] %v6499_v38  ;;  %v4899_v0 = vpack.i.bf16 %v641_v42, %v640_v57  ;;  %v652_v57 = vld [vmem:[#allocation2 + $0x19a] sm:$0xff] }
 0x168   : > { %4880 = vrot.lane.b32.xlu0 %v4879_v34, %s5600_s6  ;;  %v645_v34 = vld [vmem:[#allocation2 + $0x142] sm:$0xff] }
 0x16a   : > { %v6502_v2 = vpop.permute.xlu0 %4670  ;;  %4890 = vrot.lane.b32.xlu2 %v4889_v31, %s5600_s6  ;;  %v648_v31 = vld [vmem:[#allocation2 + $0x16a] sm:$0xff] }
 0x16b   : > { %8838 = vst [vmem:[#allocation79_spill] sm:$0xff] %v6502_v2  ;;  %4885 = vrot.lane.b32.xlu1 %v4884_v9, %s5600_s6  ;;  %v649_v2 = vld [vmem:[#allocation2 + $0x172] sm:$0xff]  ;;  %v4909_v9 = vpack.i.bf16 %v645_v34, %v644_v25 }
 0x16c   : > { %v6506_v56 = vpop.permute.xlu2 %4725  ;;  %v4919_v33 = vpack.i.bf16 %v649_v2, %v648_v31 }
 0x16d   : > { %8839 = vst [vmem:[#allocation80_spill] sm:$0xff] %v6506_v56  ;;  %v6508_v38 = vpop.permute.xlu1 %4675  ;;  %v647_v56 = vld [vmem:[#allocation2 + $0x15a] sm:$0xff] }
 0x16e   : > { %8840 = vst [vmem:[#allocation81_spill] sm:$0xff] %v6508_v38  ;;  %v4914_v42 = vpack.i.bf16 %v647_v56, %v646_v61 }
 0x170   : > { %4895 = vrot.lane.b32.xlu0 %v4894_v21, %s5600_s6 }
 0x172   : > { %v6511_v52 = vpop.permute.xlu0 %4685  ;;  %4905 = vrot.lane.b32.xlu2 %v4904_v44, %s5600_s6  ;;  %v653_v44 = vld [vmem:[#allocation2 + $0x1a2] sm:$0xff] }
 0x173   : > { %4900 = vrot.lane.b32.xlu1 %v4899_v0, %s5600_s6  ;;  %v4929_v25 = vpack.i.bf16 %v653_v44, %v652_v57  ;;  %v4318_v57 = vunpack.i.h.bf16 %v6142_v12  ;;  %v4317_v44 = vunpack.i.l.bf16 %v6142_v12  ;;  %v4298_v12 = vunpack.i.h.bf16 %v6196_v11 }
 0x174   : > { %v6515_v16 = vpop.permute.xlu2 %4740 }
 0x175   : > { %8841 = vst [vmem:[#allocation82_spill] sm:$0xff] %v6515_v16  ;;  %v6517_v38 = vpop.permute.xlu1 %4690 }
 0x178   : > { %4910 = vrot.lane.b32.xlu0 %v4909_v9, %s5600_s6 }
 0x17a   : > { %v6520_v59 = vpop.permute.xlu0 %4700  ;;  %4920 = vrot.lane.b32.xlu2 %v4919_v33, %s5600_s6 }
 0x17b   : > { %8842 = vst [vmem:[#allocation83_spill] sm:$0xff] %v6520_v59  ;;  %4915 = vrot.lane.b32.xlu1 %v4914_v42, %s5600_s6  ;;  %v4368_v59 = vunpack.i.h.bf16 %v6238_v10 }
 0x17c   : > { %v6524_v21 = vpop.permute.xlu2 %4755 }
 0x17d   : > { %8843 = vst [vmem:[#allocation84_spill] sm:$0xff] %v6524_v21  ;;  %v6526_v0 = vpop.permute.xlu1 %4705 }
 0x17e   : > { %8844 = vst [vmem:[#allocation85_spill] sm:$0xff] %v6526_v0 }
 0x180   : > { %4925 = vrot.lane.b32.xlu0 %v6366_v5, %s5600_s6 }
 0x182   : > { %v6530_v2 = vpop.permute.xlu0 %4715 }
 0x183   : > { %4930 = vrot.lane.b32.xlu1 %v4929_v25, %s5600_s6  ;;  %v4323_v25 = vunpack.i.h.bf16 %v6166_v20 }
 0x184   : > { %v6533_v56 = vpop.permute.xlu2 %4770 }
 0x185   : > { %8845 = vst [vmem:[#allocation86_spill] sm:$0xff] %v6533_v56  ;;  %v6535_v34 = vpop.permute.xlu1 %4720  ;;  %v6567_v0 = vsel %vm290_vm0, %v6132_v13, %v4323_v25  ;;  %v4308_v13 = vunpack.i.h.bf16 %v6222_v19  ;;  %v4303_v25 = vunpack.i.h.bf16 %v6228_v48 }
 0x186   : > { %8846 = vst [vmem:[#allocation87_spill] sm:$0xff] %v6535_v34  ;;  %v4313_v34 = vunpack.i.h.bf16 %v6240_v53 }
 0x18a   : > { %v6537_v31 = vpop.permute.xlu0 %4730 }
 0x18b   : > { %8847 = vst [vmem:[#allocation88_spill] sm:$0xff] %v6537_v31  ;;  %v6558_v31 = vsel %vm290_vm0, %v6093_v47, %v4317_v44  ;;  %v366_v47 = vld [vmem:[#allocation2 + $0x8] sm:$0xff]  ;;  %v365_v44 = vld [vmem:[#allocation2] sm:$0xff] }
 0x18c   : > { %v6539_v9 = vpop.permute.xlu2 %4785  ;;  %v6590_v18 = vsel %vm290_vm0, %v366_v47, %v4298_v12 }
 0x18d   : > { %8848 = vst [vmem:[#allocation89_spill] sm:$0xff] %v6539_v9  ;;  %v6541_v61 = vpop.permute.xlu1 %4735  ;;  %v4322_v9 = vunpack.i.l.bf16 %v6166_v20  ;;  %v4352_v20 = vunpack.i.l.bf16 %v6216_v36 }
 0x18e   : > { %8849 = vst [vmem:[#allocation90_spill] sm:$0xff] %v6541_v61  ;;  %v4337_v61 = vunpack.i.l.bf16 %v6194_v7 }
 0x192   : > { %v6543_v33 = vpop.permute.xlu0 %4745 }
 0x193   : > { %8850 = vst [vmem:[#allocation91_spill] sm:$0xff] %v6543_v33  ;;  %v6562_v33 = vsel %vm290_vm0, %v6095_v4, %v4318_v57  ;;  %v4353_v4 = vunpack.i.h.bf16 %v6216_v36  ;;  %v4307_v57 = vunpack.i.l.bf16 %v6222_v19  ;;  %v4312_v36 = vunpack.i.l.bf16 %v6240_v53 }
 0x194   : > { %v6545_v42 = vpop.permute.xlu2 %4800 }
 0x195   : > { %8851 = vst [vmem:[#allocation92_spill] sm:$0xff] %v6545_v42  ;;  %v6547_v5 = vpop.permute.xlu1 %4750  ;;  %v6584_v42 = vsel %vm290_vm0, %v6130_v50, %v4322_v9  ;;  %v8856_v50 = vld [vmem:[#allocation31_spill] sm:$0xff]  ;;  %v8857_v9 = vld [vmem:[#allocation30_spill] sm:$0xff] }
 0x196   : > { %8852 = vst [vmem:[#allocation93_spill] sm:$0xff] %v6547_v5  ;;  %v4338_v5 = vunpack.i.h.bf16 %v6194_v7  ;;  %v4367_v7 = vunpack.i.l.bf16 %v6238_v10  ;;  %v6603_v10 = vsel %vm290_vm0, %v6150_v3, %v4337_v61  ;;  %v6607_v53 = vsel %vm290_vm0, %v8856_v50, %v4353_v4  ;;  %v8861_v61 = vld [vmem:[#allocation20_spill] sm:$0xff]  ;;  %v8862_v4 = vld [vmem:[#allocation33_spill] sm:$0xff] }
 0x197   : > { %v6611_v12 = vsel %vm290_vm0, %v8857_v9, %v4352_v20  ;;  %v1707_v50 = vsel %vm290_vm0, %v8862_v4, %v4368_v59  ;;  %v8864_v20 = vld [vmem:[#allocation32_spill] sm:$0xff]  ;;  %v4343_v59 = vunpack.i.h.bf16 %v6256_v54 }
 0x198   : > { %v1706_v9 = vsel %vm290_vm0, %v8864_v20, %v4367_v7  ;;  %v4342_v7 = vunpack.i.l.bf16 %v6256_v54  ;;  %v4528_v20 = vunpack.i.h.bf16 %v6412_v41  ;;  %v4688_v54 = vunpack.i.h.bf16 %v6511_v52 }
 0x19a   : > { %v6552_v21 = vpop.permute.xlu0 %4760 }
 0x19b   : > { %8853 = vst [vmem:[#allocation94_spill] sm:$0xff] %v6552_v21  ;;  %v4297_v21 = vunpack.i.l.bf16 %v6196_v11  ;;  %v4302_v11 = vunpack.i.l.bf16 %v6228_v48  ;;  %v6597_v48 = vsel %vm290_vm0, %v6152_v17, %v4338_v5  ;;  %v8859_v17 = vld [vmem:[#allocation22_spill] sm:$0xff] }
 0x19c   : > { %v6554_v16 = vpop.permute.xlu2 %4815  ;;  %v6619_v5 = vsel %vm290_vm0, %v8859_v17, %v4308_v13  ;;  %v8867_v13 = vld [vmem:[#allocation24_spill] sm:$0xff] }
 0x19d   : > { %8854 = vst [vmem:[#allocation95_spill] sm:$0xff] %v6554_v16  ;;  %v6572_v16 = vpop.permute.xlu1 %4765  ;;  %v6593_v19 = vsel %vm290_vm0, %v365_v44, %v4297_v21  ;;  %v8858_v21 = vld [vmem:[#allocation21_spill] sm:$0xff]  ;;  %v8860_v44 = vld [vmem:[#allocation19_spill] sm:$0xff]  ;;  %v6637_v17 = vsel %vm290_vm0, %v8867_v13, %v4312_v36  ;;  %v4527_v36 = vunpack.i.l.bf16 %v6412_v41  ;;  %v4607_v13 = vunpack.i.l.bf16 %v6433_v62 }
 0x19e   : > { %v6615_v47 = vsel %vm290_vm0, %v8858_v21, %v4307_v57  ;;  %v1680_v3 = vsel %vm290_vm0, %v8860_v44, %v4302_v11  ;;  %v8865_v57 = vld [vmem:[#allocation25_spill] sm:$0xff]  ;;  %8868 = vst [vmem:[#allocation21_spill] sm:$0xff] %v6637_v17  ;;  %v4448_v11 = vunpack.i.h.bf16 %v6342_v23  ;;  %v4382_v44 = vunpack.i.l.bf16 %v6250_v63 }
 0x19f   : > { %v6633_v21 = vsel %vm290_vm0, %v8865_v57, %v4313_v34  ;;  %v4398_v34 = vunpack.i.h.bf16 %v6262_v39  ;;  %v1961_v57 = vld [vmem:[%s8592_s1 + $0x10] sm:$0x3]  ;;  %v4687_v17 = vunpack.i.l.bf16 %v6511_v52  ;;  %v4768_v41 = vunpack.i.h.bf16 %v6572_v16 }
 0x1a0   : > { %8866 = vst [vmem:[#allocation30_spill] sm:$0xff] %v6633_v21  ;;  %v1740_v21 = vsel %vm1710_vm3, %v1707_v50, %v4448_v11 }
 0x1a2   : > { %v6599_v24 = vpop.permute.xlu0 %4775 }
 0x1a3   : > { %8855 = vst [vmem:[#allocation96_spill] sm:$0xff] %v6599_v24  ;;  %v1681_v24 = vsel %vm290_vm0, %v8861_v61, %v4303_v25  ;;  %v4383_v25 = vunpack.i.h.bf16 %v6250_v63  ;;  %v4447_v61 = vunpack.i.l.bf16 %v6342_v23  ;;  %v4608_v63 = vunpack.i.h.bf16 %v6433_v62 }
 0x1a4   : > { %v6627_v32 = vpop.permute.xlu2 %4830  ;;  %v1975_v23 = vunpack.c.l.b16 %v1961_v57  ;;  %v1773_v62 = vsel %vm1743_vm4, %v1740_v21, %v4528_v20 }
 0x1a5   : > { %8863 = vst [vmem:[#allocation31_spill] sm:$0xff] %v6627_v32  ;;  %v6644_v4 = vpop.permute.xlu1 %4780  ;;  %v1739_v32 = vsel %vm1710_vm3, %v1706_v9, %v4447_v61  ;;  %v1806_v11 = vsel %vm1776_vm5, %v1773_v62, %v4608_v63  ;;  %v6693_v62 = vsel %vm1710_vm3, %v1681_v24, %v4383_v25  ;;  %v4377_v24 = vunpack.i.l.bf16 %v6288_v46 }
 0x1a6   : > { %8869 = vst [vmem:[#allocation22_spill] sm:$0xff] %v6644_v4  ;;  %v4767_v4 = vunpack.i.l.bf16 %v6572_v16  ;;  %v1978_v56 = vpack.c.b16 %v1975_v23, %v1975_v23  ;;  %v1772_v58 = vsel %vm1743_vm4, %v1739_v32, %v4527_v36  ;;  %v1839_v16 = vsel %vm1809_vm6, %v1806_v11, %v4688_v54  ;;  %v4189_v32 = vld [vmem:[%s8592_s1 + $0x8] sm:$0xff] }
 0x1a7   : > { %v1805_v50 = vsel %vm1776_vm5, %v1772_v58, %v4607_v13  ;;  %v4397_v58 = vunpack.i.l.bf16 %v6262_v39  ;;  %v1872_v20 = vsel %vm1842_vm8, %v1839_v16, %v4768_v41  ;;  %v6687_v54 = vsel %vm1710_vm3, %v1680_v3, %v4382_v44  ;;  %v8871_v3 = vld [vmem:[#allocation28_spill] sm:$0xff]  ;;  %v8873_v16 = vld [vmem:[#allocation26_spill] sm:$0xff] }
 0x1a8   : > { %v2032_v9 = vsel %vm2030_vm7, %v1978_v56, 0  ;;  %v1838_v61 = vsel %vm1809_vm6, %v1805_v50, %v4687_v17  ;;  %v4348_v56 = vunpack.i.h.bf16 %v6264_v51  ;;  %v4347_v17 = vunpack.i.l.bf16 %v6264_v51  ;;  %v8870_v50 = vld [vmem:[#allocation29_spill] sm:$0xff] }
 0x1a9   : > { %2039 = vmatpush.bf16.msra.mxu0 %v2032_v9  ;;  %4271 = vmatpush.bf16.msra.mxu2 %v2032_v9  ;;  %v1871_v21 = vsel %vm1842_vm8, %v1838_v61, %v4767_v4  ;;  %v4373_v39 = vunpack.i.h.bf16 %v6280_v45  ;;  %v4372_v4 = vunpack.i.l.bf16 %v6280_v45  ;;  %v4428_v41 = vunpack.i.h.bf16 %v6286_v40 }
 0x1aa   : > { %v6661_v55 = vpop.permute.xlu0 %4790  ;;  %v6697_v51 = vsel %vm290_vm0, %v8870_v50, %v4343_v59  ;;  %v4378_v11 = vunpack.i.h.bf16 %v6288_v46  ;;  %v6703_v44 = vsel %vm290_vm0, %v8871_v3, %v4342_v7  ;;  %v1720_v45 = vsel %vm1710_vm3, %v6562_v33, %v4398_v34  ;;  %v8872_v59 = vld [vmem:[#allocation27_spill] sm:$0xff]  ;;  %v4188_v33 = vld [vmem:[%s8592_s1] sm:$0xff] }
 0x1ab   : > { %v4388_v25 = vunpack.i.h.bf16 %v6292_v30  ;;  %v1699_v61 = vsel %vm290_vm0, %v8872_v59, %v4348_v56  ;;  %v4387_v7 = vunpack.i.l.bf16 %v6292_v30  ;;  %v8874_v46 = vld [vmem:[#allocation35_spill] sm:$0xff]  ;;  %v4402_v56 = vunpack.i.l.bf16 %v6306_v26 }
 0x1ac   : > { %v4846_v52 = vpop.permute.xlu2 %4845  ;;  %v6723_v34 = vsel %vm290_vm0, %v8874_v46, %v4373_v39  ;;  %v1712_v30 = vsel %vm1710_vm3, %v6590_v18, %v4378_v11  ;;  %v1711_v39 = vsel %vm1710_vm3, %v6593_v19, %v4377_v24  ;;  %v4477_v18 = vunpack.i.l.bf16 %v6368_v15 }
 0x1ad   : > { %v4848_v57 = vunpack.i.h.bf16 %v4846_v52  ;;  %v4847_v23 = vunpack.i.l.bf16 %v4846_v52  ;;  %v6676_v36 = vpop.permute.xlu1 %4795  ;;  %v4427_v52 = vunpack.i.l.bf16 %v6286_v40  ;;  %2040 = vmatpush.bf16.msra.mxu0 %v4189_v32  ;;  %4272 = vmatpush.bf16.msra.mxu2 %v4189_v32  ;;  %v1698_v40 = vsel %vm290_vm0, %v8873_v16, %v4347_v17 }
 0x1ae   : > { %v4458_v17 = vunpack.i.h.bf16 %v6312_v49  ;;  %v4457_v11 = vunpack.i.l.bf16 %v6312_v49  ;;  %v4557_v19 = vunpack.i.l.bf16 %v6435_v1  ;;  %v4418_v3 = vunpack.i.h.bf16 %v6318_v27 }
 0x1af   : > { %v6681_v63 = vsel %vm1875_vm9, %v1871_v21, %v4847_v23  ;;  %v6684_v13 = vsel %vm1875_vm9, %v1872_v20, %v4848_v57  ;;  %v1719_v57 = vsel %vm1710_vm3, %v6558_v31, %v4397_v58  ;;  %v8875_v23 = vld [vmem:[#allocation34_spill] sm:$0xff]  ;;  %v6730_v21 = vsel %vm1710_vm3, %v1699_v61, %v4428_v41 }
 0x1b0   : > { %v6727_v32 = vsel %vm290_vm0, %v8875_v23, %v4372_v4  ;;  %v4403_v20 = vunpack.i.h.bf16 %v6306_v26  ;;  %v6738_v58 = vsel %vm1710_vm3, %v1698_v40, %v4427_v52  ;;  %v6746_v4 = vsel %vm1710_vm3, %v6619_v5, %v4388_v25 }
 0x1b1   : > { %2041 = vmatpush.bf16.msra.mxu0 %v4188_v33  ;;  %4273 = vmatpush.bf16.msra.mxu2 %v4188_v33  ;;  %v4478_v41 = vunpack.i.h.bf16 %v6368_v15  ;;  %v6754_v26 = vsel %vm1710_vm3, %v6615_v47, %v4387_v7  ;;  %v4558_v52 = vunpack.i.h.bf16 %v6435_v1  ;;  %v4638_v15 = vunpack.i.h.bf16 %v6451_v8 }
 0x1b2   : > { %v6709_v9 = vpop.permute.xlu0 %4805  ;;  %v6761_v5 = vsel %vm1710_vm3, %v6567_v0, %v4403_v20  ;;  %v4637_v24 = vunpack.i.l.bf16 %v6451_v8  ;;  %v6768_v47 = vsel %vm1710_vm3, %v6584_v42, %v4402_v56  ;;  %v6771_v49 = vsel %vm1743_vm4, %v1712_v30, %v4458_v17 }
 0x1b3   : > { %v4718_v25 = vunpack.i.h.bf16 %v6530_v2  ;;  %v4717_v1 = vunpack.i.l.bf16 %v6530_v2  ;;  %v1753_v0 = vsel %vm1743_vm4, %v1720_v45, %v4478_v41  ;;  %v1752_v59 = vsel %vm1743_vm4, %v1719_v57, %v4477_v18 }
 0x1b4   : > { %v6733_v31 = vpop.permute.xlu2 %4860  ;;  %v4798_v61 = vunpack.i.h.bf16 %v6676_v36  ;;  %v4797_v16 = vunpack.i.l.bf16 %v6676_v36  ;;  %v6782_v42 = vsel %vm1743_vm4, %v1711_v39, %v4457_v11  ;;  %v4417_v40 = vunpack.i.l.bf16 %v6318_v27 }
 0x1b5   : > { %v6750_v50 = vpop.permute.xlu1 %4810  ;;  %v1785_v7 = vsel %vm1776_vm5, %v1752_v59, %v4557_v19  ;;  %v1786_v33 = vsel %vm1776_vm5, %v1753_v0, %v4558_v52  ;;  %v6789_v2 = vsel %vm1710_vm3, %v6597_v48, %v4418_v3  ;;  %v4422_v45 = vunpack.i.l.bf16 %v6326_v43 }
 0x1b6   : > { %v1818_v57 = vsel %vm1809_vm6, %v1785_v7, %v4637_v24  ;;  %v1819_v36 = vsel %vm1809_vm6, %v1786_v33, %v4638_v15  ;;  %v4423_v56 = vunpack.i.h.bf16 %v6326_v43  ;;  %v4433_v41 = vunpack.i.h.bf16 %v6330_v29 }
 0x1b7   : > { %v1851_v23 = vsel %vm1842_vm8, %v1818_v57, %v4717_v1  ;;  %v1852_v20 = vsel %vm1842_vm8, %v1819_v36, %v4718_v25  ;;  %v4432_v18 = vunpack.i.l.bf16 %v6330_v29  ;;  %v4452_v19 = vunpack.i.l.bf16 %v6350_v37 }
 0x1b8   : > { %v1884_v48 = vsel %vm1875_vm9, %v1851_v23, %v4797_v16  ;;  %v1885_v39 = vsel %vm1875_vm9, %v1852_v20, %v4798_v61  ;;  %v4503_v43 = vunpack.i.h.bf16 %v6348_v35  ;;  %v4502_v3 = vunpack.i.l.bf16 %v6348_v35  ;;  %v8876_v20 = vld [vmem:[#allocation49_spill] sm:$0xff] }
 0x1b9   : > { %v6816_v24 = vsel %vm1710_vm3, %v6603_v10, %v4417_v40  ;;  %v1729_v29 = vsel %vm1710_vm3, %v6703_v44, %v4422_v45  ;;  %v4453_v25 = vunpack.i.h.bf16 %v6350_v37  ;;  %v4462_v1 = vunpack.i.l.bf16 %v6354_v60 }
 0x1ba   : > { %v6779_v8 = vpop.permute.xlu0 %4820  ;;  %v1730_v0 = vsel %vm1710_vm3, %v6697_v51, %v4423_v56  ;;  %v4463_v59 = vunpack.i.h.bf16 %v6354_v60  ;;  %v4468_v35 = vunpack.i.h.bf16 %v6362_v28  ;;  %v4467_v61 = vunpack.i.l.bf16 %v6362_v28 }
 0x1bb   : > { %v6831_v10 = vsel %vm1710_vm3, %v6607_v53, %v4433_v41  ;;  %v6835_v37 = vsel %vm1710_vm3, %v6611_v12, %v4432_v18  ;;  %v4533_v44 = vunpack.i.h.bf16 %v6374_v6  ;;  %v4532_v51 = vunpack.i.l.bf16 %v6374_v6  ;;  %v8879_v18 = vld [vmem:[#allocation69_spill] sm:$0xff] }
 0x1bc   : > { %v4876_v46 = vpop.permute.xlu2 %4875  ;;  %v1741_v60 = vsel %vm1710_vm3, %v6727_v32, %v4452_v19  ;;  %v6842_v40 = vsel %vm1743_vm4, %v1729_v29, %v4502_v3  ;;  %v6845_v28 = vsel %vm1743_vm4, %v1730_v0, %v4503_v43  ;;  %v4482_v53 = vunpack.i.l.bf16 %v6376_v22  ;;  %v8880_v43 = vld [vmem:[#allocation74_spill] sm:$0xff] }
 0x1bd   : > { %v4878_v27 = vunpack.i.h.bf16 %v4876_v46  ;;  %v4877_v30 = vunpack.i.l.bf16 %v4876_v46  ;;  %v6797_v17 = vpop.permute.xlu1 %4825  ;;  %v1742_v7 = vsel %vm1710_vm3, %v6723_v34, %v4453_v25  ;;  %v6852_v12 = vsel %vm1743_vm4, %v6687_v54, %v4462_v1 }
 0x1be   : > { %v4613_v6 = vunpack.i.h.bf16 %v6465_v14  ;;  %v4612_v33 = vunpack.i.l.bf16 %v6465_v14  ;;  %v6858_v32 = vsel %vm1743_vm4, %v6693_v62, %v4463_v59  ;;  %v1748_v45 = vsel %vm1743_vm4, %v6754_v26, %v4467_v61 }
 0x1bf   : > { %v6804_v11 = vsel %vm1908_vm10, %v1884_v48, %v4877_v30  ;;  %v6807_v52 = vsel %vm1908_vm10, %v1885_v39, %v4878_v27  ;;  %v1749_v57 = vsel %vm1743_vm4, %v6746_v4, %v4468_v35  ;;  %v4483_v34 = vunpack.i.h.bf16 %v6376_v22  ;;  %v8877_v27 = vld [vmem:[#allocation86_spill] sm:$0xff]  ;;  %v8878_v22 = vld [vmem:[#allocation56_spill] sm:$0xff] }
 0x1c0   : > { %v1945_v15 = vpack.c.bf16 %v6807_v52, %v6804_v11  ;;  %v1774_v54 = vsel %vm1743_vm4, %v1741_v60, %v4532_v51  ;;  %v1775_v46 = vsel %vm1743_vm4, %v1742_v7, %v4533_v44  ;;  %v4693_v14 = vunpack.i.h.bf16 %v6517_v38  ;;  %v8881_v44 = vld [vmem:[#allocation96_spill] sm:$0xff] }
 0x1c1   : > { %v4692_v23 = vunpack.i.l.bf16 %v6517_v38  ;;  %v1754_v62 = vsel %vm1743_vm4, %v6768_v47, %v4482_v53  ;;  %v4548_v26 = vunpack.i.h.bf16 %v8876_v20  ;;  %v4773_v30 = vunpack.i.h.bf16 %v8877_v27  ;;  %v8920_v11 = vld [vmem:[#allocation36_spill] sm:$0xff] }
 0x1c2   : > { %v6827_v16 = vpop.permute.xlu0 %4835  ;;  %v4772_v4 = vunpack.i.l.bf16 %v8877_v27  ;;  %v4538_v56 = vunpack.i.h.bf16 %v8878_v22  ;;  %v4537_v48 = vunpack.i.l.bf16 %v8878_v22  ;;  %v1807_v39 = vsel %vm1776_vm5, %v1774_v54, %v4612_v33  ;;  %v8882_v54 = vld [vmem:[#allocation50_spill] sm:$0xff] }
 0x1c3   : > { %v1808_v41 = vsel %vm1776_vm5, %v1775_v46, %v4613_v6  ;;  %v4618_v19 = vunpack.i.h.bf16 %v8879_v18  ;;  %v4617_v38 = vunpack.i.l.bf16 %v8879_v18  ;;  %v4698_v47 = vunpack.i.h.bf16 %v8880_v43 }
 0x1c4   : > { %v4697_v3 = vunpack.i.l.bf16 %v8880_v43  ;;  %v1840_v25 = vsel %vm1809_vm6, %v1807_v39, %v4692_v23  ;;  %v1841_v1 = vsel %vm1809_vm6, %v1808_v41, %v4693_v14  ;;  %v4778_v51 = vunpack.i.h.bf16 %v8881_v44 }
 0x1c5   : > { %v6865_v36 = vpop.permute.xlu1 %4840  ;;  %v1873_v35 = vsel %vm1842_vm8, %v1840_v25, %v4772_v4  ;;  %v1874_v61 = vsel %vm1842_vm8, %v1841_v1, %v4773_v30  ;;  %v4777_v60 = vunpack.i.l.bf16 %v8881_v44  ;;  %v1778_v53 = vsel %vm1776_vm5, %v6771_v49, %v4538_v56 }
 0x1c6   : > { %v1777_v7 = vsel %vm1776_vm5, %v6782_v42, %v4537_v48  ;;  %v4498_v46 = vunpack.i.h.bf16 %v8882_v54  ;;  %v4547_v14 = vunpack.i.l.bf16 %v8876_v20  ;;  %v1811_v27 = vsel %vm1809_vm6, %v1778_v53, %v4618_v19  ;;  %v8883_v48 = vld [vmem:[#allocation52_spill] sm:$0xff]  ;;  %v8887_v53 = vld [vmem:[#allocation61_spill] sm:$0xff] }
 0x1c7   : > { %v1810_v23 = vsel %vm1809_vm6, %v1777_v7, %v4617_v38  ;;  %v1844_v4 = vsel %vm1842_vm8, %v1811_v27, %v4698_v47  ;;  %v4497_v56 = vunpack.i.l.bf16 %v8882_v54  ;;  %v4563_v39 = vunpack.i.h.bf16 %v8883_v48  ;;  %v8884_v47 = vld [vmem:[#allocation53_spill] sm:$0xff] }
 0x1c8   : > { %v1843_v49 = vsel %vm1842_vm8, %v1810_v23, %v4697_v3  ;;  %v1877_v18 = vsel %vm1875_vm9, %v1844_v4, %v4778_v51  ;;  %v4562_v20 = vunpack.i.l.bf16 %v8883_v48  ;;  %v1755_v43 = vsel %vm1743_vm4, %v6761_v5, %v4483_v34 }
 0x1c9   : > { %v1876_v41 = vsel %vm1875_vm9, %v1843_v49, %v4777_v60  ;;  %v4513_v3 = vunpack.i.h.bf16 %v8884_v47  ;;  %v1760_v60 = vsel %vm1743_vm4, %v6816_v24, %v4497_v56  ;;  %v1761_v5 = vsel %vm1743_vm4, %v6789_v2, %v4498_v46 }
 0x1ca   : > { %v4851_v29 = vpop.permute.xlu0 %4850  ;;  %v6930_v34 = vsel %vm1776_vm5, %v1749_v57, %v4548_v26  ;;  %v4622_v7 = vunpack.i.l.bf16 %v8887_v53  ;;  %v1788_v54 = vsel %vm1776_vm5, %v1755_v43, %v4563_v39  ;;  %v8889_v57 = vld [vmem:[#allocation87_spill] sm:$0xff]  ;;  %v4328_v52 = vunpack.i.h.bf16 %v8920_v11 }
 0x1cb   : > { %v4853_v0 = vunpack.i.h.bf16 %v4851_v29  ;;  %v4852_v59 = vunpack.i.l.bf16 %v4851_v29  ;;  %v4512_v29 = vunpack.i.l.bf16 %v8884_v47  ;;  %v1767_v2 = vsel %vm1743_vm4, %v6831_v10, %v4513_v3 }
 0x1cc   : > { %v4723_v26 = vunpack.i.h.bf16 %v8889_v57  ;;  %v4722_v46 = vunpack.i.l.bf16 %v8889_v57 }
 0x1cd   : > { %v6895_v6 = vsel %vm1875_vm9, %v1873_v35, %v4852_v59  ;;  %v6898_v33 = vsel %vm1875_vm9, %v1874_v61, %v4853_v0  ;;  %v4856_v30 = vpop.permute.xlu1 %4855  ;;  %v6920_v0 = vsel %vm1776_vm5, %v1748_v45, %v4547_v14  ;;  %v8885_v59 = vld [vmem:[#allocation55_spill] sm:$0xff]  ;;  %v8886_v61 = vld [vmem:[#allocation58_spill] sm:$0xff]  ;;  %v1787_v45 = vsel %vm1776_vm5, %v1754_v62, %v4562_v20  ;;  %v8888_v14 = vld [vmem:[#allocation73_spill] sm:$0xff] }
 0x1ce   : > { %v4858_v42 = vunpack.i.h.bf16 %v4856_v30  ;;  %v4857_v22 = vunpack.i.l.bf16 %v4856_v30  ;;  %v4577_v35 = vunpack.i.l.bf16 %v8885_v59  ;;  %v4543_v44 = vunpack.i.h.bf16 %v8886_v61 }
 0x1cf   : > { %v4542_v51 = vunpack.i.l.bf16 %v8886_v61  ;;  %v4643_v23 = vunpack.i.h.bf16 %v8888_v14  ;;  %v4642_v27 = vunpack.i.l.bf16 %v8888_v14  ;;  %v1766_v24 = vsel %vm1743_vm4, %v6835_v37, %v4512_v29 }
 0x1d0   : > { %v1909_v38 = vsel %vm1908_vm10, %v1876_v41, %v4857_v22  ;;  %v1910_v19 = vsel %vm1908_vm10, %v1877_v18, %v4858_v42  ;;  %v4578_v62 = vunpack.i.h.bf16 %v8885_v59  ;;  %v1793_v49 = vsel %vm1776_vm5, %v1760_v60, %v4577_v35  ;;  %v8890_v22 = vld [vmem:[#allocation92_spill] sm:$0xff]  ;;  %v8891_v18 = vld [vmem:[#allocation83_spill] sm:$0xff] }
 0x1d1   : > { %v1941_v1 = vpack.c.bf16 %v1910_v19, %v1909_v38  ;;  %v1779_v4 = vsel %vm1776_vm5, %v6852_v12, %v4542_v51  ;;  %v1780_v42 = vsel %vm1776_vm5, %v6858_v32, %v4543_v44  ;;  %v4623_v37 = vunpack.i.h.bf16 %v8887_v53  ;;  %v8892_v19 = vld [vmem:[#allocation22_spill] sm:$0xff]  ;;  %v8893_v44 = vld [vmem:[#allocation76_spill] sm:$0xff] }
 0x1d2   : > { %v6917_v25 = vpop.permute.xlu0 %4865  ;;  %v1812_v10 = vsel %vm1809_vm6, %v1779_v4, %v4622_v7  ;;  %v4803_v56 = vunpack.i.h.bf16 %v8890_v22  ;;  %v4802_v48 = vunpack.i.l.bf16 %v8890_v22  ;;  %v1820_v39 = vsel %vm1809_vm6, %v1787_v45, %v4642_v27  ;;  %v8895_v22 = vld [vmem:[#allocation57_spill] sm:$0xff] }
 0x1d3   : > { %4144 = vmatmul.msk.bf16.vlgmr.msra.gmra.mxu0 %vm1981_vm11, %v1941_v1  ;;  %v1821_v41 = vsel %vm1809_vm6, %v1788_v54, %v4643_v23  ;;  %v4703_v20 = vunpack.i.h.bf16 %v8891_v18  ;;  %v4702_v38 = vunpack.i.l.bf16 %v8891_v18  ;;  %v1853_v12 = vsel %vm1842_vm8, %v1820_v39, %v4722_v46  ;;  %v8894_v46 = vld [vmem:[#allocation90_spill] sm:$0xff]  ;;  %v8896_v39 = vld [vmem:[#allocation95_spill] sm:$0xff] }
 0x1d4   : > { %v1854_v32 = vsel %vm1842_vm8, %v1821_v41, %v4723_v26  ;;  %v4783_v43 = vunpack.i.h.bf16 %v8892_v19  ;;  %v4782_v47 = vunpack.i.l.bf16 %v8892_v19  ;;  %v4863_v29 = vunpack.i.h.bf16 %v6733_v31  ;;  %v8898_v19 = vld [vmem:[#allocation70_spill] sm:$0xff] }
 0x1d5   : > { %v6944_v30 = vpop.permute.xlu1 %4870  ;;  %v4862_v1 = vunpack.i.l.bf16 %v6733_v31  ;;  %v1813_v61 = vsel %vm1809_vm6, %v1780_v42, %v4623_v37  ;;  %v4658_v51 = vunpack.i.h.bf16 %v8893_v44  ;;  %v1886_v60 = vsel %vm1875_vm9, %v1853_v12, %v4802_v48 }
 0x1d6   : > { %v1887_v53 = vsel %vm1875_vm9, %v1854_v32, %v4803_v56  ;;  %v1845_v7 = vsel %vm1842_vm8, %v1812_v10, %v4702_v38  ;;  %v1846_v45 = vsel %vm1842_vm8, %v1813_v61, %v4703_v20  ;;  %v4657_v31 = vunpack.i.l.bf16 %v8893_v44  ;;  %v8897_v38 = vld [vmem:[#allocation63_spill] sm:$0xff] }
 0x1d7   : > { %v1878_v27 = vsel %vm1875_vm9, %v1845_v7, %v4782_v47  ;;  %v1879_v57 = vsel %vm1875_vm9, %v1846_v45, %v4783_v43  ;;  %v4738_v4 = vunpack.i.h.bf16 %v8894_v46  ;;  %v4737_v42 = vunpack.i.l.bf16 %v8894_v46  ;;  %v8899_v7 = vld [vmem:[#allocation79_spill] sm:$0xff] }
 0x1d8   : > { %v1911_v37 = vsel %vm1908_vm10, %v1878_v27, %v4862_v1  ;;  %v1912_v10 = vsel %vm1908_vm10, %v1879_v57, %v4863_v29  ;;  %v4593_v56 = vunpack.i.h.bf16 %v8895_v22  ;;  %v4592_v48 = vunpack.i.l.bf16 %v8895_v22 }
 0x1d9   : > { %v4818_v41 = vunpack.i.h.bf16 %v8896_v39  ;;  %v4817_v18 = vunpack.i.l.bf16 %v8896_v39  ;;  %v1794_v20 = vsel %vm1776_vm5, %v1761_v5, %v4578_v62  ;;  %v4583_v12 = vunpack.i.h.bf16 %v8897_v38 }
 0x1da   : > { %v4881_v3 = vpop.permute.xlu0 %4880  ;;  %v4582_v32 = vunpack.i.l.bf16 %v8897_v38  ;;  %v4628_v43 = vunpack.i.h.bf16 %v8898_v19  ;;  %v4627_v47 = vunpack.i.l.bf16 %v8898_v19  ;;  %v1827_v29 = vsel %vm1809_vm6, %v1794_v20, %v4658_v51  ;;  %v8905_v19 = vld [vmem:[#allocation82_spill] sm:$0xff] }
 0x1db   : > { %v4883_v59 = vunpack.i.h.bf16 %v4881_v3  ;;  %v4882_v35 = vunpack.i.l.bf16 %v4881_v3  ;;  %v1826_v3 = vsel %vm1809_vm6, %v1793_v49, %v4657_v31  ;;  %v1860_v61 = vsel %vm1842_vm8, %v1827_v29, %v4738_v4 }
 0x1dc   : > { %v1799_v62 = vsel %vm1776_vm5, %v1766_v24, %v4592_v48  ;;  %v1893_v49 = vsel %vm1875_vm9, %v1860_v61, %v4818_v41  ;;  %v4673_v51 = vunpack.i.h.bf16 %v8899_v7  ;;  %v4672_v45 = vunpack.i.l.bf16 %v8899_v7  ;;  %v8900_v24 = vld [vmem:[#allocation93_spill] sm:$0xff] }
 0x1dd   : > { %v6973_v54 = vsel %vm1908_vm10, %v1886_v60, %v4882_v35  ;;  %v6976_v14 = vsel %vm1908_vm10, %v1887_v53, %v4883_v59  ;;  %v6979_v23 = vpop.permute.xlu1 %4885  ;;  %v1942_v59 = vpack.c.bf16 %v1912_v10, %v1911_v37  ;;  %v1859_v35 = vsel %vm1842_vm8, %v1826_v3, %v4737_v42 }
 0x1de   : > { %v1946_v26 = vpack.c.bf16 %v6976_v14, %v6973_v54  ;;  %v1800_v60 = vsel %vm1776_vm5, %v1767_v2, %v4593_v56  ;;  %v1892_v53 = vsel %vm1875_vm9, %v1859_v35, %v4817_v18  ;;  %v1795_v57 = vsel %vm1776_vm5, %v6842_v40, %v4582_v32  ;;  %v8901_v56 = vld [vmem:[#allocation78_spill] sm:$0xff]  ;;  %v8902_v40 = vld [vmem:[#allocation85_spill] sm:$0xff]  ;;  %v8903_v18 = vld [vmem:[#allocation31_spill] sm:$0xff] }
 0x1df   : > { %v4753_v46 = vunpack.i.h.bf16 %v8900_v24  ;;  %v4752_v2 = vunpack.i.l.bf16 %v8900_v24  ;;  %v1796_v37 = vsel %vm1776_vm5, %v6845_v28, %v4583_v12  ;;  %v1814_v10 = vsel %vm1809_vm6, %v6920_v0, %v4627_v47  ;;  %v8904_v32 = vld [vmem:[#allocation89_spill] sm:$0xff] }
 0x1e0   : > { %v1815_v22 = vsel %vm1809_vm6, %v6930_v34, %v4628_v43  ;;  %v4663_v48 = vunpack.i.h.bf16 %v8901_v56  ;;  %v4662_v39 = vunpack.i.l.bf16 %v8901_v56  ;;  %v4707_v41 = vunpack.i.l.bf16 %v8902_v40  ;;  %v8906_v56 = vld [vmem:[#allocation42_spill] sm:$0xff] }
 0x1e1   : > { %v4833_v20 = vunpack.i.h.bf16 %v8903_v18  ;;  %v4832_v38 = vunpack.i.l.bf16 %v8903_v18  ;;  %v1832_v28 = vsel %vm1809_vm6, %v1799_v62, %v4672_v45  ;;  %v1833_v12 = vsel %vm1809_vm6, %v1800_v60, %v4673_v51 }
 0x1e2   : > { %v4896_v1 = vpop.permute.xlu0 %4895  ;;  %v4708_v0 = vunpack.i.h.bf16 %v8902_v40  ;;  %v4787_v34 = vunpack.i.l.bf16 %v8904_v32  ;;  %v4743_v43 = vunpack.i.h.bf16 %v8905_v19  ;;  %v4788_v47 = vunpack.i.h.bf16 %v8904_v32 }
 0x1e3   : > { %v4898_v44 = vunpack.i.h.bf16 %v4896_v1  ;;  %v4897_v5 = vunpack.i.l.bf16 %v4896_v1  ;;  %4145 = vmatmul.msk.bf16.gmra.mxu0 %vm1981_vm11, %v1942_v59  ;;  %v1865_v3 = vsel %vm1842_vm8, %v1832_v28, %v4752_v2  ;;  %v1866_v29 = vsel %vm1842_vm8, %v1833_v12, %v4753_v46 }
 0x1e4   : > { %v4868_v59 = vunpack.i.h.bf16 %v6917_v25  ;;  %v4867_v35 = vunpack.i.l.bf16 %v6917_v25  ;;  %v1847_v62 = vsel %vm1842_vm8, %v1814_v10, %v4707_v41  ;;  %v1898_v60 = vsel %vm1875_vm9, %v1865_v3, %v4832_v38 }
 0x1e5   : > { %v1925_v31 = vsel %vm1908_vm10, %v1892_v53, %v4897_v5  ;;  %v1926_v27 = vsel %vm1908_vm10, %v1893_v49, %v4898_v44  ;;  %v4901_v42 = vpop.permute.xlu1 %4900  ;;  %v4742_v5 = vunpack.i.l.bf16 %v8905_v19  ;;  %v1899_v53 = vsel %vm1875_vm9, %v1866_v29, %v4833_v20  ;;  %v8907_v20 = vld [vmem:[#allocation44_spill] sm:$0xff] }
 0x1e6   : > { %v1949_v4 = vpack.c.bf16 %v1926_v27, %v1925_v31  ;;  %v1848_v49 = vsel %vm1842_vm8, %v1815_v22, %v4708_v0  ;;  %v1880_v7 = vsel %vm1875_vm9, %v1847_v62, %v4787_v34  ;;  %v4823_v25 = vunpack.i.h.bf16 %v6779_v8  ;;  %v8908_v0 = vld [vmem:[#allocation51_spill] sm:$0xff]  ;;  %v7067_v34 = vpop.permute.xlu2 %4890 }
 0x1e7   : > { %v4822_v31 = vunpack.i.l.bf16 %v6779_v8  ;;  %v1881_v24 = vsel %vm1875_vm9, %v1848_v49, %v4788_v47  ;;  %v4903_v2 = vunpack.i.h.bf16 %v4901_v42  ;;  %v1913_v10 = vsel %vm1908_vm10, %v1880_v7, %v4867_v35 }
 0x1e8   : > { %4152 = vmatmul.msk.bf16.vlgmr.msra.gmra.mxu2 %vm1981_vm11, %v1949_v4  ;;  %v4902_v4 = vunpack.i.l.bf16 %v4901_v42  ;;  %v1914_v22 = vsel %vm1908_vm10, %v1881_v24, %v4868_v59  ;;  %v4393_v40 = vunpack.i.h.bf16 %v8906_v56  ;;  %v4392_v41 = vunpack.i.l.bf16 %v8906_v56 }
 0x1e9   : > { %v1828_v18 = vsel %vm1809_vm6, %v1795_v57, %v4662_v39  ;;  %v1829_v8 = vsel %vm1809_vm6, %v1796_v37, %v4663_v48  ;;  %v4473_v38 = vunpack.i.h.bf16 %v8907_v20  ;;  %v4472_v28 = vunpack.i.l.bf16 %v8907_v20 }
 0x1ea   : > { %v4911_v1 = vpop.permute.xlu0 %4910  ;;  %v1861_v12 = vsel %vm1842_vm8, %v1828_v18, %v4742_v5  ;;  %v1862_v42 = vsel %vm1842_vm8, %v1829_v8, %v4743_v43  ;;  %v4508_v32 = vunpack.i.h.bf16 %v8908_v0  ;;  %v1943_v47 = vpack.c.bf16 %v1914_v22, %v1913_v10  ;;  %v8910_v43 = vld [vmem:[#allocation30_spill] sm:$0xff]  ;;  %v8914_v8 = vld [vmem:[#allocation77_spill] sm:$0xff] }
 0x1eb   : > { %v4913_v61 = vunpack.i.h.bf16 %v4911_v1  ;;  %v4912_v44 = vunpack.i.l.bf16 %v4911_v1  ;;  %v1894_v3 = vsel %vm1875_vm9, %v1861_v12, %v4822_v31  ;;  %v1895_v57 = vsel %vm1875_vm9, %v1862_v42, %v4823_v25  ;;  %v8909_v1 = vld [vmem:[#allocation21_spill] sm:$0xff] }
 0x1ec   : > { %v1927_v48 = vsel %vm1908_vm10, %v1894_v3, %v4902_v4  ;;  %v1928_v29 = vsel %vm1908_vm10, %v1895_v57, %v4903_v2  ;;  %v1717_v59 = vsel %vm1710_vm3, %v8909_v1, %v4392_v41  ;;  %v1718_v35 = vsel %vm1710_vm3, %v8910_v43, %v4393_v40  ;;  %v8912_v4 = vld [vmem:[#allocation64_spill] sm:$0xff] }
 0x1ed   : > { %v7044_v51 = vsel %vm1908_vm10, %v1898_v60, %v4912_v44  ;;  %v7047_v45 = vsel %vm1908_vm10, %v1899_v53, %v4913_v61  ;;  %v7051_v27 = vpop.permute.xlu1 %4915  ;;  %v4507_v61 = vunpack.i.l.bf16 %v8908_v0  ;;  %v8911_v44 = vld [vmem:[#allocation59_spill] sm:$0xff]  ;;  %v1751_v62 = vsel %vm1743_vm4, %v1718_v35, %v4473_v38  ;;  %v8913_v41 = vld [vmem:[#allocation72_spill] sm:$0xff] }
 0x1ee   : > { %v1952_v46 = vpack.c.bf16 %v7047_v45, %v7044_v51  ;;  %v4553_v5 = vunpack.i.h.bf16 %v8911_v44  ;;  %v1750_v60 = vsel %vm1743_vm4, %v1717_v59, %v4472_v28  ;;  %v1765_v7 = vsel %vm1743_vm4, %v6730_v21, %v4508_v32  ;;  %v8915_v57 = vld [vmem:[#allocation68_spill] sm:$0xff]  ;;  %v8916_v59 = vld [vmem:[#allocation91_spill] sm:$0xff] }
 0x1ef   : > { %v4552_v25 = vunpack.i.l.bf16 %v8911_v44  ;;  %v1950_v31 = vpack.c.bf16 %v1928_v29, %v1927_v48  ;;  %v4588_v10 = vunpack.i.h.bf16 %v8912_v4  ;;  %v4587_v22 = vunpack.i.l.bf16 %v8912_v4  ;;  %v5577_v51 = vld [vmem:[#allocation2 + $0x120] sm:$0xff] }
 0x1f0   : > { %v1784_v40 = vsel %vm1776_vm5, %v1751_v62, %v4553_v5  ;;  %v4633_v21 = vunpack.i.h.bf16 %v8913_v41  ;;  %v4632_v18 = vunpack.i.l.bf16 %v8913_v41  ;;  %v4713_v20 = vunpack.i.h.bf16 %v8914_v8  ;;  %v8917_v41 = vld [vmem:[#allocation38_spill] sm:$0xff] }
 0x1f1   : > { %v4712_v38 = vunpack.i.l.bf16 %v8914_v8  ;;  %v4793_v42 = vunpack.i.h.bf16 %v6661_v55  ;;  %v4792_v0 = vunpack.i.l.bf16 %v6661_v55  ;;  %v4872_v3 = vunpack.i.l.bf16 %v6944_v30  ;;  %v4906_v55 = vpop.permute.xlu2 %4905  ;;  %v8918_v8 = vld [vmem:[#allocation46_spill] sm:$0xff] }
 0x1f2   : > { %v4926_v19 = vpop.permute.xlu0 %4925  ;;  %v1817_v48 = vsel %vm1809_vm6, %v1784_v40, %v4633_v21  ;;  %v4748_v43 = vunpack.i.h.bf16 %v8916_v59  ;;  %v4747_v35 = vunpack.i.l.bf16 %v8916_v59  ;;  %v4908_v62 = vunpack.i.h.bf16 %v4906_v55 }
 0x1f3   : > { %v4928_v39 = vunpack.i.h.bf16 %v4926_v19  ;;  %v4927_v37 = vunpack.i.l.bf16 %v4926_v19  ;;  %4146 = vmatmul.msk.bf16.gmra.mxu0 %vm1981_vm11, %v1943_v47  ;;  %v1798_v47 = vsel %vm1776_vm5, %v1765_v7, %v4588_v10  ;;  %v1850_v1 = vsel %vm1842_vm8, %v1817_v48, %v4713_v20  ;;  %v8923_v48 = vld [vmem:[#allocation84_spill] sm:$0xff] }
 0x1f4   : > { %v1883_v5 = vsel %vm1875_vm9, %v1850_v1, %v4793_v42  ;;  %v4358_v21 = vunpack.i.h.bf16 %v8917_v41  ;;  %v4438_v20 = vunpack.i.h.bf16 %v8918_v8 }
 0x1f5   : > { %v7084_v53 = vsel %vm1908_vm10, %v6681_v63, %v4927_v37  ;;  %v7088_v49 = vsel %vm1908_vm10, %v6684_v13, %v4928_v39  ;;  %v4931_v24 = vpop.permute.xlu1 %4930  ;;  %v1764_v13 = vsel %vm1743_vm4, %v6738_v58, %v4507_v61  ;;  %v1783_v58 = vsel %vm1776_vm5, %v1750_v60, %v4552_v25 }
 0x1f6   : > { %v1955_v2 = vpack.c.bf16 %v7088_v49, %v7084_v53  ;;  %v4933_v63 = vunpack.i.h.bf16 %v4931_v24  ;;  %v4932_v56 = vunpack.i.l.bf16 %v4931_v24  ;;  %v1797_v19 = vsel %vm1776_vm5, %v1764_v13, %v4587_v22 }
 0x1f7   : > { %v4667_v39 = vunpack.i.l.bf16 %v8915_v57  ;;  %v1816_v37 = vsel %vm1809_vm6, %v1783_v58, %v4632_v18  ;;  %v4828_v61 = vunpack.i.h.bf16 %v6797_v17  ;;  %v4907_v60 = vunpack.i.l.bf16 %v4906_v55  ;;  %v8919_v58 = vld [vmem:[#allocation47_spill] sm:$0xff] }
 0x1f8   : > { %4153 = vmatmul.msk.bf16.gmra.mxu2 %vm1981_vm11, %v1950_v31  ;;  %v7107_v28 = vsel %vm1908_vm10, %v6895_v6, %v4932_v56  ;;  %v7111_v12 = vsel %vm1908_vm10, %v6898_v33, %v4933_v63  ;;  %v4873_v6 = vunpack.i.h.bf16 %v6944_v30  ;;  %v4668_v33 = vunpack.i.h.bf16 %v8915_v57 }
 0x1f9   : > { %v1956_v32 = vpack.c.bf16 %v7111_v12, %v7107_v28  ;;  %v1849_v29 = vsel %vm1842_vm8, %v1816_v37, %v4712_v38  ;;  %v4827_v30 = vunpack.i.l.bf16 %v6797_v17  ;;  %v1830_v31 = vsel %vm1809_vm6, %v1797_v19, %v4667_v39 }
 0x1fa   : > { %v1882_v44 = vsel %vm1875_vm9, %v1849_v29, %v4792_v0  ;;  %v1916_v25 = vsel %vm1908_vm10, %v1883_v5, %v4873_v6  ;;  %v1831_v24 = vsel %vm1809_vm6, %v1798_v47, %v4668_v33  ;;  %v1863_v4 = vsel %vm1842_vm8, %v1830_v31, %v4747_v35  ;;  %v5576_v6 = vld [vmem:[#allocation2 + $0x128] sm:$0xff] }
 0x1fb   : > { %v1915_v7 = vsel %vm1908_vm10, %v1882_v44, %v4872_v3  ;;  %v1864_v10 = vsel %vm1842_vm8, %v1831_v24, %v4748_v43  ;;  %v1896_v17 = vsel %vm1875_vm9, %v1863_v4, %v4827_v30  ;;  %v4357_v18 = vunpack.i.l.bf16 %v8917_v41  ;;  %v8925_v4 = vld [vmem:[#allocation41_spill] sm:$0xff] }
 0x1fc   : > { %v1944_v22 = vpack.c.bf16 %v1916_v25, %v1915_v7  ;;  %v1897_v63 = vsel %vm1875_vm9, %v1864_v10, %v4828_v61  ;;  %v1929_v56 = vsel %vm1908_vm10, %v1896_v17, %v4907_v60  ;;  %v4437_v38 = vunpack.i.l.bf16 %v8918_v8  ;;  %v8924_v60 = vld [vmem:[#allocation40_spill] sm:$0xff]  ;;  %v5578_v17 = vld [vmem:[#allocation2 + $0x98] sm:$0xff] }
 0x1fd   : > { %v1930_v13 = vsel %vm1908_vm10, %v1897_v63, %v4908_v62  ;;  %v4518_v42 = vunpack.i.h.bf16 %v8919_v58  ;;  %v4517_v0 = vunpack.i.l.bf16 %v8919_v58  ;;  %v1703_v3 = vsel %vm290_vm0, %v5576_v6, %v4358_v21  ;;  %v5580_v58 = vld [vmem:[#allocation2 + $0x140] sm:$0xff]  ;;  %v8928_v6 = vld [vmem:[#allocation54_spill] sm:$0xff] }
 0x1fe   : > { %v1951_v40 = vpack.c.bf16 %v1930_v13, %v1929_v56  ;;  %v1702_v45 = vsel %vm290_vm0, %v5577_v51, %v4357_v18  ;;  %v1736_v37 = vsel %vm1710_vm3, %v1703_v3, %v4438_v20  ;;  %v4758_v55 = vunpack.i.h.bf16 %v8923_v48  ;;  %v5579_v20 = vld [vmem:[#allocation2 + $0x90] sm:$0xff] }
 0x1ff   : > { %v1735_v39 = vsel %vm1710_vm3, %v1702_v45, %v4437_v38  ;;  %v4757_v29 = vunpack.i.l.bf16 %v8923_v48  ;;  %v1769_v59 = vsel %vm1743_vm4, %v1736_v37, %v4518_v42  ;;  %v4838_v43 = vunpack.i.h.bf16 %v6827_v16 }
 0x200   : > { %v1768_v1 = vsel %vm1743_vm4, %v1735_v39, %v4517_v0  ;;  %v4837_v35 = vunpack.i.l.bf16 %v6827_v16  ;;  %v4918_v44 = vunpack.i.h.bf16 %v7051_v27  ;;  %v4917_v5 = vunpack.i.l.bf16 %v7051_v27  ;;  %v8927_v0 = vld [vmem:[#allocation45_spill] sm:$0xff] }
 0x201   : > { %v4327_v62 = vunpack.i.l.bf16 %v8920_v11  ;;  %v4363_v7 = vunpack.i.h.bf16 %v8924_v60  ;;  %v4362_v24 = vunpack.i.l.bf16 %v8924_v60  ;;  %v4443_v16 = vunpack.i.h.bf16 %v8925_v4 }
 0x202   : > { %v1691_v63 = vsel %vm290_vm0, %v5578_v17, %v4328_v52  ;;  %v4442_v27 = vunpack.i.l.bf16 %v8925_v4  ;;  %v4488_v11 = vunpack.i.h.bf16 %v8927_v0  ;;  %v4487_v52 = vunpack.i.l.bf16 %v8927_v0 }
 0x203   : > { %4147 = vmatmul.msk.bf16.gmra.mxu0 %vm1981_vm11, %v1944_v22  ;;  %v1690_v38 = vsel %vm290_vm0, %v5579_v20, %v4327_v62  ;;  %v1705_v42 = vsel %vm290_vm0, %v5580_v58, %v4363_v7  ;;  %v4523_v3 = vunpack.i.h.bf16 %v8928_v6  ;;  %v4522_v51 = vunpack.i.l.bf16 %v8928_v6 }
 0x204   : > { %v4808_v7 = vunpack.i.h.bf16 %v6709_v9  ;;  %v4888_v4 = vunpack.i.h.bf16 %v6979_v23 }
 0x208   : > { %4154 = vmatmul.msk.bf16.gmra.mxu2 %vm1981_vm11, %v1951_v40  ;;  %v8926_v40 = vld [vmem:[#allocation43_spill] sm:$0xff] }
 0x209   : > { %v4408_v41 = vunpack.i.h.bf16 %v8926_v40  ;;  %v4407_v21 = vunpack.i.l.bf16 %v8926_v40  ;;  %v8934_v40 = vld [vmem:[#allocation94_spill] sm:$0xff] }
 0x20b   : > { %v1723_v54 = vsel %vm1710_vm3, %v1690_v38, %v4407_v21  ;;  %v1724_v14 = vsel %vm1710_vm3, %v1691_v63, %v4408_v41  ;;  %v4763_v41 = vunpack.i.h.bf16 %v8934_v40  ;;  %v4762_v21 = vunpack.i.l.bf16 %v8934_v40 }
 0x213   : > { %4148 = vmatmul.msk.bf16.gmra.mxu0 %vm1981_vm11, %v1945_v15  ;;  %v8921_v15 = vld [vmem:[#allocation65_spill] sm:$0xff] }
 0x214   : > { %v4598_v19 = vunpack.i.h.bf16 %v8921_v15  ;;  %v4597_v47 = vunpack.i.l.bf16 %v8921_v15  ;;  %v5581_v15 = vld [vmem:[#allocation2 + $0x138] sm:$0xff] }
 0x216   : > { %v1801_v61 = vsel %vm1776_vm5, %v1768_v1, %v4597_v47  ;;  %v1802_v30 = vsel %vm1776_vm5, %v1769_v59, %v4598_v19  ;;  %v1704_v19 = vsel %vm290_vm0, %v5581_v15, %v4362_v24  ;;  %v1738_v47 = vsel %vm1710_vm3, %v1705_v42, %v4443_v16  ;;  %v8931_v1 = vld [vmem:[#allocation75_spill] sm:$0xff] }
 0x217   : > { %v1737_v45 = vsel %vm1710_vm3, %v1704_v19, %v4442_v27  ;;  %v4648_v59 = vunpack.i.h.bf16 %v8931_v1  ;;  %v4887_v16 = vunpack.i.l.bf16 %v6979_v23  ;;  %v4842_v23 = vunpack.i.l.bf16 %v6865_v36 }
 0x218   : > { %4155 = vmatmul.msk.bf16.gmra.mxu2 %vm1981_vm11, %v1952_v46  ;;  %v8922_v46 = vld [vmem:[#allocation81_spill] sm:$0xff] }
 0x219   : > { %v4678_v57 = vunpack.i.h.bf16 %v8922_v46  ;;  %v4677_v33 = vunpack.i.l.bf16 %v8922_v46  ;;  %v8929_v46 = vld [vmem:[#allocation60_spill] sm:$0xff] }
 0x21b   : > { %v1834_v25 = vsel %vm1809_vm6, %v1801_v61, %v4677_v33  ;;  %v1835_v31 = vsel %vm1809_vm6, %v1802_v30, %v4678_v57  ;;  %v4568_v57 = vunpack.i.h.bf16 %v8929_v46  ;;  %v4567_v33 = vunpack.i.l.bf16 %v8929_v46  ;;  %v8932_v30 = vld [vmem:[#allocation80_spill] sm:$0xff] }
 0x21c   : > { %v1867_v10 = vsel %vm1842_vm8, %v1834_v25, %v4757_v29  ;;  %v1868_v22 = vsel %vm1842_vm8, %v1835_v31, %v4758_v55  ;;  %v1756_v55 = vsel %vm1743_vm4, %v1723_v54, %v4487_v52  ;;  %v1757_v29 = vsel %vm1743_vm4, %v1724_v14, %v4488_v11  ;;  %v8937_v14 = vld [vmem:[#allocation48_spill] sm:$0xff] }
 0x21d   : > { %v1900_v56 = vsel %vm1875_vm9, %v1867_v10, %v4837_v35  ;;  %v1901_v13 = vsel %vm1875_vm9, %v1868_v22, %v4838_v43  ;;  %v4647_v43 = vunpack.i.l.bf16 %v8931_v1  ;;  %v1771_v35 = vsel %vm1743_vm4, %v1738_v47, %v4523_v3  ;;  %v8933_v10 = vld [vmem:[#allocation71_spill] sm:$0xff] }
 0x21e   : > { %v1933_v18 = vsel %vm1908_vm10, %v1900_v56, %v4917_v5  ;;  %v1934_v8 = vsel %vm1908_vm10, %v1901_v13, %v4918_v44  ;;  %v1770_v61 = vsel %vm1743_vm4, %v1737_v45, %v4522_v51  ;;  %v4728_v44 = vunpack.i.h.bf16 %v8932_v30  ;;  %v4921_v56 = vpop.permute.xlu2 %4920  ;;  %v8935_v45 = vld [vmem:[#allocation37_spill] sm:$0xff] }
 0x21f   : > { %v1953_v39 = vpack.c.bf16 %v1934_v8, %v1933_v18  ;;  %v4727_v5 = vunpack.i.l.bf16 %v8932_v30  ;;  %v1789_v62 = vsel %vm1776_vm5, %v1756_v55, %v4567_v33  ;;  %v1790_v60 = vsel %vm1776_vm5, %v1757_v29, %v4568_v57  ;;  %v8936_v33 = vld [vmem:[#allocation39_spill] sm:$0xff]  ;;  %v8938_v55 = vld [vmem:[#allocation62_spill] sm:$0xff] }
 0x220   : > { %v4807_v25 = vunpack.i.l.bf16 %v6709_v9  ;;  %v4683_v22 = vunpack.i.h.bf16 %v8933_v10  ;;  %v4682_v17 = vunpack.i.l.bf16 %v8933_v10  ;;  %v1822_v63 = vsel %vm1809_vm6, %v1789_v62, %v4647_v43  ;;  %v8939_v30 = vld [vmem:[#allocation66_spill] sm:$0xff] }
 0x221   : > { %v1823_v27 = vsel %vm1809_vm6, %v1790_v60, %v4648_v59  ;;  %v1855_v13 = vsel %vm1842_vm8, %v1822_v63, %v4727_v5  ;;  %v4843_v18 = vunpack.i.h.bf16 %v6865_v36  ;;  %v4923_v38 = vunpack.i.h.bf16 %v4921_v56  ;;  %v5582_v59 = vld [vmem:[#allocation2 + $0xb0] sm:$0xff] }
 0x222   : > { %v1856_v9 = vsel %vm1842_vm8, %v1823_v27, %v4728_v44  ;;  %v1888_v8 = vsel %vm1875_vm9, %v1855_v13, %v4807_v25  ;;  %v4922_v58 = vunpack.i.l.bf16 %v4921_v56  ;;  %v4333_v46 = vunpack.i.h.bf16 %v8935_v45 }
 0x223   : > { %4149 = vmatmul.msk.bf16.gmra.mxu0 %vm1981_vm11, %v1946_v26  ;;  %v8930_v26 = vld [vmem:[#allocation67_spill] sm:$0xff]  ;;  %v1889_v20 = vsel %vm1875_vm9, %v1856_v9, %v4808_v7  ;;  %v1921_v42 = vsel %vm1908_vm10, %v1888_v8, %v4887_v16  ;;  %v4332_v57 = vunpack.i.l.bf16 %v8935_v45  ;;  %v4412_v54 = vunpack.i.l.bf16 %v8936_v33  ;;  %v8940_v7 = vld [vmem:[#allocation88_spill] sm:$0xff] }
 0x224   : > { %v4603_v37 = vunpack.i.h.bf16 %v8930_v26  ;;  %v4602_v48 = vunpack.i.l.bf16 %v8930_v26  ;;  %v1922_v0 = vsel %vm1908_vm10, %v1889_v20, %v4888_v4  ;;  %v4493_v26 = vunpack.i.h.bf16 %v8937_v14 }
 0x225   : > { %v1947_v6 = vpack.c.bf16 %v1922_v0, %v1921_v42  ;;  %v4573_v29 = vunpack.i.h.bf16 %v8938_v55  ;;  %v4572_v1 = vunpack.i.l.bf16 %v8938_v55  ;;  %v1693_v43 = vsel %vm290_vm0, %v5582_v59, %v4333_v46  ;;  %v2259_v42 = vld [vmem:[#allocation3 + $0x1] sm:$0xff]  ;;  %v2260_v0 = vld [vmem:[#allocation3 + $0x9] sm:$0xff] }
 0x226   : > { %v1803_v31 = vsel %vm1776_vm5, %v1770_v61, %v4602_v48  ;;  %v1804_v24 = vsel %vm1776_vm5, %v1771_v35, %v4603_v37  ;;  %v4492_v37 = vunpack.i.l.bf16 %v8937_v14  ;;  %v5583_v35 = vld [vmem:[#allocation2 + $0xa8] sm:$0xff]  ;;  %v4653_v44 = vunpack.i.h.bf16 %v8939_v30 }
 0x227   : > { %v1836_v11 = vsel %vm1809_vm6, %v1803_v31, %v4682_v17  ;;  %v1837_v52 = vsel %vm1809_vm6, %v1804_v24, %v4683_v22  ;;  %v1692_v61 = vsel %vm290_vm0, %v5583_v35, %v4332_v57  ;;  %v4652_v5 = vunpack.i.l.bf16 %v8939_v30 }
 0x228   : > { %4156 = vmatmul.msk.bf16.gmra.mxu2 %vm1981_vm11, %v1953_v39  ;;  %v1869_v15 = vsel %vm1842_vm8, %v1836_v11, %v4762_v21  ;;  %v1870_v19 = vsel %vm1842_vm8, %v1837_v52, %v4763_v41  ;;  %v4413_v39 = vunpack.i.h.bf16 %v8936_v33  ;;  %v1725_v60 = vsel %vm1710_vm3, %v1692_v61, %v4412_v54 }
 0x229   : > { %v1902_v36 = vsel %vm1875_vm9, %v1869_v15, %v4842_v23  ;;  %v1903_v47 = vsel %vm1875_vm9, %v1870_v19, %v4843_v18  ;;  %v4733_v25 = vunpack.i.h.bf16 %v8940_v7  ;;  %v4732_v31 = vunpack.i.l.bf16 %v8940_v7 }
 0x22a   : > { %v1935_v3 = vsel %vm1908_vm10, %v1902_v36, %v4922_v58  ;;  %v1936_v51 = vsel %vm1908_vm10, %v1903_v47, %v4923_v38  ;;  %v1726_v62 = vsel %vm1710_vm3, %v1693_v43, %v4413_v39  ;;  %v1758_v4 = vsel %vm1743_vm4, %v1725_v60, %v4492_v37 }
 0x22b   : > { %v1954_v48 = vpack.c.bf16 %v1936_v51, %v1935_v3  ;;  %v1759_v24 = vsel %vm1743_vm4, %v1726_v62, %v4493_v26  ;;  %v4813_v16 = vunpack.i.h.bf16 %v6750_v50  ;;  %v4812_v10 = vunpack.i.l.bf16 %v6750_v50 }
 0x22c   : > { %v1791_v22 = vsel %vm1776_vm5, %v1758_v4, %v4572_v1  ;;  %v1792_v17 = vsel %vm1776_vm5, %v1759_v24, %v4573_v29  ;;  %v4893_v63 = vunpack.i.h.bf16 %v7067_v34  ;;  %v4892_v27 = vunpack.i.l.bf16 %v7067_v34  ;;  %v7295_v34 = vld [vmem:[%s8593_s2] ss:$0 sm:$0xff] }
 0x22d   : > { %v1824_v56 = vsel %vm1809_vm6, %v1791_v22, %v4652_v5  ;;  %v1825_v13 = vsel %vm1809_vm6, %v1792_v17, %v4653_v44  ;;  %v4934_v52 = vpack.i.bf16 %v2260_v0, %v2259_v42 }
 0x22e   : > { %v1857_v9 = vsel %vm1842_vm8, %v1824_v56, %v4732_v31  ;;  %v1858_v40 = vsel %vm1842_vm8, %v1825_v13, %v4733_v25 }
 0x22f   : > { %v1890_v41 = vsel %vm1875_vm9, %v1857_v9, %v4812_v10  ;;  %v1891_v50 = vsel %vm1875_vm9, %v1858_v40, %v4813_v16  ;;  %4935 = vrot.lane.b32.xlu2 %v4934_v52, %s5593_s24 }
 0x230   : > { %v1923_v21 = vsel %vm1908_vm10, %v1890_v41, %v4892_v27  ;;  %v1924_v18 = vsel %vm1908_vm10, %v1891_v50, %v4893_v63 }
 0x231   : > { %v1948_v23 = vpack.c.bf16 %v1924_v18, %v1923_v21 }
 0x233   : > { %4150 = vmatmul.msk.bf16.gmra.mxu0 %vm1981_vm11, %v1947_v6 }
 0x238   : > { %4157 = vmatmul.msk.bf16.gmra.mxu2 %vm1981_vm11, %v1954_v48 }
 0x243   : > { %4151 = vmatmul.msk.bf16.gmra.mxu0 %vm1981_vm11, %v1948_v23 }
 0x248   : > { %4158 = vmatmul.msk.bf16.gmra.mxu2 %vm1981_vm11, %v1955_v2 }
 0x250   : > { %v2043_v8 = vpop.f32.mrf.mxu0 }
 0x251   : > { %v2044_v20 = vadd.f32 %v7295_v34, %v2043_v8 }
 0x253   : > { %v2123_v38 = vmax.f32 %v2044_v20, 0.0 }
 0x255   : > { %2195 = vst.msk [vmem:[#allocation3 + $0x19] sm:$0xff] %vm290_vm0, %v2123_v38 }
 0x258   : > { %4159 = vmatmul.msk.bf16.gmra.mxu2 %vm1981_vm11, %v1956_v32  ;;  %v2045_v58 = vpop.f32.mrf.mxu0 }
 0x259   : > { %v2046_v53 = vadd.f32 %v7295_v34, %v2045_v58 }
 0x25b   : > { %v2124_v49 = vmax.f32 %v2046_v53, 0.0 }
 0x25c   : > { %v2261_v19 = vld [vmem:[#allocation3 + $0x19] sm:$0xff] }
 0x25d   : > { %2196 = vst.msk [vmem:[#allocation3 + $0x21] sm:$0xff] %vm290_vm0, %v2124_v49 }
 0x260   : > { %v2048_v2 = vpop.f32.mrf.mxu0 }
 0x261   : > { %v2049_v11 = vadd.f32 %v7295_v34, %v2048_v2 }
 0x263   : > { %v2125_v15 = vmax.f32 %v2049_v11, 0.0 }
 0x264   : > { %v2262_v36 = vld [vmem:[#allocation3 + $0x21] sm:$0xff] }
 0x265   : > { %2197 = vst.msk [vmem:[#allocation3 + $0x31] sm:$0xff] %vm290_vm0, %v2125_v15  ;;  %v7308_v28 = vpack.i.bf16 %v2262_v36, %v2261_v19 }
 0x267   : > { %4940 = vrot.lane.b32.xlu0 %v7308_v28, %s5593_s24 }
 0x268   : > { %v2050_v12 = vpop.f32.mrf.mxu0 }
 0x269   : > { %v2051_v32 = vadd.f32 %v7295_v34, %v2050_v12 }
 0x26b   : > { %v2083_v47 = vpop.f32.mrf.mxu2  ;;  %v2126_v3 = vmax.f32 %v2051_v32, 0.0 }
 0x26c   : > { %v2084_v6 = vadd.f32 %v7295_v34, %v2083_v47  ;;  %v2263_v54 = vld [vmem:[#allocation3 + $0x31] sm:$0xff] }
 0x26d   : > { %2198 = vst.msk [vmem:[#allocation3 + $0x39] sm:$0xff] %vm290_vm0, %v2126_v3 }
 0x26e   : > { %v2139_v51 = vmax.f32 %v2084_v6, 0.0 }
 0x270   : > { %2211 = vst.msk [vmem:[#allocation3 + $0xd9] sm:$0xff] %vm290_vm0, %v2139_v51  ;;  %v2053_v45 = vpop.f32.mrf.mxu0 }
 0x271   : > { %v2054_v46 = vadd.f32 %v7295_v34, %v2053_v45 }
 0x273   : > { %v2085_v57 = vpop.f32.mrf.mxu2  ;;  %v2127_v39 = vmax.f32 %v2054_v46, 0.0 }
 0x274   : > { %v2086_v33 = vadd.f32 %v7295_v34, %v2085_v57  ;;  %v2264_v14 = vld [vmem:[#allocation3 + $0x39] sm:$0xff] }
 0x275   : > { %2199 = vst.msk [vmem:[#allocation3 + $0x49] sm:$0xff] %vm290_vm0, %v2127_v39  ;;  %v7319_v37 = vpack.i.bf16 %v2264_v14, %v2263_v54 }
 0x276   : > { %v2140_v26 = vmax.f32 %v2086_v33, 0.0 }
 0x277   : > { %4945 = vrot.lane.b32.xlu1 %v7319_v37, %s5593_s24  ;;  %v2277_v17 = vld [vmem:[#allocation3 + $0xd9] sm:$0xff] }
 0x278   : > { %2212 = vst.msk [vmem:[#allocation3 + $0xe1] sm:$0xff] %vm290_vm0, %v2140_v26  ;;  %v2055_v48 = vpop.f32.mrf.mxu0 }
 0x279   : > { %v2056_v55 = vadd.f32 %v7295_v34, %v2055_v48 }
 0x27b   : > { %v2088_v29 = vpop.f32.mrf.mxu2  ;;  %v2128_v59 = vmax.f32 %v2056_v55, 0.0 }
 0x27c   : > { %v2089_v1 = vadd.f32 %v7295_v34, %v2088_v29  ;;  %v2265_v62 = vld [vmem:[#allocation3 + $0x49] sm:$0xff] }
 0x27d   : > { %2200 = vst.msk [vmem:[#allocation3 + $0x51] sm:$0xff] %vm290_vm0, %v2128_v59 }
 0x27e   : > { %v2141_v43 = vmax.f32 %v2089_v1, 0.0 }
 0x27f   : > { %v2278_v16 = vld [vmem:[#allocation3 + $0xe1] sm:$0xff] }
 0x280   : > { %2213 = vst.msk [vmem:[#allocation3 + $0xf1] sm:$0xff] %vm290_vm0, %v2141_v43  ;;  %v2058_v35 = vpop.f32.mrf.mxu0  ;;  %v7339_v27 = vpack.i.bf16 %v2278_v16, %v2277_v17 }
 0x281   : > { %v2059_v61 = vadd.f32 %v7295_v34, %v2058_v35 }
 0x283   : > { %v2090_v30 = vpop.f32.mrf.mxu2  ;;  %v2129_v5 = vmax.f32 %v2059_v61, 0.0 }
 0x284   : > { %v2091_v44 = vadd.f32 %v7295_v34, %v2090_v30  ;;  %v2266_v60 = vld [vmem:[#allocation3 + $0x51] sm:$0xff] }
 0x285   : > { %2201 = vst.msk [vmem:[#allocation3 + $0x61] sm:$0xff] %vm290_vm0, %v2129_v5  ;;  %v7331_v25 = vpack.i.bf16 %v2266_v60, %v2265_v62 }
 0x286   : > { %v2142_v7 = vmax.f32 %v2091_v44, 0.0 }
 0x287   : > { %4950 = vrot.lane.b32.xlu2 %v7331_v25, %s5593_s24  ;;  %v2279_v2 = vld [vmem:[#allocation3 + $0xf1] sm:$0xff] }
 0x288   : > { %2214 = vst.msk [vmem:[#allocation3 + $0xf9] sm:$0xff] %vm290_vm0, %v2142_v7  ;;  %v2060_v31 = vpop.f32.mrf.mxu0 }
 0x289   : > { %v2061_v24 = vadd.f32 %v7295_v34, %v2060_v31 }
 0x28b   : > { %v2093_v4 = vpop.f32.mrf.mxu2  ;;  %v2130_v22 = vmax.f32 %v2061_v24, 0.0 }
 0x28c   : > { %v2094_v10 = vadd.f32 %v7295_v34, %v2093_v4  ;;  %v2267_v50 = vld [vmem:[#allocation3 + $0x61] sm:$0xff] }
 0x28d   : > { %2202 = vst.msk [vmem:[#allocation3 + $0x69] sm:$0xff] %vm290_vm0, %v2130_v22 }
 0x28e   : > { %v2143_v63 = vmax.f32 %v2094_v10, 0.0 }
 0x28f   : > { %4965 = vrot.lane.b32.xlu2 %v7339_v27, %s5593_s24  ;;  %v2280_v58 = vld [vmem:[#allocation3 + $0xf9] sm:$0xff] }
 0x290   : > { %2215 = vst.msk [vmem:[#allocation3 + $0x109] sm:$0xff] %vm290_vm0, %v2143_v63  ;;  %v2063_v56 = vpop.f32.mrf.mxu0  ;;  %v7355_v0 = vpack.i.bf16 %v2280_v58, %v2279_v2  ;;  %v2292_v2 = vld [vmem:[#allocation3 + $0xa] sm:$0xff] }
 0x291   : > { %v2064_v13 = vadd.f32 %v7295_v34, %v2063_v56 }
 0x293   : > { %v2095_v9 = vpop.f32.mrf.mxu2  ;;  %v2131_v41 = vmax.f32 %v2064_v13, 0.0  ;;  %v2295_v13 = vld [vmem:[#allocation3 + $0x32] sm:$0xff] }
 0x294   : > { %v2096_v40 = vadd.f32 %v7295_v34, %v2095_v9  ;;  %v2268_v21 = vld [vmem:[#allocation3 + $0x69] sm:$0xff]  ;;  %v2296_v9 = vld [vmem:[#allocation3 + $0x3a] sm:$0xff] }
 0x295   : > { %2203 = vst.msk [vmem:[#allocation3 + $0x79] sm:$0xff] %vm290_vm0, %v2131_v41  ;;  %v7347_v23 = vpack.i.bf16 %v2268_v21, %v2267_v50 }
 0x296   : > { %v2144_v18 = vmax.f32 %v2096_v40, 0.0 }
 0x297   : > { %4955 = vrot.lane.b32.xlu0 %v7347_v23, %s5593_s24  ;;  %v2281_v39 = vld [vmem:[#allocation3 + $0x109] sm:$0xff] }
 0x298   : > { %2216 = vst.msk [vmem:[#allocation3 + $0x111] sm:$0xff] %vm290_vm0, %v2144_v18  ;;  %v2065_v8 = vpop.f32.mrf.mxu0 }
 0x299   : > { %v2066_v20 = vadd.f32 %v7295_v34, %v2065_v8 }
 0x29b   : > { %v2098_v38 = vpop.f32.mrf.mxu2  ;;  %v2132_v49 = vmax.f32 %v2066_v20, 0.0  ;;  %v7401_v20 = vpack.i.bf16 %v2296_v9, %v2295_v13 }
 0x29c   : > { %v2099_v53 = vadd.f32 %v7295_v34, %v2098_v38  ;;  %v2269_v12 = vld [vmem:[#allocation3 + $0x79] sm:$0xff] }
 0x29d   : > { %2204 = vst.msk [vmem:[#allocation3 + $0x81] sm:$0xff] %vm290_vm0, %v2132_v49  ;;  %v2291_v49 = vld [vmem:[#allocation3 + $0x2] sm:$0xff] }
 0x29e   : > { %v2145_v42 = vmax.f32 %v2099_v53, 0.0 }
 0x29f   : > { %4970 = vrot.lane.b32.xlu0 %v7355_v0, %s5593_s24  ;;  %v2282_v46 = vld [vmem:[#allocation3 + $0x111] sm:$0xff] }
 0x2a0   : > { %2217 = vst.msk [vmem:[#allocation3 + $0x121] sm:$0xff] %vm290_vm0, %v2145_v42  ;;  %v2068_v11 = vpop.f32.mrf.mxu0  ;;  %v7371_v14 = vpack.i.bf16 %v2282_v46, %v2281_v39  ;;  %v2298_v46 = vld [vmem:[#allocation3 + $0x52] sm:$0xff] }
 0x2a1   : > { %v2069_v52 = vadd.f32 %v7295_v34, %v2068_v11 }
 0x2a3   : > { %v2100_v15 = vpop.f32.mrf.mxu2  ;;  %v2133_v36 = vmax.f32 %v2069_v52, 0.0 }
 0x2a4   : > { %v2101_v19 = vadd.f32 %v7295_v34, %v2100_v15  ;;  %v2270_v32 = vld [vmem:[#allocation3 + $0x81] sm:$0xff]  ;;  %v5004_v15 = vpack.i.bf16 %v2292_v2, %v2291_v49  ;;  %v2311_v49 = vld [vmem:[#allocation3 + $0xf2] sm:$0xff]  ;;  %v2313_v2 = vld [vmem:[#allocation3 + $0x10a] sm:$0xff] }
 0x2a5   : > { %2205 = vst.msk [vmem:[#allocation3 + $0x91] sm:$0xff] %vm290_vm0, %v2133_v36  ;;  %v7363_v6 = vpack.i.bf16 %v2270_v32, %v2269_v12 }
 0x2a6   : > { %v2146_v47 = vmax.f32 %v2101_v19, 0.0 }
 0x2a7   : > { %4960 = vrot.lane.b32.xlu1 %v7363_v6, %s5593_s24  ;;  %v2283_v31 = vld [vmem:[#allocation3 + $0x121] sm:$0xff] }
 0x2a8   : > { %2218 = vst.msk [vmem:[#allocation3 + $0x129] sm:$0xff] %vm290_vm0, %v2146_v47  ;;  %v2070_v3 = vpop.f32.mrf.mxu0 }
 0x2a9   : > { %v2071_v51 = vadd.f32 %v7295_v34, %v2070_v3  ;;  %v2293_v3 = vld [vmem:[#allocation3 + $0x1a] sm:$0xff] }
 0x2ab   : > { %v2103_v45 = vpop.f32.mrf.mxu2  ;;  %v2134_v33 = vmax.f32 %v2071_v51, 0.0  ;;  %v2294_v51 = vld [vmem:[#allocation3 + $0x22] sm:$0xff] }
 0x2ac   : > { %v2104_v57 = vadd.f32 %v7295_v34, %v2103_v45  ;;  %v2271_v59 = vld [vmem:[#allocation3 + $0x91] sm:$0xff] }
 0x2ad   : > { %2206 = vst.msk [vmem:[#allocation3 + $0x99] sm:$0xff] %vm290_vm0, %v2134_v33  ;;  %v2297_v45 = vld [vmem:[#allocation3 + $0x4a] sm:$0xff]  ;;  %v7419_v33 = vpack.i.bf16 %v2294_v51, %v2293_v3 }
 0x2ae   : > { %v2147_v54 = vmax.f32 %v2104_v57, 0.0  ;;  %v7421_v39 = vpack.i.bf16 %v2298_v46, %v2297_v45 }
 0x2af   : > { %4975 = vrot.lane.b32.xlu1 %v7371_v14, %s5593_s24  ;;  %v2284_v62 = vld [vmem:[#allocation3 + $0x129] sm:$0xff] }
 0x2b0   : > { %2219 = vst.msk [vmem:[#allocation3 + $0x139] sm:$0xff] %vm290_vm0, %v2147_v54  ;;  %v2073_v26 = vpop.f32.mrf.mxu0  ;;  %v7387_v4 = vpack.i.bf16 %v2284_v62, %v2283_v31  ;;  %v2302_v31 = vld [vmem:[#allocation3 + $0x82] sm:$0xff] }
 0x2b1   : > { %v2074_v48 = vadd.f32 %v7295_v34, %v2073_v26 }
 0x2b3   : > { %v2105_v55 = vpop.f32.mrf.mxu2  ;;  %v2135_v1 = vmax.f32 %v2074_v48, 0.0  ;;  %v2299_v48 = vld [vmem:[#allocation3 + $0x62] sm:$0xff] }
 0x2b4   : > { %v2106_v29 = vadd.f32 %v7295_v34, %v2105_v55  ;;  %v2272_v43 = vld [vmem:[#allocation3 + $0x99] sm:$0xff]  ;;  %v2300_v55 = vld [vmem:[#allocation3 + $0x6a] sm:$0xff] }
 0x2b5   : > { %2207 = vst.msk [vmem:[#allocation3 + $0xa9] sm:$0xff] %vm290_vm0, %v2135_v1  ;;  %v7379_v61 = vpack.i.bf16 %v2272_v43, %v2271_v59  ;;  %v2303_v1 = vld [vmem:[#allocation3 + $0x92] sm:$0xff]  ;;  %v2304_v59 = vld [vmem:[#allocation3 + $0x9a] sm:$0xff] }
 0x2b6   : > { %v2148_v35 = vmax.f32 %v2106_v29, 0.0 }
 0x2b7   : > { %4980 = vrot.lane.b32.xlu2 %v7379_v61, %s5593_s24  ;;  %v2285_v16 = vld [vmem:[#allocation3 + $0x139] sm:$0xff] }
 0x2b8   : > { %2220 = vst.msk [vmem:[#allocation3 + $0x141] sm:$0xff] %vm290_vm0, %v2148_v35  ;;  %v2075_v30 = vpop.f32.mrf.mxu0 }
 0x2b9   : > { %v2076_v44 = vadd.f32 %v7295_v34, %v2075_v30 }
 0x2bb   : > { %v2108_v5 = vpop.f32.mrf.mxu2  ;;  %v2136_v7 = vmax.f32 %v2076_v44, 0.0  ;;  %v7431_v44 = vpack.i.bf16 %v2300_v55, %v2299_v48 }
 0x2bc   : > { %v2109_v60 = vadd.f32 %v7295_v34, %v2108_v5  ;;  %v2273_v50 = vld [vmem:[#allocation3 + $0xa9] sm:$0xff]  ;;  %v7433_v5 = vpack.i.bf16 %v2304_v59, %v2303_v1  ;;  %v7495_v1 = vld [vmem:[#allocation3 + $0x20] sm:$0xff]  ;;  %v2232_v59 = vld [vmem:[#allocation3 + $0x38] sm:$0xff] }
 0x2bd   : > { %2208 = vst.msk [vmem:[#allocation3 + $0xb1] sm:$0xff] %vm290_vm0, %v2136_v7  ;;  %v2301_v7 = vld [vmem:[#allocation3 + $0x7a] sm:$0xff] }
 0x2be   : > { %v2149_v24 = vmax.f32 %v2109_v60, 0.0 }
 0x2bf   : > { %v2286_v10 = vld [vmem:[#allocation3 + $0x141] sm:$0xff]  ;;  %4985 = vrot.lane.b32.xlu2 %v7387_v4, %s5593_s24 }
 0x2c0   : > { %2221 = vst.msk [vmem:[#allocation3 + $0x151] sm:$0xff] %vm290_vm0, %v2149_v24  ;;  %v7390_v22 = vpack.i.bf16 %v2286_v10, %v2285_v16  ;;  %v2078_v17 = vpop.f32.mrf.mxu0  ;;  %v2309_v10 = vld [vmem:[#allocation3 + $0xda] sm:$0xff]  ;;  %v2318_v46 = vld [vmem:[#allocation3 + $0x142] sm:$0xff] }
 0x2c1   : > { %v2079_v63 = vadd.f32 %v7295_v34, %v2078_v17  ;;  %v2310_v17 = vld [vmem:[#allocation3 + $0xe2] sm:$0xff]  ;;  %v2317_v3 = vld [vmem:[#allocation3 + $0x13a] sm:$0xff] }
 0x2c2   : > { %4990 = vrot.lane.b32.xlu0 %v7390_v22, %s5593_s24  ;;  %v7447_v9 = vpack.i.bf16 %v2310_v17, %v2309_v10  ;;  %v7486_v55 = vpack.i.bf16 %v2318_v46, %v2317_v3  ;;  %v7515_v10 = vld [vmem:[#allocation3 + $0x68] sm:$0xff]  ;;  %v7517_v17 = vld [vmem:[#allocation3 + $0x80] sm:$0xff] }
 0x2c3   : > { %v2110_v56 = vpop.f32.mrf.mxu2  ;;  %v2137_v41 = vmax.f32 %v2079_v63, 0.0 }
 0x2c4   : > { %v2111_v40 = vadd.f32 %v7295_v34, %v2110_v56  ;;  %v2274_v21 = vld [vmem:[#allocation3 + $0xb1] sm:$0xff]  ;;  %v7443_v56 = vpack.i.bf16 %v2302_v31, %v2301_v7  ;;  %8942 = vst [vmem:[#allocation20_spill] sm:$0xff] %v7447_v9 }
 0x2c5   : > { %2209 = vst.msk [vmem:[#allocation3 + $0xc1] sm:$0xff] %vm290_vm0, %v2137_v41  ;;  %v7399_v8 = vpack.i.bf16 %v2274_v21, %v2273_v50  ;;  %v2306_v50 = vld [vmem:[#allocation3 + $0xb2] sm:$0xff]  ;;  %v2315_v21 = vld [vmem:[#allocation3 + $0x122] sm:$0xff] }
 0x2c6   : > { %v2150_v18 = vmax.f32 %v2111_v40, 0.0  ;;  %8941 = vst [vmem:[#allocation19_spill] sm:$0xff] %v7443_v56  ;;  %v7505_v31 = vld [vmem:[#allocation3 + $0x90] sm:$0xff] }
 0x2c7   : > { %5015 = vrot.lane.b32.xlu2 %v7401_v20, %s5594_s25  ;;  %v2287_v19 = vld [vmem:[#allocation3 + $0x151] sm:$0xff]  ;;  %8948 = vst [vmem:[#allocation28_spill] sm:$0xff] %v7486_v55 }
 0x2c8   : > { %2222 = vst.msk [vmem:[#allocation3 + $0x159] sm:$0xff] %vm290_vm0, %v2150_v18  ;;  %v2080_v38 = vpop.f32.mrf.mxu0  ;;  %v2316_v18 = vld [vmem:[#allocation3 + $0x12a] sm:$0xff] }
 0x2c9   : > { %v2081_v58 = vadd.f32 %v7295_v34, %v2080_v38 }
 0x2ca   : > { %5000 = vrot.lane.b32.xlu0 %v7399_v8, %s5593_s24 }
 0x2cb   : > { %v2113_v53 = vpop.f32.mrf.mxu2  ;;  %v2138_v11 = vmax.f32 %v2081_v58, 0.0 }
 0x2cc   : > { %v2114_v42 = vadd.f32 %v7295_v34, %v2113_v53  ;;  %v2275_v63 = vld [vmem:[#allocation3 + $0xc1] sm:$0xff]  ;;  %v7459_v53 = vpack.i.bf16 %v2316_v18, %v2315_v21 }
 0x2cd   : > { %2210 = vst.msk [vmem:[#allocation3 + $0xc9] sm:$0xff] %vm290_vm0, %v2138_v11  ;;  %v2312_v11 = vld [vmem:[#allocation3 + $0xfa] sm:$0xff] }
 0x2ce   : > { %v2151_v52 = vmax.f32 %v2114_v42, 0.0  ;;  %8944 = vst [vmem:[#allocation32_spill] sm:$0xff] %v7459_v53  ;;  %v2314_v42 = vld [vmem:[#allocation3 + $0x112] sm:$0xff] }
 0x2cf   : > { %v2288_v36 = vld [vmem:[#allocation3 + $0x159] sm:$0xff] }
 0x2d0   : > { %2223 = vst.msk [vmem:[#allocation3 + $0x169] sm:$0xff] %vm290_vm0, %v2151_v52  ;;  %v7412_v12 = vpack.i.bf16 %v2288_v36, %v2287_v19  ;;  %v7467_v52 = vpop.permute.xlu2 %4935  ;;  %v7469_v36 = vpack.i.bf16 %v2314_v42, %v2313_v2  ;;  %v2319_v51 = vld [vmem:[#allocation3 + $0x152] sm:$0xff]  ;;  %v2320_v45 = vld [vmem:[#allocation3 + $0x15a] sm:$0xff] }
 0x2d1   : > { %v7484_v48 = vpack.i.bf16 %v2320_v45, %v2319_v51  ;;  %v7543_v42 = vld [vmem:[#allocation3 + $0xb0] sm:$0xff]  ;;  %v7555_v51 = vld [vmem:[#allocation3 + $0x120] sm:$0xff] }
 0x2d2   : > { %4995 = vrot.lane.b32.xlu1 %v7412_v12, %s5593_s24  ;;  %5005 = vrot.lane.b32.xlu0 %v5004_v15, %s5594_s25  ;;  %8945 = vst [vmem:[#allocation25_spill] sm:$0xff] %v7469_v36 }
 0x2d3   : > { %v2115_v32 = vpop.f32.mrf.mxu2  ;;  %8947 = vst [vmem:[#allocation29_spill] sm:$0xff] %v7484_v48 }
 0x2d4   : > { %v2116_v47 = vadd.f32 %v7295_v34, %v2115_v32  ;;  %v2276_v24 = vld [vmem:[#allocation3 + $0xc9] sm:$0xff]  ;;  %v7471_v32 = vpack.i.bf16 %v2312_v11, %v2311_v49 }
 0x2d5   : > { %v7445_v13 = vpack.i.bf16 %v2276_v24, %v2275_v63  ;;  %v2307_v40 = vld [vmem:[#allocation3 + $0xc2] sm:$0xff]  ;;  %v2308_v41 = vld [vmem:[#allocation3 + $0xca] sm:$0xff] }
 0x2d6   : > { %v2152_v57 = vmax.f32 %v2116_v47, 0.0  ;;  %v7455_v38 = vpack.i.bf16 %v2308_v41, %v2307_v40  ;;  %8946 = vst [vmem:[#allocation24_spill] sm:$0xff] %v7471_v32  ;;  %v7519_v63 = vld [vmem:[#allocation3 + $0xe0] sm:$0xff]  ;;  %v7523_v40 = vld [vmem:[#allocation3 + $0x78] sm:$0xff]  ;;  %v7541_v2 = vld [vmem:[#allocation3 + $0xc8] sm:$0xff] }
 0x2d7   : > { %v2289_v43 = vld [vmem:[#allocation3 + $0x169] sm:$0xff]  ;;  %v7525_v41 = vld [vmem:[#allocation3 + $0xd8] sm:$0xff] }
 0x2d8   : > { %2224 = vst.msk [vmem:[#allocation3 + $0x171] sm:$0xff] %vm290_vm0, %v2152_v57  ;;  %v7478_v57 = vld [vmem:[#allocation3 + $0x50] sm:$0xff]  ;;  %v5134_v18 = vpack.i.bf16 %v7519_v63, %v7525_v41  ;;  %v7545_v11 = vld [vmem:[#allocation3 + $0x128] sm:$0xff] }
 0x2d9   : > { %8943 = vst [vmem:[#allocation33_spill] sm:$0xff] %v7455_v38  ;;  %v7559_v45 = vpack.i.bf16 %v7545_v11, %v7555_v51  ;;  %v7561_v46 = vpop.permute.xlu0 %4940 }
 0x2da   : > { %5010 = vrot.lane.b32.xlu1 %v7419_v33, %s5594_s25  ;;  %5020 = vrot.lane.b32.xlu0 %v7421_v39, %s5594_s25 }
 0x2db   : > { %v2118_v54 = vpop.f32.mrf.mxu2  ;;  %8951 = vst [vmem:[#allocation35_spill] sm:$0xff] %v7559_v45 }
 0x2dc   : > { %v2119_v26 = vadd.f32 %v7295_v34, %v2118_v54 }
 0x2de   : > { %v2153_v29 = vmax.f32 %v2119_v26, 0.0  ;;  %v7482_v26 = vld [vmem:[#allocation3 + $0x48] sm:$0xff] }
 0x2df   : > { %v2290_v35 = vld [vmem:[#allocation3 + $0x171] sm:$0xff] }
 0x2e0   : > { %2225 = vst.msk [vmem:[#allocation3 + $0x181] sm:$0xff] %vm290_vm0, %v2153_v29  ;;  %v7429_v30 = vpack.i.bf16 %v2290_v35, %v2289_v43  ;;  %v2321_v15 = vld [vmem:[#allocation3 + $0x16a] sm:$0xff]  ;;  %v2322_v19 = vld [vmem:[#allocation3 + $0x172] sm:$0xff]  ;;  %v5104_v29 = vpack.i.bf16 %v7478_v57, %v7482_v26 }
 0x2e1   : > { %v5089_v47 = vpack.i.bf16 %v2322_v19, %v2321_v15  ;;  %v7480_v54 = vpop.permute.xlu2 %4950  ;;  %v7497_v43 = vld [vmem:[#allocation3 + $0x98] sm:$0xff]  ;;  %v7547_v15 = vld [vmem:[#allocation3 + $0xc0] sm:$0xff]  ;;  %v7549_v19 = vld [vmem:[#allocation3 + $0xa8] sm:$0xff] }
 0x2e2   : > { %5030 = vrot.lane.b32.xlu2 %v7429_v30, %s5593_s24  ;;  %5025 = vrot.lane.b32.xlu1 %v7431_v44, %s5594_s25  ;;  %v7499_v35 = vld [vmem:[#allocation3 + $0x18] sm:$0xff]  ;;  %v5119_v24 = vpack.i.bf16 %v7497_v43, %v7505_v31  ;;  %v5124_v3 = vpack.i.bf16 %v7543_v42, %v7549_v19 }
 0x2e3   : > { %v2120_v62 = vpop.f32.mrf.mxu2  ;;  %5040 = vrot.lane.b32.xlu0 %v7433_v5, %s5594_s25  ;;  %v5094_v7 = vpack.i.bf16 %v7495_v1, %v7499_v35 }
 0x2e4   : > { %v2121_v60 = vadd.f32 %v7295_v34, %v2120_v62  ;;  %v2305_v34 = vld [vmem:[#allocation3 + $0xaa] sm:$0xff] }
 0x2e5   : > { %v7457_v58 = vpack.i.bf16 %v2306_v50, %v2305_v34  ;;  %v2231_v62 = vld [vmem:[#allocation3 + $0x30] sm:$0xff]  ;;  %v7521_v34 = vld [vmem:[#allocation3 + $0x60] sm:$0xff]  ;;  %v5114_v50 = vpack.i.bf16 %v7517_v17, %v7523_v40 }
 0x2e6   : > { %v2154_v16 = vmax.f32 %v2121_v60, 0.0  ;;  %v7501_v60 = vpack.i.bf16 %v2232_v59, %v2231_v62  ;;  %v7531_v21 = vpack.i.bf16 %v7515_v10, %v7521_v34 }
 0x2e8   : > { %2226 = vst.msk [vmem:[#allocation3 + $0x189] sm:$0xff] %vm290_vm0, %v2154_v16 }
 0x2e9   : > { %8949 = vst [vmem:[#allocation27_spill] sm:$0xff] %v7501_v60  ;;  %v7509_v16 = vpop.permute.xlu2 %4965 }
 0x2ea   : > { %5035 = vrot.lane.b32.xlu2 %v7443_v56, %s5594_s25  ;;  %5045 = vrot.lane.b32.xlu1 %v7445_v13, %s5593_s24  ;;  %8950 = vst [vmem:[#allocation26_spill] sm:$0xff] %v7531_v21  ;;  %v7612_v56 = vld [vmem:[#allocation3 + $0x138] sm:$0xff] }
 0x2eb   : > { %5060 = vrot.lane.b32.xlu0 %v7447_v9, %s5594_s25  ;;  %8961 = vst [vmem:[#allocation53_spill] sm:$0xff] %v7612_v56 }
 0x2f2   : > { %5055 = vrot.lane.b32.xlu2 %v7455_v38, %s5594_s25  ;;  %5050 = vrot.lane.b32.xlu1 %v7457_v58, %s5594_s25 }
 0x2f3   : > { %5075 = vrot.lane.b32.xlu0 %v7459_v53, %s5594_s25 }
 0x2fa   : > { %5070 = vrot.lane.b32.xlu2 %v7469_v36, %s5594_s25  ;;  %5065 = vrot.lane.b32.xlu1 %v7471_v32, %s5594_s25  ;;  %v7587_v36 = vld [vmem:[#allocation3 + $0x168] sm:$0xff] }
 0x2fb   : > { %5090 = vrot.lane.b32.xlu0 %v5089_v47, %s5594_s25  ;;  %v5129_v47 = vpack.i.bf16 %v7541_v2, %v7547_v15  ;;  %8957 = vst [vmem:[#allocation74_spill] sm:$0xff] %v7587_v36 }
 0x302   : > { %5085 = vrot.lane.b32.xlu2 %v7484_v48, %s5594_s25  ;;  %5080 = vrot.lane.b32.xlu1 %v7486_v55, %s5594_s25  ;;  %s4187_s25 = sshll.u32 %s9036_s19, 8 }
 0x303   : > { %5105 = vrot.lane.b32.xlu0 %v5104_v29, %s5595_s26 }
 0x309   : > { %v7591_v55 = vpop.permute.xlu0 %4955 }
 0x30a   : > { %5100 = vrot.lane.b32.xlu2 %v7501_v60, %s5595_s26  ;;  %5095 = vrot.lane.b32.xlu1 %v5094_v7, %s5595_s26  ;;  %v4946_v7 = vpop.permute.xlu1 %4945  ;;  %v7577_v60 = vld [vmem:[#allocation3 + $0x108] sm:$0xff] }
 0x30b   : > { %5120 = vrot.lane.b32.xlu0 %v5119_v24, %s5595_s26  ;;  %v7569_v24 = vld [vmem:[#allocation3 + $0xf8] sm:$0xff]  ;;  %v4948_v48 = vunpack.i.h.bf16 %v4946_v7 }
 0x30c   : > { %8952 = vst [vmem:[#allocation34_spill] sm:$0xff] %v7569_v24 }
 0x311   : > { %v7538_v49 = vpop.permute.xlu2 %4980 }
 0x312   : > { %5115 = vrot.lane.b32.xlu2 %v5114_v50, %s5595_s26  ;;  %5110 = vrot.lane.b32.xlu1 %v7531_v21, %s5595_s26  ;;  %v7571_v50 = vld [vmem:[#allocation3 + $0x110] sm:$0xff] }
 0x313   : > { %5135 = vrot.lane.b32.xlu0 %v5134_v18, %s5595_s26  ;;  %v7573_v18 = vld [vmem:[#allocation3 + $0x170] sm:$0xff] }
 0x314   : > { %8953 = vst [vmem:[#allocation49_spill] sm:$0xff] %v7573_v18  ;;  %v7575_v21 = vld [vmem:[#allocation3 + $0xf0] sm:$0xff]  ;;  %v5164_v53 = vpack.i.bf16 %v7573_v18, %v7587_v36  ;;  %v7606_v18 = vld [vmem:[#allocation3 + $0x158] sm:$0xff] }
 0x315   : > { %8954 = vst [vmem:[#allocation86_spill] sm:$0xff] %v7575_v21 }
 0x319   : > { %v7565_v29 = vpop.permute.xlu2 %4985 }
 0x31a   : > { %5130 = vrot.lane.b32.xlu2 %v5129_v47, %s5595_s26  ;;  %5125 = vrot.lane.b32.xlu1 %v5124_v3, %s5595_s26  ;;  %v4947_v47 = vunpack.i.l.bf16 %v4946_v7  ;;  %v7581_v3 = vpack.i.bf16 %v7571_v50, %v7577_v60 }
 0x31b   : > { %5150 = vrot.lane.b32.xlu0 %v7559_v45, %s5595_s26  ;;  %v7585_v45 = vpack.i.bf16 %v7569_v24, %v7575_v21  ;;  %v3545_v24 = vsel %vm290_vm0, %v2232_v59, %v4948_v48  ;;  %v2353_v59 = vld [vmem:[#allocation3 + $0x180] sm:$0xff] }
 0x31c   : > { %8955 = vst [vmem:[#allocation56_spill] sm:$0xff] %v7581_v3  ;;  %v3544_v21 = vsel %vm290_vm0, %v2231_v62, %v4947_v47 }
 0x31d   : > { %8956 = vst [vmem:[#allocation69_spill] sm:$0xff] %v7585_v45 }
 0x321   : > { %v5016_v7 = vpop.permute.xlu2 %5015 }
 0x322   : > { %5145 = vrot.lane.b32.xlu2 %v7581_v3, %s5595_s26  ;;  %5140 = vrot.lane.b32.xlu1 %v7585_v45, %s5595_s26  ;;  %v5018_v38 = vunpack.i.h.bf16 %v5016_v7  ;;  %v5017_v9 = vunpack.i.l.bf16 %v5016_v7  ;;  %v7608_v3 = vld [vmem:[#allocation3 + $0x140] sm:$0xff]  ;;  %v7610_v45 = vld [vmem:[#allocation3 + $0x150] sm:$0xff] }
 0x323   : > { %5165 = vrot.lane.b32.xlu0 %v5164_v53, %s5595_s26  ;;  %8960 = vst [vmem:[#allocation52_spill] sm:$0xff] %v7608_v3  ;;  %v7616_v53 = vpack.i.bf16 %v7606_v18, %v7610_v45  ;;  %v7620_v48 = vpack.i.bf16 %v7608_v3, %v7612_v56 }
 0x324   : > { %v7601_v32 = vsel %vm1710_vm3, %v3544_v21, %v5017_v9  ;;  %v7604_v36 = vsel %vm1710_vm3, %v3545_v24, %v5018_v38  ;;  %v7628_v9 = vpop.permute.xlu0 %4970  ;;  %v2354_v38 = vld [vmem:[#allocation3 + $0x188] sm:$0xff]  ;;  %v4961_v21 = vpop.permute.xlu1 %4960 }
 0x325   : > { %8958 = vst [vmem:[#allocation96_spill] sm:$0xff] %v7601_v32  ;;  %v5169_v62 = vpack.i.bf16 %v2354_v38, %v2353_v59  ;;  %v4963_v7 = vunpack.i.h.bf16 %v4961_v21  ;;  %v4962_v38 = vunpack.i.l.bf16 %v4961_v21 }
 0x326   : > { %8959 = vst [vmem:[#allocation50_spill] sm:$0xff] %v7604_v36 }
 0x327   : > { %8962 = vst [vmem:[#allocation55_spill] sm:$0xff] %v7616_v53 }
 0x328   : > { %8963 = vst [vmem:[#allocation58_spill] sm:$0xff] %v7620_v48 }
 0x32a   : > { %5160 = vrot.lane.b32.xlu2 %v7616_v53, %s5595_s26  ;;  %5155 = vrot.lane.b32.xlu1 %v7620_v48, %s5595_s26 }
 0x32b   : > { %5180 = vrot.lane.b32.xlu0 %v7319_v37, %s5596_s27 }
 0x32c   : > { %v7641_v37 = vpop.permute.xlu1 %4975 }
 0x332   : > { %5175 = vrot.lane.b32.xlu2 %v7308_v28, %s5596_s27  ;;  %5170 = vrot.lane.b32.xlu1 %v5169_v62, %s5595_s26 }
 0x333   : > { %5195 = vrot.lane.b32.xlu0 %v7363_v6, %s5596_s27  ;;  %v2227_v6 = vld [vmem:[#allocation3] sm:$0xff] }
 0x334   : > { %v7635_v24 = vpop.permute.xlu0 %4990 }
 0x33a   : > { %5190 = vrot.lane.b32.xlu2 %v7347_v23, %s5596_s27  ;;  %5185 = vrot.lane.b32.xlu1 %v7331_v25, %s5596_s27  ;;  %v4938_v23 = vunpack.i.h.bf16 %v7467_v52  ;;  %v4937_v25 = vunpack.i.l.bf16 %v7467_v52 }
 0x33b   : > { %5210 = vrot.lane.b32.xlu0 %v7445_v13, %s5596_s27  ;;  %v2228_v13 = vld [vmem:[#allocation3 + $0x8] sm:$0xff] }
 0x33c   : > { %v7645_v47 = vpop.permute.xlu2 %5030  ;;  %v7647_v28 = vpop.permute.xlu0 %5000  ;;  %v3541_v52 = vsel %vm290_vm0, %v2228_v13, %v4938_v23  ;;  %v4958_v13 = vunpack.i.h.bf16 %v7591_v55 }
 0x342   : > { %5205 = vrot.lane.b32.xlu2 %v7399_v8, %s5596_s27  ;;  %5200 = vrot.lane.b32.xlu1 %v7379_v61, %s5596_s27  ;;  %v3551_v8 = vsel %vm290_vm0, %v7517_v17, %v4963_v7  ;;  %v3550_v61 = vsel %vm290_vm0, %v7523_v40, %v4962_v38  ;;  %v4943_v40 = vunpack.i.h.bf16 %v7561_v46  ;;  %v4953_v7 = vunpack.i.h.bf16 %v7480_v54 }
 0x343   : > { %5225 = vrot.lane.b32.xlu0 %v7371_v14, %s5596_s27  ;;  %v3540_v14 = vsel %vm290_vm0, %v2227_v6, %v4937_v25  ;;  %v4952_v38 = vunpack.i.l.bf16 %v7480_v54 }
 0x344   : > { %v5036_v59 = vpop.permute.xlu2 %5035  ;;  %v7657_v62 = vpop.permute.xlu1 %4995 }
 0x345   : > { %v5038_v53 = vunpack.i.h.bf16 %v5036_v59  ;;  %v5037_v21 = vunpack.i.l.bf16 %v5036_v59  ;;  %v5006_v48 = vpop.permute.xlu0 %5005 }
 0x346   : > { %v5008_v36 = vunpack.i.h.bf16 %v5006_v48  ;;  %v5007_v32 = vunpack.i.l.bf16 %v5006_v48  ;;  %v4942_v48 = vunpack.i.l.bf16 %v7561_v46  ;;  %v3543_v46 = vsel %vm290_vm0, %v7495_v1, %v4943_v40  ;;  %v2385_v40 = vld [vmem:[#allocation3 + $0x181] sm:$0xff] }
 0x347   : > { %v7666_v56 = vsel %vm1710_vm3, %v3550_v61, %v5037_v21  ;;  %v7669_v3 = vsel %vm1710_vm3, %v3551_v8, %v5038_v53  ;;  %v4957_v21 = vunpack.i.l.bf16 %v7591_v55  ;;  %v4983_v8 = vunpack.i.h.bf16 %v7538_v49 }
 0x348   : > { %v7672_v59 = vsel %vm1710_vm3, %v3541_v52, %v5008_v36  ;;  %v7675_v17 = vsel %vm1710_vm3, %v3540_v14, %v5007_v32  ;;  %v3542_v53 = vsel %vm290_vm0, %v7499_v35, %v4942_v48  ;;  %v4982_v61 = vunpack.i.l.bf16 %v7538_v49  ;;  %v2386_v52 = vld [vmem:[#allocation3 + $0x189] sm:$0xff] }
 0x349   : > { %v4978_v14 = vunpack.i.h.bf16 %v7641_v37  ;;  %v4977_v55 = vunpack.i.l.bf16 %v7641_v37  ;;  %v4968_v49 = vunpack.i.h.bf16 %v7509_v16  ;;  %v4967_v48 = vunpack.i.l.bf16 %v7509_v16 }
 0x34a   : > { %5220 = vrot.lane.b32.xlu2 %v7355_v0, %s5596_s27  ;;  %5215 = vrot.lane.b32.xlu1 %v7339_v27, %s5596_s27  ;;  %v3546_v0 = vsel %vm290_vm0, %v7482_v26, %v4952_v38  ;;  %v3547_v27 = vsel %vm290_vm0, %v7478_v57, %v4953_v7  ;;  %v7723_v7 = vpack.i.bf16 %v2386_v52, %v2385_v40 }
 0x34b   : > { %5240 = vrot.lane.b32.xlu0 %v7412_v12, %s5596_s27  ;;  %v3548_v38 = vsel %vm290_vm0, %v7521_v34, %v4957_v21  ;;  %v3549_v37 = vsel %vm290_vm0, %v7515_v10, %v4958_v13  ;;  %v3562_v34 = vsel %vm290_vm0, %v7577_v60, %v4977_v55  ;;  %v3559_v21 = vsel %vm290_vm0, %v7519_v63, %v4968_v49 }
 0x34c   : > { %v7687_v36 = vpop.permute.xlu2 %5055  ;;  %v5011_v32 = vpop.permute.xlu1 %5010 }
 0x34d   : > { %v5013_v23 = vunpack.i.h.bf16 %v5011_v32  ;;  %v5012_v54 = vunpack.i.l.bf16 %v5011_v32  ;;  %v5021_v25 = vpop.permute.xlu0 %5020 }
 0x34e   : > { %v5023_v6 = vunpack.i.h.bf16 %v5021_v25  ;;  %v5022_v12 = vunpack.i.l.bf16 %v5021_v25  ;;  %v3563_v25 = vsel %vm290_vm0, %v7571_v50, %v4978_v14  ;;  %v4997_v50 = vunpack.i.l.bf16 %v7657_v62 }
 0x34f   : > { %v7700_v35 = vsel %vm1710_vm3, %v3543_v46, %v5013_v23  ;;  %v7703_v1 = vsel %vm1710_vm3, %v3542_v53, %v5012_v54 }
 0x350   : > { %v7708_v26 = vsel %vm1710_vm3, %v3546_v0, %v5022_v12  ;;  %v7711_v57 = vsel %vm1710_vm3, %v3547_v27, %v5023_v6  ;;  %v4998_v12 = vunpack.i.h.bf16 %v7657_v62  ;;  %v4988_v62 = vunpack.i.h.bf16 %v7565_v29 }
 0x351   : > { %v3568_v14 = vsel %vm290_vm0, %v7610_v45, %v4997_v50 }
 0x352   : > { %5235 = vrot.lane.b32.xlu2 %v7390_v22, %s5596_s27  ;;  %5230 = vrot.lane.b32.xlu1 %v7387_v4, %s5596_s27  ;;  %v3553_v22 = vsel %vm290_vm0, %v7497_v43, %v4983_v8  ;;  %v3552_v4 = vsel %vm290_vm0, %v7505_v31, %v4982_v61  ;;  %v3558_v8 = vsel %vm290_vm0, %v7525_v41, %v4967_v48  ;;  %v4987_v61 = vunpack.i.l.bf16 %v7565_v29 }
 0x353   : > { %5255 = vrot.lane.b32.xlu0 %v7419_v33, %s5597_s28  ;;  %v3569_v52 = vsel %vm290_vm0, %v7606_v18, %v4998_v12  ;;  %v5058_v48 = vunpack.i.h.bf16 %v7687_v36 }
 0x354   : > { %v5071_v32 = vpop.permute.xlu2 %5070  ;;  %v5026_v53 = vpop.permute.xlu1 %5025 }
 0x355   : > { %v5073_v16 = vunpack.i.h.bf16 %v5071_v32  ;;  %v5072_v46 = vunpack.i.l.bf16 %v5071_v32  ;;  %v5028_v23 = vunpack.i.h.bf16 %v5026_v53  ;;  %v5027_v33 = vunpack.i.l.bf16 %v5026_v53  ;;  %v5041_v54 = vpop.permute.xlu0 %5040 }
 0x356   : > { %v5043_v10 = vunpack.i.h.bf16 %v5041_v54  ;;  %v5042_v0 = vunpack.i.l.bf16 %v5041_v54 }
 0x357   : > { %v7738_v43 = vsel %vm1710_vm3, %v3562_v34, %v5072_v46  ;;  %v7741_v31 = vsel %vm1710_vm3, %v3563_v25, %v5073_v16  ;;  %v7744_v27 = vsel %vm1710_vm3, %v3549_v37, %v5028_v23  ;;  %v7747_v6 = vsel %vm1710_vm3, %v3548_v38, %v5027_v33 }
 0x358   : > { %v7752_v60 = vsel %vm1710_vm3, %v3552_v4, %v5042_v0  ;;  %v7755_v13 = vsel %vm1710_vm3, %v3553_v22, %v5043_v10  ;;  %v5003_v46 = vunpack.i.h.bf16 %v7647_v28  ;;  %v5002_v23 = vunpack.i.l.bf16 %v7647_v28 }
 0x35a   : > { %5250 = vrot.lane.b32.xlu2 %v7723_v7, %s5596_s27  ;;  %5245 = vrot.lane.b32.xlu1 %v7429_v30, %s5596_s27 }
 0x35b   : > { %5270 = vrot.lane.b32.xlu0 %v7431_v44, %s5597_s28  ;;  %v5057_v44 = vunpack.i.l.bf16 %v7687_v36 }
 0x35c   : > { %v5086_v30 = vpop.permute.xlu2 %5085  ;;  %v5046_v55 = vpop.permute.xlu1 %5045 }
 0x35d   : > { %v5088_v40 = vunpack.i.h.bf16 %v5086_v30  ;;  %v5087_v63 = vunpack.i.l.bf16 %v5086_v30  ;;  %v5048_v49 = vunpack.i.h.bf16 %v5046_v55  ;;  %v5047_v38 = vunpack.i.l.bf16 %v5046_v55  ;;  %v5061_v41 = vpop.permute.xlu0 %5060  ;;  %v8967_v30 = vld [vmem:[#allocation86_spill] sm:$0xff] }
 0x35e   : > { %v5063_v37 = vunpack.i.h.bf16 %v5061_v41  ;;  %v5062_v22 = vunpack.i.l.bf16 %v5061_v41 }
 0x35f   : > { %v7776_v29 = vsel %vm1710_vm3, %v3568_v14, %v5087_v63  ;;  %v7779_v18 = vsel %vm1710_vm3, %v3569_v52, %v5088_v40  ;;  %v3557_v45 = vsel %vm290_vm0, %v7541_v2, %v5048_v49  ;;  %v3556_v4 = vsel %vm290_vm0, %v7547_v15, %v5047_v38  ;;  %v8965_v52 = vld [vmem:[#allocation24_spill] sm:$0xff] }
 0x360   : > { %v7786_v32 = vsel %vm1710_vm3, %v3558_v8, %v5062_v22  ;;  %v7789_v53 = vsel %vm1710_vm3, %v3559_v21, %v5063_v37  ;;  %v7792_v36 = vsel %vm1710_vm3, %v3556_v4, %v5057_v44  ;;  %v7795_v16 = vsel %vm1710_vm3, %v3557_v45, %v5058_v48  ;;  %v8969_v37 = vld [vmem:[#allocation74_spill] sm:$0xff] }
 0x361   : > { %v3565_v2 = vsel %vm290_vm0, %v7545_v11, %v4988_v62  ;;  %v3564_v15 = vsel %vm290_vm0, %v7555_v51, %v4987_v61  ;;  %v4973_v8 = vunpack.i.h.bf16 %v7628_v9  ;;  %v5032_v61 = vunpack.i.l.bf16 %v7645_v47 }
 0x362   : > { %5265 = vrot.lane.b32.xlu2 %v7421_v39, %s5597_s28  ;;  %5260 = vrot.lane.b32.xlu1 %v7401_v20, %s5597_s28  ;;  %v3555_v39 = vsel %vm290_vm0, %v7543_v42, %v5003_v46  ;;  %v3554_v20 = vsel %vm290_vm0, %v7549_v19, %v5002_v23  ;;  %v4972_v42 = vunpack.i.l.bf16 %v7628_v9  ;;  %v8966_v9 = vld [vmem:[#allocation34_spill] sm:$0xff] }
 0x363   : > { %5285 = vrot.lane.b32.xlu0 %v7457_v58, %s5597_s28  ;;  %v3561_v14 = vsel %vm290_vm0, %v8966_v9, %v4973_v8  ;;  %v3570_v22 = vsel %vm290_vm0, %v8969_v37, %v5032_v61 }
 0x364   : > { %v5101_v33 = vpop.permute.xlu2 %5100  ;;  %v5051_v54 = vpop.permute.xlu1 %5050  ;;  %v3560_v55 = vsel %vm290_vm0, %v8967_v30, %v4972_v42  ;;  %v8973_v42 = vld [vmem:[#allocation52_spill] sm:$0xff] }
 0x365   : > { %v5103_v25 = vunpack.i.h.bf16 %v5101_v33  ;;  %v5102_v34 = vunpack.i.l.bf16 %v5101_v33  ;;  %v5053_v28 = vunpack.i.h.bf16 %v5051_v54  ;;  %v5052_v10 = vunpack.i.l.bf16 %v5051_v54  ;;  %v5076_v0 = vpop.permute.xlu0 %5075 }
 0x366   : > { %v5078_v58 = vunpack.i.h.bf16 %v5076_v0  ;;  %v5077_v12 = vunpack.i.l.bf16 %v5076_v0 }
 0x367   : > { %v7815_v11 = vsel %vm1743_vm4, %v7703_v1, %v5102_v34  ;;  %v7819_v51 = vsel %vm1743_vm4, %v7700_v35, %v5103_v25  ;;  %v3587_v50 = vsel %vm1710_vm3, %v3555_v39, %v5053_v28  ;;  %v3586_v21 = vsel %vm1710_vm3, %v3554_v20, %v5052_v10  ;;  %v8964_v35 = vld [vmem:[#allocation19_spill] sm:$0xff]  ;;  %v8972_v28 = vld [vmem:[#allocation28_spill] sm:$0xff] }
 0x368   : > { %v7826_v19 = vsel %vm1710_vm3, %v3564_v15, %v5077_v12  ;;  %v7829_v62 = vsel %vm1710_vm3, %v3565_v2, %v5078_v58  ;;  %v5033_v1 = vunpack.i.h.bf16 %v7645_v47  ;;  %v4993_v25 = vunpack.i.h.bf16 %v7635_v24 }
 0x369   : > { %v4992_v34 = vunpack.i.l.bf16 %v7635_v24  ;;  %v8974_v24 = vld [vmem:[#allocation53_spill] sm:$0xff] }
 0x36a   : > { %5280 = vrot.lane.b32.xlu2 %v7433_v5, %s5597_s28  ;;  %5275 = vrot.lane.b32.xlu1 %v8964_v35, %s5597_s28  ;;  %v8968_v5 = vld [vmem:[#allocation49_spill] sm:$0xff] }
 0x36b   : > { %5300 = vrot.lane.b32.xlu0 %v8965_v52, %s5597_s28  ;;  %v3571_v44 = vsel %vm290_vm0, %v8968_v5, %v5033_v1  ;;  %v3567_v1 = vsel %vm290_vm0, %v8973_v42, %v4993_v25  ;;  %v3566_v61 = vsel %vm290_vm0, %v8974_v24, %v4992_v34  ;;  %v8979_v42 = vld [vmem:[#allocation69_spill] sm:$0xff] }
 0x36c   : > { %v5116_v40 = vpop.permute.xlu2 %5115  ;;  %v5066_v63 = vpop.permute.xlu1 %5065 }
 0x36d   : > { %v5118_v49 = vunpack.i.h.bf16 %v5116_v40  ;;  %v5117_v38 = vunpack.i.l.bf16 %v5116_v40  ;;  %v5068_v47 = vunpack.i.h.bf16 %v5066_v63  ;;  %v5067_v41 = vunpack.i.l.bf16 %v5066_v63  ;;  %v5091_v48 = vpop.permute.xlu0 %5090 }
 0x36e   : > { %v5093_v45 = vunpack.i.h.bf16 %v5091_v48  ;;  %v5092_v4 = vunpack.i.l.bf16 %v5091_v48  ;;  %v2468_v48 = vld [vmem:[#allocation3 + $0xf1] sm:$0xff] }
 0x36f   : > { %v7849_v46 = vsel %vm1743_vm4, %v7747_v6, %v5117_v38  ;;  %v7853_v23 = vsel %vm1743_vm4, %v7744_v27, %v5118_v49  ;;  %v3593_v2 = vsel %vm1710_vm3, %v3561_v14, %v5068_v47  ;;  %v3592_v15 = vsel %vm1710_vm3, %v3560_v55, %v5067_v41  ;;  %v8970_v6 = vld [vmem:[#allocation20_spill] sm:$0xff]  ;;  %v8971_v27 = vld [vmem:[#allocation33_spill] sm:$0xff]  ;;  %v8976_v47 = vld [vmem:[#allocation50_spill] sm:$0xff] }
 0x370   : > { %v7858_v33 = vsel %vm1710_vm3, %v3570_v22, %v5092_v4  ;;  %v7861_v54 = vsel %vm1710_vm3, %v3571_v44, %v5093_v45  ;;  %v2469_v14 = vld [vmem:[#allocation3 + $0xf9] sm:$0xff]  ;;  %v8975_v49 = vld [vmem:[#allocation96_spill] sm:$0xff] }
 0x371   : > { %v5329_v5 = vpack.i.bf16 %v2469_v14, %v2468_v48  ;;  %v2471_v14 = vld [vmem:[#allocation3 + $0x111] sm:$0xff] }
 0x372   : > { %5295 = vrot.lane.b32.xlu2 %v8970_v6, %s5597_s28  ;;  %5290 = vrot.lane.b32.xlu1 %v8971_v27, %s5597_s28 }
 0x373   : > { %5315 = vrot.lane.b32.xlu0 %v8972_v28, %s5597_s28  ;;  %v2453_v28 = vld [vmem:[#allocation3 + $0x39] sm:$0xff] }
 0x374   : > { %v5131_v10 = vpop.permute.xlu2 %5130  ;;  %v5081_v0 = vpop.permute.xlu1 %5080 }
 0x375   : > { %v5133_v39 = vunpack.i.h.bf16 %v5131_v10  ;;  %v5132_v20 = vunpack.i.l.bf16 %v5131_v10  ;;  %v5083_v58 = vunpack.i.h.bf16 %v5081_v0  ;;  %v5082_v12 = vunpack.i.l.bf16 %v5081_v0  ;;  %v5106_v8 = vpop.permute.xlu0 %5105 }
 0x376   : > { %v5108_v35 = vunpack.i.h.bf16 %v5106_v8  ;;  %v5107_v9 = vunpack.i.l.bf16 %v5106_v8  ;;  %v2452_v8 = vld [vmem:[#allocation3 + $0x31] sm:$0xff] }
 0x377   : > { %v7876_v30 = vsel %vm1743_vm4, %v3586_v21, %v5132_v20  ;;  %v7879_v55 = vsel %vm1743_vm4, %v3587_v50, %v5133_v39  ;;  %v3599_v40 = vsel %vm1710_vm3, %v3567_v1, %v5083_v58  ;;  %v3598_v63 = vsel %vm1710_vm3, %v3566_v61, %v5082_v12  ;;  %v8977_v21 = vld [vmem:[#allocation32_spill] sm:$0xff]  ;;  %v8978_v50 = vld [vmem:[#allocation25_spill] sm:$0xff] }
 0x378   : > { %v7885_v38 = vsel %vm1743_vm4, %v8975_v49, %v5107_v9  ;;  %v7889_v41 = vsel %vm1743_vm4, %v8976_v47, %v5108_v35 }
 0x37a   : > { %5310 = vrot.lane.b32.xlu2 %v8977_v21, %s5597_s28  ;;  %5305 = vrot.lane.b32.xlu1 %v8978_v50, %s5597_s28 }
 0x37b   : > { %5330 = vrot.lane.b32.xlu0 %v5329_v5, %s5599_s30 }
 0x37c   : > { %v5146_v44 = vpop.permute.xlu2 %5145  ;;  %v5096_v37 = vpop.permute.xlu1 %5095 }
 0x37d   : > { %v5148_v22 = vunpack.i.h.bf16 %v5146_v44  ;;  %v5147_v45 = vunpack.i.l.bf16 %v5146_v44  ;;  %v5098_v4 = vunpack.i.h.bf16 %v5096_v37  ;;  %v5097_v25 = vunpack.i.l.bf16 %v5096_v37  ;;  %v5121_v34 = vpop.permute.xlu0 %5120  ;;  %v2470_v37 = vld [vmem:[#allocation3 + $0x109] sm:$0xff] }
 0x37e   : > { %v5123_v6 = vunpack.i.h.bf16 %v5121_v34  ;;  %v5122_v27 = vunpack.i.l.bf16 %v5121_v34  ;;  %v2484_v34 = vld [vmem:[#allocation3 + $0x32] sm:$0xff] }
 0x37f   : > { %v7897_v10 = vsel %vm1743_vm4, %v3592_v15, %v5147_v45  ;;  %v7900_v0 = vsel %vm1743_vm4, %v3593_v2, %v5148_v22  ;;  %v3605_v39 = vsel %vm1743_vm4, %v7672_v59, %v5098_v4  ;;  %v3604_v20 = vsel %vm1743_vm4, %v7675_v17, %v5097_v25  ;;  %v8980_v2 = vld [vmem:[#allocation29_spill] sm:$0xff]  ;;  %v8981_v22 = vld [vmem:[#allocation27_spill] sm:$0xff] }
 0x380   : > { %v7908_v58 = vsel %vm1743_vm4, %v7666_v56, %v5122_v27  ;;  %v7912_v12 = vsel %vm1743_vm4, %v7669_v3, %v5123_v6  ;;  %v5344_v15 = vpack.i.bf16 %v2453_v28, %v2452_v8  ;;  %v2455_v28 = vld [vmem:[#allocation3 + $0x51] sm:$0xff] }
 0x382   : > { %5325 = vrot.lane.b32.xlu2 %v8979_v42, %s5598_s29  ;;  %5320 = vrot.lane.b32.xlu1 %v8980_v2, %s5597_s28 }
 0x383   : > { %5345 = vrot.lane.b32.xlu0 %v5344_v15, %s5599_s30 }
 0x384   : > { %v5161_v59 = vpop.permute.xlu2 %5160  ;;  %v5111_v17 = vpop.permute.xlu1 %5110 }
 0x385   : > { %v5163_v1 = vunpack.i.h.bf16 %v5161_v59  ;;  %v5162_v24 = vunpack.i.l.bf16 %v5161_v59  ;;  %v5113_v56 = vunpack.i.h.bf16 %v5111_v17  ;;  %v5112_v61 = vunpack.i.l.bf16 %v5111_v17  ;;  %v5136_v35 = vpop.permute.xlu0 %5135 }
 0x386   : > { %v5138_v9 = vunpack.i.h.bf16 %v5136_v35  ;;  %v5137_v3 = vunpack.i.l.bf16 %v5136_v35 }
 0x387   : > { %v7920_v49 = vsel %vm1743_vm4, %v3598_v63, %v5162_v24  ;;  %v7923_v47 = vsel %vm1743_vm4, %v3599_v40, %v5163_v1  ;;  %v3611_v48 = vsel %vm1743_vm4, %v7711_v57, %v5113_v56  ;;  %v3610_v5 = vsel %vm1743_vm4, %v7708_v26, %v5112_v61 }
 0x388   : > { %v7931_v21 = vsel %vm1743_vm4, %v7792_v36, %v5137_v3  ;;  %v7935_v44 = vsel %vm1743_vm4, %v7795_v16, %v5138_v9  ;;  %v5359_v63 = vpack.i.bf16 %v2471_v14, %v2470_v37  ;;  %v2485_v16 = vld [vmem:[#allocation3 + $0x3a] sm:$0xff]  ;;  %v2423_v9 = vld [vmem:[#allocation3 + $0x50] sm:$0xff] }
 0x389   : > { %v5349_v17 = vpack.i.bf16 %v2485_v16, %v2484_v34  ;;  %v2473_v14 = vld [vmem:[#allocation3 + $0x129] sm:$0xff] }
 0x38a   : > { %5340 = vrot.lane.b32.xlu2 %v8981_v22, %s5598_s29  ;;  %5335 = vrot.lane.b32.xlu1 %v8965_v52, %s5600_s6 }
 0x38b   : > { %5360 = vrot.lane.b32.xlu0 %v5359_v63, %s5599_s30 }
 0x38c   : > { %v5176_v57 = vpop.permute.xlu2 %5175  ;;  %v5126_v26 = vpop.permute.xlu1 %5125 }
 0x38d   : > { %v5178_v40 = vunpack.i.h.bf16 %v5176_v57  ;;  %v5177_v45 = vunpack.i.l.bf16 %v5176_v57  ;;  %v5128_v36 = vunpack.i.h.bf16 %v5126_v26  ;;  %v5127_v4 = vunpack.i.l.bf16 %v5126_v26  ;;  %v5151_v25 = vpop.permute.xlu0 %5150  ;;  %v2422_v26 = vld [vmem:[#allocation3 + $0x48] sm:$0xff] }
 0x38e   : > { %v5153_v6 = vunpack.i.h.bf16 %v5151_v25  ;;  %v5152_v27 = vunpack.i.l.bf16 %v5151_v25 }
 0x38f   : > { %v7943_v8 = vsel %vm1776_vm5, %v3604_v20, %v5177_v45  ;;  %v7946_v15 = vsel %vm1776_vm5, %v3605_v39, %v5178_v40  ;;  %v3617_v52 = vsel %vm1743_vm4, %v7755_v13, %v5128_v36  ;;  %v3616_v42 = vsel %vm1743_vm4, %v7752_v60, %v5127_v4  ;;  %v2454_v20 = vld [vmem:[#allocation3 + $0x49] sm:$0xff]  ;;  %v2472_v36 = vld [vmem:[#allocation3 + $0x121] sm:$0xff] }
 0x390   : > { %v7954_v2 = vsel %vm1743_vm4, %v7738_v43, %v5152_v27  ;;  %v7958_v59 = vsel %vm1743_vm4, %v7741_v31, %v5153_v6  ;;  %v5374_v1 = vpack.i.bf16 %v2455_v28, %v2454_v20  ;;  %v8982_v39 = vld [vmem:[#allocation56_spill] sm:$0xff]  ;;  %v5389_v4 = vpack.i.bf16 %v2473_v14, %v2472_v36 }
 0x391   : > { %v2486_v6 = vld [vmem:[#allocation3 + $0x4a] sm:$0xff] }
 0x392   : > { %5355 = vrot.lane.b32.xlu2 %v8982_v39, %s5598_s29  ;;  %5350 = vrot.lane.b32.xlu1 %v5349_v17, %s5600_s6  ;;  %v2457_v17 = vld [vmem:[#allocation3 + $0x69] sm:$0xff] }
 0x393   : > { %5375 = vrot.lane.b32.xlu0 %v5374_v1, %s5599_s30 }
 0x394   : > { %v5191_v13 = vpop.permute.xlu2 %5190  ;;  %v5141_v60 = vpop.permute.xlu1 %5140 }
 0x395   : > { %v5193_v24 = vunpack.i.h.bf16 %v5191_v13  ;;  %v5192_v56 = vunpack.i.l.bf16 %v5191_v13  ;;  %v5143_v43 = vunpack.i.h.bf16 %v5141_v60  ;;  %v5142_v61 = vunpack.i.l.bf16 %v5141_v60  ;;  %v5166_v35 = vpop.permute.xlu0 %5165 }
 0x396   : > { %v5168_v31 = vunpack.i.h.bf16 %v5166_v35  ;;  %v5167_v3 = vunpack.i.l.bf16 %v5166_v35 }
 0x397   : > { %v7965_v37 = vsel %vm1776_vm5, %v3610_v5, %v5192_v56  ;;  %v7968_v63 = vsel %vm1776_vm5, %v3611_v48, %v5193_v24  ;;  %v3623_v22 = vsel %vm1743_vm4, %v7789_v53, %v5143_v43  ;;  %v3622_v57 = vsel %vm1743_vm4, %v7786_v32, %v5142_v61 }
 0x398   : > { %v7976_v40 = vsel %vm1743_vm4, %v7776_v29, %v5167_v3  ;;  %v7980_v45 = vsel %vm1743_vm4, %v7779_v18, %v5168_v31  ;;  %v5369_v5 = vpack.i.bf16 %v2423_v9, %v2422_v26  ;;  %v2487_v18 = vld [vmem:[#allocation3 + $0x52] sm:$0xff]  ;;  %v2504_v31 = vld [vmem:[#allocation3 + $0x122] sm:$0xff] }
 0x399   : > { %v5379_v24 = vpack.i.bf16 %v2487_v18, %v2486_v6  ;;  %v2475_v26 = vld [vmem:[#allocation3 + $0x141] sm:$0xff] }
 0x39a   : > { %5370 = vrot.lane.b32.xlu2 %v5369_v5, %s5598_s29  ;;  %5365 = vrot.lane.b32.xlu1 %v8978_v50, %s5600_s6 }
 0x39b   : > { %5390 = vrot.lane.b32.xlu0 %v5389_v4, %s5599_s30 }
 0x39c   : > { %v5206_v32 = vpop.permute.xlu2 %5205  ;;  %v5156_v53 = vpop.permute.xlu1 %5155 }
 0x39d   : > { %v5208_v48 = vunpack.i.h.bf16 %v5206_v32  ;;  %v5207_v25 = vunpack.i.l.bf16 %v5206_v32  ;;  %v5158_v29 = vunpack.i.h.bf16 %v5156_v53  ;;  %v5157_v34 = vunpack.i.l.bf16 %v5156_v53  ;;  %v5181_v16 = vpop.permute.xlu0 %5180 }
 0x39e   : > { %v5183_v27 = vunpack.i.h.bf16 %v5181_v16  ;;  %v5182_v28 = vunpack.i.l.bf16 %v5181_v16 }
 0x39f   : > { %v7987_v20 = vsel %vm1776_vm5, %v3616_v42, %v5207_v25  ;;  %v7990_v1 = vsel %vm1776_vm5, %v3617_v52, %v5208_v48  ;;  %v3629_v50 = vsel %vm1743_vm4, %v7829_v62, %v5158_v29  ;;  %v3628_v39 = vsel %vm1743_vm4, %v7826_v19, %v5157_v34  ;;  %v2456_v42 = vld [vmem:[#allocation3 + $0x61] sm:$0xff] }
 0x3a0   : > { %v7998_v13 = vsel %vm1776_vm5, %v7815_v11, %v5182_v28  ;;  %v8002_v60 = vsel %vm1776_vm5, %v7819_v51, %v5183_v27  ;;  %v5404_v56 = vpack.i.bf16 %v2457_v17, %v2456_v42  ;;  %v8983_v52 = vld [vmem:[#allocation35_spill] sm:$0xff] }
 0x3a1   : > { %v2505_v51 = vld [vmem:[#allocation3 + $0x12a] sm:$0xff]  ;;  %v2488_v27 = vld [vmem:[#allocation3 + $0x62] sm:$0xff] }
 0x3a2   : > { %5385 = vrot.lane.b32.xlu2 %v8983_v52, %s5598_s29  ;;  %5380 = vrot.lane.b32.xlu1 %v5379_v24, %s5600_s6  ;;  %v5394_v25 = vpack.i.bf16 %v2505_v51, %v2504_v31  ;;  %v2459_v24 = vld [vmem:[#allocation3 + $0x81] sm:$0xff] }
 0x3a3   : > { %5405 = vrot.lane.b32.xlu0 %v5404_v56, %s5599_s30 }
 0x3a4   : > { %v5221_v62 = vpop.permute.xlu2 %5220  ;;  %v5171_v19 = vpop.permute.xlu1 %5170 }
 0x3a5   : > { %v5223_v43 = vunpack.i.h.bf16 %v5221_v62  ;;  %v5222_v61 = vunpack.i.l.bf16 %v5221_v62  ;;  %v5173_v11 = vunpack.i.h.bf16 %v5171_v19  ;;  %v5172_v35 = vunpack.i.l.bf16 %v5171_v19  ;;  %v5196_v9 = vpop.permute.xlu0 %5195 }
 0x3a6   : > { %v5198_v3 = vunpack.i.h.bf16 %v5196_v9  ;;  %v5197_v14 = vunpack.i.l.bf16 %v5196_v9 }
 0x3a7   : > { %v8009_v5 = vsel %vm1776_vm5, %v3622_v57, %v5222_v61  ;;  %v8012_v36 = vsel %vm1776_vm5, %v3623_v22, %v5223_v43  ;;  %v3635_v4 = vsel %vm1743_vm4, %v7861_v54, %v5173_v11  ;;  %v3634_v32 = vsel %vm1743_vm4, %v7858_v33, %v5172_v35  ;;  %v2474_v57 = vld [vmem:[#allocation3 + $0x139] sm:$0xff] }
 0x3a8   : > { %v8020_v53 = vsel %vm1776_vm5, %v7849_v46, %v5197_v14  ;;  %v8024_v48 = vsel %vm1776_vm5, %v7853_v23, %v5198_v3  ;;  %v5419_v29 = vpack.i.bf16 %v2475_v26, %v2474_v57  ;;  %v8984_v22 = vld [vmem:[#allocation26_spill] sm:$0xff]  ;;  %v2489_v23 = vld [vmem:[#allocation3 + $0x6a] sm:$0xff] }
 0x3a9   : > { %v5409_v61 = vpack.i.bf16 %v2489_v23, %v2488_v27  ;;  %v2427_v3 = vld [vmem:[#allocation3 + $0x80] sm:$0xff] }
 0x3aa   : > { %5400 = vrot.lane.b32.xlu2 %v8984_v22, %s5598_s29  ;;  %5395 = vrot.lane.b32.xlu1 %v5394_v25, %s5600_s6  ;;  %v2507_v14 = vld [vmem:[#allocation3 + $0x142] sm:$0xff]  ;;  %v2477_v57 = vld [vmem:[#allocation3 + $0x159] sm:$0xff] }
 0x3ab   : > { %5420 = vrot.lane.b32.xlu0 %v5419_v29, %s5599_s30 }
 0x3ac   : > { %v5236_v54 = vpop.permute.xlu2 %5235  ;;  %v5186_v33 = vpop.permute.xlu1 %5185 }
 0x3ad   : > { %v5238_v34 = vunpack.i.h.bf16 %v5236_v54  ;;  %v5237_v16 = vunpack.i.l.bf16 %v5236_v54  ;;  %v5188_v46 = vunpack.i.h.bf16 %v5186_v33  ;;  %v5187_v6 = vunpack.i.l.bf16 %v5186_v33  ;;  %v5211_v18 = vpop.permute.xlu0 %5210 }
 0x3ae   : > { %v5213_v28 = vunpack.i.h.bf16 %v5211_v18  ;;  %v5212_v17 = vunpack.i.l.bf16 %v5211_v18  ;;  %v2476_v18 = vld [vmem:[#allocation3 + $0x151] sm:$0xff] }
 0x3af   : > { %v8031_v42 = vsel %vm1776_vm5, %v3628_v39, %v5237_v16  ;;  %v8034_v56 = vsel %vm1776_vm5, %v3629_v50, %v5238_v34  ;;  %v3640_v52 = vsel %vm1776_vm5, %v7885_v38, %v5187_v6  ;;  %v3641_v62 = vsel %vm1776_vm5, %v7889_v41, %v5188_v46  ;;  %v2458_v39 = vld [vmem:[#allocation3 + $0x79] sm:$0xff] }
 0x3b0   : > { %v8042_v19 = vsel %vm1776_vm5, %v7876_v30, %v5212_v17  ;;  %v8046_v43 = vsel %vm1776_vm5, %v7879_v55, %v5213_v28  ;;  %v5434_v11 = vpack.i.bf16 %v2459_v24, %v2458_v39  ;;  %v8985_v50 = vld [vmem:[#allocation58_spill] sm:$0xff]  ;;  %v2426_v34 = vld [vmem:[#allocation3 + $0x78] sm:$0xff] }
 0x3b1   : > { %v2506_v55 = vld [vmem:[#allocation3 + $0x13a] sm:$0xff]  ;;  %v2491_v17 = vld [vmem:[#allocation3 + $0x82] sm:$0xff] }
 0x3b2   : > { %5415 = vrot.lane.b32.xlu2 %v8985_v50, %s5598_s29  ;;  %5410 = vrot.lane.b32.xlu1 %v5409_v61, %s5600_s6  ;;  %v5424_v6 = vpack.i.bf16 %v2507_v14, %v2506_v55  ;;  %v2490_v28 = vld [vmem:[#allocation3 + $0x7a] sm:$0xff]  ;;  %v2508_v14 = vld [vmem:[#allocation3 + $0x152] sm:$0xff] }
 0x3b3   : > { %5435 = vrot.lane.b32.xlu0 %v5434_v11, %s5599_s30  ;;  %v2461_v61 = vld [vmem:[#allocation3 + $0x99] sm:$0xff] }
 0x3b4   : > { %v5251_v38 = vpop.permute.xlu2 %5250  ;;  %v5201_v41 = vpop.permute.xlu1 %5200 }
 0x3b5   : > { %v5253_v35 = vunpack.i.h.bf16 %v5251_v38  ;;  %v5252_v9 = vunpack.i.l.bf16 %v5251_v38  ;;  %v5203_v30 = vunpack.i.h.bf16 %v5201_v41  ;;  %v5202_v31 = vunpack.i.l.bf16 %v5201_v41  ;;  %v5226_v51 = vpop.permute.xlu0 %5225 }
 0x3b6   : > { %v5228_v26 = vunpack.i.h.bf16 %v5226_v51  ;;  %v5227_v25 = vunpack.i.l.bf16 %v5226_v51  ;;  %v5439_v41 = vpack.i.bf16 %v2491_v17, %v2490_v28  ;;  %v2447_v17 = vld [vmem:[#allocation3 + $0x170] sm:$0xff] }
 0x3b7   : > { %v8053_v29 = vsel %vm1776_vm5, %v3634_v32, %v5252_v9  ;;  %v8056_v22 = vsel %vm1776_vm5, %v3635_v4, %v5253_v35  ;;  %v3646_v54 = vsel %vm1776_vm5, %v7908_v58, %v5202_v31  ;;  %v3647_v33 = vsel %vm1776_vm5, %v7912_v12, %v5203_v30  ;;  %v2460_v35 = vld [vmem:[#allocation3 + $0x91] sm:$0xff]  ;;  %v8986_v30 = vld [vmem:[#allocation55_spill] sm:$0xff] }
 0x3b8   : > { %v8064_v16 = vsel %vm1776_vm5, %v7897_v10, %v5227_v25  ;;  %v8068_v46 = vsel %vm1776_vm5, %v7900_v0, %v5228_v26  ;;  %v5429_v32 = vpack.i.bf16 %v2427_v3, %v2426_v34  ;;  %v5449_v4 = vpack.i.bf16 %v2477_v57, %v2476_v18  ;;  %v2509_v26 = vld [vmem:[#allocation3 + $0x15a] sm:$0xff]  ;;  %v2479_v25 = vld [vmem:[#allocation3 + $0x171] sm:$0xff] }
 0x3b9   : > { %v5464_v9 = vpack.i.bf16 %v2461_v61, %v2460_v35  ;;  %v2428_v18 = vld [vmem:[#allocation3 + $0x90] sm:$0xff] }
 0x3ba   : > { %5430 = vrot.lane.b32.xlu2 %v5429_v32, %s5598_s29  ;;  %5425 = vrot.lane.b32.xlu1 %v5424_v6, %s5600_s6 }
 0x3bb   : > { %5450 = vrot.lane.b32.xlu0 %v5449_v4, %s5599_s30 }
 0x3bc   : > { %v5266_v58 = vpop.permute.xlu2 %5265  ;;  %v8073_v12 = vpop.permute.xlu1 %5215 }
 0x3bd   : > { %v5268_v27 = vunpack.i.h.bf16 %v5266_v58  ;;  %v5267_v10 = vunpack.i.l.bf16 %v5266_v58  ;;  %v5241_v23 = vpop.permute.xlu0 %5240  ;;  %v5454_v58 = vpack.i.bf16 %v2509_v26, %v2508_v14  ;;  %v2510_v14 = vld [vmem:[#allocation3 + $0x16a] sm:$0xff]  ;;  %v2511_v26 = vld [vmem:[#allocation3 + $0x172] sm:$0xff] }
 0x3be   : > { %v5243_v0 = vunpack.i.h.bf16 %v5241_v23  ;;  %v5242_v24 = vunpack.i.l.bf16 %v5241_v23 }
 0x3bf   : > { %v8076_v39 = vsel %vm1809_vm6, %v3640_v52, %v5267_v10  ;;  %v8079_v11 = vsel %vm1809_vm6, %v3641_v62, %v5268_v27  ;;  %v2478_v27 = vld [vmem:[#allocation3 + $0x169] sm:$0xff] }
 0x3c0   : > { %v8083_v50 = vsel %vm1776_vm5, %v7920_v49, %v5242_v24  ;;  %v8087_v38 = vsel %vm1776_vm5, %v7923_v47, %v5243_v0  ;;  %v2429_v47 = vld [vmem:[#allocation3 + $0x98] sm:$0xff]  ;;  %v5479_v10 = vpack.i.bf16 %v2479_v25, %v2478_v27 }
 0x3c1   : > { %v5459_v4 = vpack.i.bf16 %v2429_v47, %v2428_v18  ;;  %v2493_v0 = vld [vmem:[#allocation3 + $0x9a] sm:$0xff] }
 0x3c2   : > { %5445 = vrot.lane.b32.xlu2 %v8986_v30, %s5598_s29  ;;  %5440 = vrot.lane.b32.xlu1 %v5439_v41, %s5600_s6  ;;  %v2463_v41 = vld [vmem:[#allocation3 + $0xb1] sm:$0xff]  ;;  %v2446_v30 = vld [vmem:[#allocation3 + $0x168] sm:$0xff] }
 0x3c3   : > { %5465 = vrot.lane.b32.xlu0 %v5464_v9, %s5599_s30 }
 0x3c4   : > { %v5281_v52 = vpop.permute.xlu2 %5280  ;;  %v5231_v62 = vpop.permute.xlu1 %5230 }
 0x3c5   : > { %v5283_v31 = vunpack.i.h.bf16 %v5281_v52  ;;  %v5282_v51 = vunpack.i.l.bf16 %v5281_v52  ;;  %v5233_v49 = vunpack.i.h.bf16 %v5231_v62  ;;  %v5232_v3 = vunpack.i.l.bf16 %v5231_v62  ;;  %v8093_v55 = vpop.permute.xlu0 %5255 }
 0x3c7   : > { %v8096_v57 = vsel %vm1809_vm6, %v3646_v54, %v5282_v51  ;;  %v8099_v34 = vsel %vm1809_vm6, %v3647_v33, %v5283_v31  ;;  %v8103_v32 = vsel %vm1776_vm5, %v7954_v2, %v5232_v3  ;;  %v8107_v6 = vsel %vm1776_vm5, %v7958_v59, %v5233_v49  ;;  %v2492_v59 = vld [vmem:[#allocation3 + $0x92] sm:$0xff]  ;;  %v2462_v49 = vld [vmem:[#allocation3 + $0xa9] sm:$0xff] }
 0x3c8   : > { %v5474_v31 = vpack.i.bf16 %v2447_v17, %v2446_v30  ;;  %v5469_v51 = vpack.i.bf16 %v2493_v0, %v2492_v59  ;;  %v5494_v3 = vpack.i.bf16 %v2463_v41, %v2462_v49  ;;  %v2433_v49 = vld [vmem:[#allocation3 + $0xc8] sm:$0xff] }
 0x3ca   : > { %5460 = vrot.lane.b32.xlu2 %v5459_v4, %s5598_s29  ;;  %5455 = vrot.lane.b32.xlu1 %v5454_v58, %s5600_s6  ;;  %v2430_v4 = vld [vmem:[#allocation3 + $0xa8] sm:$0xff] }
 0x3cb   : > { %5480 = vrot.lane.b32.xlu0 %v5479_v10, %s5599_s30  ;;  %v2449_v58 = vld [vmem:[#allocation3 + $0x188] sm:$0xff] }
 0x3cc   : > { %v8112_v54 = vpop.permute.xlu2 %5295  ;;  %v5246_v33 = vpop.permute.xlu1 %5245 }
 0x3cd   : > { %v5248_v2 = vunpack.i.h.bf16 %v5246_v33  ;;  %v5247_v23 = vunpack.i.l.bf16 %v5246_v33  ;;  %v5271_v28 = vpop.permute.xlu0 %5270 }
 0x3ce   : > { %v5273_v24 = vunpack.i.h.bf16 %v5271_v28  ;;  %v5272_v61 = vunpack.i.l.bf16 %v5271_v28  ;;  %v2448_v28 = vld [vmem:[#allocation3 + $0x180] sm:$0xff] }
 0x3cf   : > { %v8116_v35 = vsel %vm1776_vm5, %v7976_v40, %v5247_v23  ;;  %v8120_v9 = vsel %vm1776_vm5, %v7980_v45, %v5248_v2  ;;  %v5484_v23 = vpack.i.bf16 %v2511_v26, %v2510_v14  ;;  %v5509_v59 = vpack.i.bf16 %v2449_v58, %v2448_v28  ;;  %v4190_v14 = vld [vmem:[%s8594_s3] sm:$0xff]  ;;  %v2512_v58 = vld [vmem:[#allocation3 + $0x182] sm:$0xff] }
 0x3d0   : > { %v8124_v52 = vsel %vm1809_vm6, %v7965_v37, %v5272_v61  ;;  %v8128_v62 = vsel %vm1809_vm6, %v7968_v63, %v5273_v24  ;;  %v2431_v37 = vld [vmem:[#allocation3 + $0xb0] sm:$0xff]  ;;  %v3816_v63 = vld [vmem:[%s8594_s3 + $0x10] sm:$0x3] }
 0x3d1   : > { %v3830_v27 = vunpack.c.l.b16 %v3816_v63  ;;  %v5489_v10 = vpack.i.bf16 %v2431_v37, %v2430_v4 }
 0x3d2   : > { %5475 = vrot.lane.b32.xlu2 %v5474_v31, %s5598_s29  ;;  %5470 = vrot.lane.b32.xlu1 %v5469_v51, %s5600_s6  ;;  %v2494_v31 = vld [vmem:[#allocation3 + $0xaa] sm:$0xff]  ;;  %v2495_v51 = vld [vmem:[#allocation3 + $0xb2] sm:$0xff] }
 0x3d3   : > { %5495 = vrot.lane.b32.xlu0 %v5494_v3, %s5599_s30  ;;  %v3833_v17 = vpack.c.b16 %v3830_v27, %v3830_v27  ;;  %v5499_v63 = vpack.i.bf16 %v2495_v51, %v2494_v31  ;;  %v2513_v27 = vld [vmem:[#allocation3 + $0x18a] sm:$0xff] }
 0x3d4   : > { %v8133_v40 = vpop.permute.xlu2 %5310  ;;  %v8135_v45 = vpop.permute.xlu1 %5260  ;;  %v2497_v31 = vld [vmem:[#allocation3 + $0xca] sm:$0xff] }
 0x3d5   : > { %v5286_v47 = vpop.permute.xlu0 %5285  ;;  %v3885_v0 = vsel %vm2030_vm7, %v3833_v17, 0  ;;  %v2465_v51 = vld [vmem:[#allocation3 + $0xc9] sm:$0xff] }
 0x3d6   : > { %v5288_v25 = vunpack.i.h.bf16 %v5286_v47  ;;  %v5287_v18 = vunpack.i.l.bf16 %v5286_v47  ;;  %4274 = vmatpush.bf16.msra.mxu3 %v3885_v0  ;;  %3892 = vmatpush.bf16.msra.mxu1 %v3885_v0  ;;  %v2432_v47 = vld [vmem:[#allocation3 + $0xc0] sm:$0xff] }
 0x3d7   : > { %v5524_v26 = vpack.i.bf16 %v2433_v49, %v2432_v47 }
 0x3d8   : > { %v8142_v33 = vsel %vm1809_vm6, %v7987_v20, %v5287_v18  ;;  %v8146_v2 = vsel %vm1809_vm6, %v7990_v1, %v5288_v25  ;;  %v4191_v20 = vld [vmem:[%s8594_s3 + $0x8] sm:$0xff] }
 0x3da   : > { %5490 = vrot.lane.b32.xlu2 %v5489_v10, %s5598_s29  ;;  %5485 = vrot.lane.b32.xlu1 %v5484_v23, %s5600_s6 }
 0x3db   : > { %5510 = vrot.lane.b32.xlu0 %v5509_v59, %s5598_s29  ;;  %4275 = vmatpush.bf16.msra.mxu3 %v4191_v20 }
 0x3dc   : > { %v8155_v24 = vpop.permute.xlu2 %5325  ;;  %v5276_v1 = vpop.permute.xlu1 %5275  ;;  %3893 = vmatpush.bf16.msra.mxu1 %v4191_v20  ;;  %v5519_v20 = vpack.i.bf16 %v2513_v27, %v2512_v58 }
 0x3dd   : > { %v5278_v61 = vunpack.i.h.bf16 %v5276_v1  ;;  %v5277_v41 = vunpack.i.l.bf16 %v5276_v1  ;;  %v8157_v30 = vpop.permute.xlu0 %5300  ;;  %v2514_v1 = vld [vmem:[#allocation3 + $0x19a] sm:$0xff] }
 0x3df   : > { %v8161_v3 = vsel %vm1809_vm6, %v8020_v53, %v5277_v41  ;;  %v8165_v37 = vsel %vm1809_vm6, %v8024_v48, %v5278_v61  ;;  %4276 = vmatpush.bf16.msra.mxu3 %v4190_v14  ;;  %v2515_v61 = vld [vmem:[#allocation3 + $0x1a2] sm:$0xff] }
 0x3e0   : > { %3894 = vmatpush.bf16.msra.mxu1 %v4190_v14  ;;  %v2496_v41 = vld [vmem:[#allocation3 + $0xc2] sm:$0xff]  ;;  %v5554_v49 = vpack.i.bf16 %v2515_v61, %v2514_v1  ;;  %v5218_v61 = vunpack.i.h.bf16 %v8073_v12 }
 0x3e1   : > { %v2483_v14 = vld [vmem:[#allocation3 + $0x1a1] sm:$0xff] }
 0x3e2   : > { %5505 = vrot.lane.b32.xlu2 %v5484_v23, %s5597_s28  ;;  %5500 = vrot.lane.b32.xlu1 %v5499_v63, %s5600_s6  ;;  %v5534_v63 = vpack.i.bf16 %v2497_v31, %v2496_v41  ;;  %v2499_v1 = vld [vmem:[#allocation3 + $0xe2] sm:$0xff]  ;;  %v5217_v41 = vunpack.i.l.bf16 %v8073_v12 }
 0x3e3   : > { %5525 = vrot.lane.b32.xlu0 %v5524_v26, %s5598_s29  ;;  %v2450_v26 = vld [vmem:[#allocation3 + $0x198] sm:$0xff] }
 0x3e4   : > { %v8173_v53 = vpop.permute.xlu2 %5340  ;;  %v5291_v48 = vpop.permute.xlu1 %5290  ;;  %v3652_v12 = vsel %vm1776_vm5, %v7931_v21, %v5217_v41  ;;  %v2434_v41 = vld [vmem:[#allocation3 + $0xd8] sm:$0xff] }
 0x3e5   : > { %v5293_v25 = vunpack.i.h.bf16 %v5291_v48  ;;  %v5292_v18 = vunpack.i.l.bf16 %v5291_v48  ;;  %v5316_v4 = vpop.permute.xlu0 %5315  ;;  %v2451_v48 = vld [vmem:[#allocation3 + $0x1a0] sm:$0xff] }
 0x3e6   : > { %v5318_v10 = vunpack.i.h.bf16 %v5316_v4  ;;  %v5317_v28 = vunpack.i.l.bf16 %v5316_v4 }
 0x3e7   : > { %v8177_v17 = vsel %vm1809_vm6, %v8042_v19, %v5292_v18  ;;  %v8181_v23 = vsel %vm1809_vm6, %v8046_v43, %v5293_v25 }
 0x3e8   : > { %v8185_v59 = vsel %vm1809_vm6, %v8031_v42, %v5317_v28  ;;  %v8189_v0 = vsel %vm1809_vm6, %v8034_v56, %v5318_v10  ;;  %v2464_v56 = vld [vmem:[#allocation3 + $0xc1] sm:$0xff]  ;;  %v5544_v28 = vpack.i.bf16 %v2451_v48, %v2450_v26 }
 0x3e9   : > { %v5529_v47 = vpack.i.bf16 %v2465_v51, %v2464_v56  ;;  %v5298_v56 = vunpack.i.h.bf16 %v8112_v54 }
 0x3ea   : > { %5520 = vrot.lane.b32.xlu2 %v5519_v20, %s5600_s6  ;;  %5515 = vrot.lane.b32.xlu1 %v7723_v7, %s5599_s30  ;;  %v2482_v7 = vld [vmem:[#allocation3 + $0x199] sm:$0xff] }
 0x3eb   : > { %5540 = vrot.lane.b32.xlu0 %v5519_v20, %s5597_s28  ;;  %v5549_v10 = vpack.i.bf16 %v2483_v14, %v2482_v7  ;;  %v2498_v20 = vld [vmem:[#allocation3 + $0xda] sm:$0xff]  ;;  %s8430_s28 = scalar_lea.vmem %s8596_s5, %s4187_s25 }
 0x3ec   : > { %v8195_v19 = vpop.permute.xlu2 %5355  ;;  %v8197_v43 = vpop.permute.xlu1 %5305  ;;  %v5569_v7 = vpack.i.bf16 %v2499_v1, %v2498_v20  ;;  %v2466_v1 = vld [vmem:[#allocation3 + $0xd9] sm:$0xff] }
 0x3ed   : > { %v5331_v42 = vpop.permute.xlu0 %5330 }
 0x3ee   : > { %v5333_v14 = vunpack.i.h.bf16 %v5331_v42  ;;  %v5332_v26 = vunpack.i.l.bf16 %v5331_v42  ;;  %v2467_v42 = vld [vmem:[#allocation3 + $0xe1] sm:$0xff] }
 0x3f2   : > { %5535 = vrot.lane.b32.xlu2 %v5534_v63, %s5600_s6  ;;  %5530 = vrot.lane.b32.xlu1 %v5529_v47, %s5599_s30  ;;  %v5328_v63 = vunpack.i.h.bf16 %v8155_v24  ;;  %v5327_v47 = vunpack.i.l.bf16 %v8155_v24 }
 0x3f3   : > { %5555 = vrot.lane.b32.xlu0 %v5554_v49, %s5600_s6  ;;  %v5297_v49 = vunpack.i.l.bf16 %v8112_v54 }
 0x3f4   : > { %v8202_v25 = vpop.permute.xlu2 %5370  ;;  %v5321_v18 = vpop.permute.xlu1 %5320 }
 0x3f5   : > { %v5323_v4 = vunpack.i.h.bf16 %v5321_v18  ;;  %v5322_v58 = vunpack.i.l.bf16 %v5321_v18  ;;  %v5346_v27 = vpop.permute.xlu0 %5345 }
 0x3f7   : > { %v8208_v31 = vsel %vm1809_vm6, %v8083_v50, %v5322_v58  ;;  %v8212_v51 = vsel %vm1809_vm6, %v8087_v38, %v5323_v4  ;;  %v3653_v50 = vsel %vm1776_vm5, %v7935_v44, %v5218_v61  ;;  %v3684_v38 = vsel %vm1809_vm6, %v3652_v12, %v5297_v49 }
 0x3f8   : > { %v3685_v54 = vsel %vm1809_vm6, %v3653_v50, %v5298_v56  ;;  %v3716_v18 = vsel %vm1842_vm8, %v3684_v38, %v5327_v47  ;;  %v5564_v61 = vpack.i.bf16 %v2467_v42, %v2466_v1  ;;  %v5257_v47 = vunpack.i.l.bf16 %v8093_v55 }
 0x3f9   : > { %v3717_v4 = vsel %vm1842_vm8, %v3685_v54, %v5328_v63  ;;  %v3748_v44 = vsel %vm1875_vm9, %v3716_v18, %v5332_v26  ;;  %v5343_v50 = vunpack.i.h.bf16 %v8173_v53  ;;  %v5342_v38 = vunpack.i.l.bf16 %v8173_v53 }
 0x3fa   : > { %5550 = vrot.lane.b32.xlu2 %v5549_v10, %s5599_s30  ;;  %5545 = vrot.lane.b32.xlu1 %v5544_v28, %s5598_s29  ;;  %v2435_v28 = vld [vmem:[#allocation3 + $0xe0] sm:$0xff]  ;;  %v3749_v20 = vsel %vm1875_vm9, %v3717_v4, %v5333_v14  ;;  %v5348_v26 = vunpack.i.h.bf16 %v5346_v27  ;;  %v5347_v54 = vunpack.i.l.bf16 %v5346_v27  ;;  %v3668_v14 = vsel %vm1809_vm6, %v7943_v8, %v5257_v47 }
 0x3fb   : > { %5570 = vrot.lane.b32.xlu0 %v5569_v7, %s5600_s6  ;;  %v5258_v7 = vunpack.i.h.bf16 %v8093_v55  ;;  %v5559_v63 = vpack.i.bf16 %v2435_v28, %v2434_v41  ;;  %v3700_v42 = vsel %vm1842_vm8, %v3668_v14, %v5342_v38  ;;  %v5357_v41 = vunpack.i.l.bf16 %v8195_v19 }
 0x3fc   : > { %v8227_v24 = vpop.permute.xlu2 %5385  ;;  %v5336_v48 = vpop.permute.xlu1 %5335 }
 0x3fd   : > { %v5338_v58 = vunpack.i.h.bf16 %v5336_v48  ;;  %v5337_v10 = vunpack.i.l.bf16 %v5336_v48  ;;  %v5361_v21 = vpop.permute.xlu0 %5360  ;;  %v3669_v55 = vsel %vm1809_vm6, %v7946_v15, %v5258_v7  ;;  %v5303_v15 = vunpack.i.h.bf16 %v8157_v30 }
 0x3fe   : > { %v3701_v18 = vsel %vm1842_vm8, %v3669_v55, %v5343_v50  ;;  %v5262_v55 = vunpack.i.l.bf16 %v8135_v45 }
 0x3ff   : > { %v3780_v56 = vsel %vm1908_vm10, %v3748_v44, %v5337_v10  ;;  %v3781_v49 = vsel %vm1908_vm10, %v3749_v20, %v5338_v58  ;;  %v3732_v10 = vsel %vm1875_vm9, %v3700_v42, %v5347_v54  ;;  %v3733_v28 = vsel %vm1875_vm9, %v3701_v18, %v5348_v26 }
 0x400   : > { %v3804_v12 = vpack.c.bf16 %v3781_v49, %v3780_v56  ;;  %v5302_v20 = vunpack.i.l.bf16 %v8157_v30  ;;  %v5363_v56 = vunpack.i.h.bf16 %v5361_v21  ;;  %v5362_v49 = vunpack.i.l.bf16 %v5361_v21 }
 0x401   : > { %v3687_v47 = vsel %vm1809_vm6, %v8012_v36, %v5303_v15  ;;  %v5263_v36 = vunpack.i.h.bf16 %v8135_v45  ;;  %v5373_v42 = vunpack.i.h.bf16 %v8202_v25  ;;  %v5372_v18 = vunpack.i.l.bf16 %v8202_v25 }
 0x402   : > { %5565 = vrot.lane.b32.xlu2 %v5564_v61, %s5599_s30  ;;  %5560 = vrot.lane.b32.xlu1 %v5559_v63, %s5598_s29  ;;  %v5358_v61 = vunpack.i.h.bf16 %v8195_v19  ;;  %v3686_v7 = vsel %vm1809_vm6, %v8009_v5, %v5302_v20 }
 0x403   : > { %4176 = vmatmul.msk.bf16.vlgmr.msra.gmra.mxu3 %vm1981_vm11, %v3804_v12  ;;  %v3718_v12 = vsel %vm1842_vm8, %v3686_v7, %v5357_v41  ;;  %v5387_v7 = vunpack.i.l.bf16 %v8227_v24 }
 0x404   : > { %v5351_v48 = vpop.permute.xlu1 %5350  ;;  %v8248_v53 = vpop.permute.xlu2 %5400  ;;  %v3719_v30 = vsel %vm1842_vm8, %v3687_v47, %v5358_v61  ;;  %v3750_v19 = vsel %vm1875_vm9, %v3718_v12, %v5362_v49  ;;  %v5388_v49 = vunpack.i.h.bf16 %v8227_v24 }
 0x405   : > { %v5353_v27 = vunpack.i.h.bf16 %v5351_v48  ;;  %v5352_v4 = vunpack.i.l.bf16 %v5351_v48  ;;  %v5376_v58 = vpop.permute.xlu0 %5375  ;;  %v3751_v21 = vsel %vm1875_vm9, %v3719_v30, %v5363_v56 }
 0x407   : > { %v3764_v44 = vsel %vm1908_vm10, %v3732_v10, %v5352_v4  ;;  %v3765_v8 = vsel %vm1908_vm10, %v3733_v28, %v5353_v27  ;;  %v5378_v27 = vunpack.i.h.bf16 %v5376_v58  ;;  %v5377_v4 = vunpack.i.l.bf16 %v5376_v58 }
 0x408   : > { %v3796_v1 = vpack.c.bf16 %v3765_v8, %v3764_v44  ;;  %v3670_v10 = vsel %vm1809_vm6, %v7998_v13, %v5262_v55  ;;  %v3671_v28 = vsel %vm1809_vm6, %v8002_v60, %v5263_v36  ;;  %v5308_v13 = vunpack.i.h.bf16 %v8197_v43 }
 0x409   : > { %v3702_v8 = vsel %vm1842_vm8, %v3670_v10, %v5372_v18  ;;  %v3703_v45 = vsel %vm1842_vm8, %v3671_v28, %v5373_v42  ;;  %v5307_v60 = vunpack.i.l.bf16 %v8197_v43 }
 0x40a   : > { %4168 = vmatmul.msk.bf16.vlgmr.msra.gmra.mxu1 %vm1981_vm11, %v3796_v1  ;;  %v3734_v25 = vsel %vm1875_vm9, %v3702_v8, %v5377_v4  ;;  %v3735_v58 = vsel %vm1875_vm9, %v3703_v45, %v5378_v27 }
 0x40b   : > { %v3688_v30 = vsel %vm1809_vm6, %v8064_v16, %v5307_v60 }
 0x40c   : > { %v5366_v63 = vpop.permute.xlu1 %5365  ;;  %v8267_v54 = vpop.permute.xlu2 %5415  ;;  %v3720_v43 = vsel %vm1842_vm8, %v3688_v30, %v5387_v7 }
 0x40d   : > { %v5368_v50 = vunpack.i.h.bf16 %v5366_v63  ;;  %v5367_v38 = vunpack.i.l.bf16 %v5366_v63  ;;  %v5391_v26 = vpop.permute.xlu0 %5390 }
 0x40e   : > { %v5393_v63 = vunpack.i.h.bf16 %v5391_v26  ;;  %v5392_v12 = vunpack.i.l.bf16 %v5391_v26 }
 0x40f   : > { %v3782_v14 = vsel %vm1908_vm10, %v3750_v19, %v5367_v38  ;;  %v3783_v5 = vsel %vm1908_vm10, %v3751_v21, %v5368_v50  ;;  %v3689_v50 = vsel %vm1809_vm6, %v8068_v46, %v5308_v13  ;;  %v5402_v46 = vunpack.i.l.bf16 %v8248_v53 }
 0x410   : > { %v3805_v48 = vpack.c.bf16 %v3783_v5, %v3782_v14  ;;  %v3721_v19 = vsel %vm1842_vm8, %v3689_v50, %v5388_v49  ;;  %v3752_v5 = vsel %vm1875_vm9, %v3720_v43, %v5392_v12 }
 0x411   : > { %v3753_v26 = vsel %vm1875_vm9, %v3721_v19, %v5393_v63  ;;  %v3704_v10 = vsel %vm1842_vm8, %v8076_v39, %v5402_v46  ;;  %v5418_v39 = vunpack.i.h.bf16 %v8267_v54 }
 0x413   : > { %4177 = vmatmul.msk.bf16.gmra.mxu3 %vm1981_vm11, %v3805_v48  ;;  %v5403_v48 = vunpack.i.h.bf16 %v8248_v53 }
 0x414   : > { %v5381_v44 = vpop.permute.xlu1 %5380  ;;  %v8290_v47 = vpop.permute.xlu2 %5430 }
 0x415   : > { %v5383_v15 = vunpack.i.h.bf16 %v5381_v44  ;;  %v5382_v20 = vunpack.i.l.bf16 %v5381_v44  ;;  %v5406_v1 = vpop.permute.xlu0 %5405  ;;  %v3705_v28 = vsel %vm1842_vm8, %v8079_v11, %v5403_v48  ;;  %v5417_v11 = vunpack.i.l.bf16 %v8267_v54 }
 0x416   : > { %v5408_v42 = vunpack.i.h.bf16 %v5406_v1  ;;  %v5407_v18 = vunpack.i.l.bf16 %v5406_v1 }
 0x417   : > { %v3766_v61 = vsel %vm1908_vm10, %v3734_v25, %v5382_v20  ;;  %v3767_v41 = vsel %vm1908_vm10, %v3735_v58, %v5383_v15  ;;  %v5313_v25 = vunpack.i.h.bf16 %v8133_v40  ;;  %v5312_v58 = vunpack.i.l.bf16 %v8133_v40 }
 0x418   : > { %v3797_v56 = vpack.c.bf16 %v3767_v41, %v3766_v61  ;;  %v3736_v15 = vsel %vm1875_vm9, %v3704_v10, %v5407_v18  ;;  %v3737_v20 = vsel %vm1875_vm9, %v3705_v28, %v5408_v42 }
 0x419   : > { %v3690_v60 = vsel %vm1809_vm6, %v8103_v32, %v5312_v58 }
 0x41a   : > { %4169 = vmatmul.msk.bf16.gmra.mxu1 %vm1981_vm11, %v3797_v56  ;;  %v3691_v56 = vsel %vm1809_vm6, %v8107_v6, %v5313_v25  ;;  %v3722_v7 = vsel %vm1842_vm8, %v3690_v60, %v5417_v11  ;;  %v5433_v6 = vunpack.i.h.bf16 %v8290_v47 }
 0x41b   : > { %v3723_v40 = vsel %vm1842_vm8, %v3691_v56, %v5418_v39 }
 0x41c   : > { %v5396_v38 = vpop.permute.xlu1 %5395  ;;  %v5446_v27 = vpop.permute.xlu2 %5445 }
 0x41d   : > { %v5398_v21 = vunpack.i.h.bf16 %v5396_v38  ;;  %v5397_v14 = vunpack.i.l.bf16 %v5396_v38  ;;  %v5421_v24 = vpop.permute.xlu0 %5420  ;;  %v5448_v28 = vunpack.i.h.bf16 %v5446_v27 }
 0x41e   : > { %v5423_v41 = vunpack.i.h.bf16 %v5421_v24  ;;  %v5422_v13 = vunpack.i.l.bf16 %v5421_v24 }
 0x41f   : > { %v3784_v36 = vsel %vm1908_vm10, %v3752_v5, %v5397_v14  ;;  %v3785_v55 = vsel %vm1908_vm10, %v3753_v26, %v5398_v21  ;;  %v5432_v21 = vunpack.i.l.bf16 %v8290_v47 }
 0x420   : > { %v3806_v16 = vpack.c.bf16 %v3785_v55, %v3784_v36  ;;  %v3754_v54 = vsel %vm1875_vm9, %v3722_v7, %v5422_v13  ;;  %v3755_v38 = vsel %vm1875_vm9, %v3723_v40, %v5423_v41  ;;  %v3707_v36 = vsel %vm1842_vm8, %v8128_v62, %v5433_v6 }
 0x421   : > { %v3706_v26 = vsel %vm1842_vm8, %v8124_v52, %v5432_v21 }
 0x423   : > { %4178 = vmatmul.msk.bf16.gmra.mxu3 %vm1981_vm11, %v3806_v16 }
 0x424   : > { %v5411_v4 = vpop.permute.xlu1 %5410  ;;  %v5461_v63 = vpop.permute.xlu2 %5460 }
 0x425   : > { %v5413_v44 = vunpack.i.h.bf16 %v5411_v4  ;;  %v5412_v8 = vunpack.i.l.bf16 %v5411_v4  ;;  %v5436_v45 = vpop.permute.xlu0 %5435  ;;  %v5463_v11 = vunpack.i.h.bf16 %v5461_v63  ;;  %v5462_v41 = vunpack.i.l.bf16 %v5461_v63 }
 0x426   : > { %v5438_v14 = vunpack.i.h.bf16 %v5436_v45  ;;  %v5437_v24 = vunpack.i.l.bf16 %v5436_v45 }
 0x427   : > { %v3768_v53 = vsel %vm1908_vm10, %v3736_v15, %v5412_v8  ;;  %v3769_v1 = vsel %vm1908_vm10, %v3737_v20, %v5413_v44  ;;  %v5447_v44 = vunpack.i.l.bf16 %v5446_v27  ;;  %v3725_v15 = vsel %vm1842_vm8, %v8189_v0, %v5448_v28 }
 0x428   : > { %v3798_v61 = vpack.c.bf16 %v3769_v1, %v3768_v53  ;;  %v3738_v46 = vsel %vm1875_vm9, %v3706_v26, %v5437_v24  ;;  %v3739_v42 = vsel %vm1875_vm9, %v3707_v36, %v5438_v14  ;;  %v3708_v56 = vsel %vm1842_vm8, %v8161_v3, %v5462_v41 }
 0x429   : > { %v3724_v45 = vsel %vm1842_vm8, %v8185_v59, %v5447_v44 }
 0x42a   : > { %4170 = vmatmul.msk.bf16.gmra.mxu1 %vm1981_vm11, %v3798_v61 }
 0x42c   : > { %v5426_v49 = vpop.permute.xlu1 %5425  ;;  %v5476_v18 = vpop.permute.xlu2 %5475 }
 0x42d   : > { %v5428_v12 = vunpack.i.h.bf16 %v5426_v49  ;;  %v5427_v30 = vunpack.i.l.bf16 %v5426_v49  ;;  %v5451_v50 = vpop.permute.xlu0 %5450  ;;  %v3709_v49 = vsel %vm1842_vm8, %v8165_v37, %v5463_v11 }
 0x42e   : > { %v5453_v8 = vunpack.i.h.bf16 %v5451_v50  ;;  %v5452_v52 = vunpack.i.l.bf16 %v5451_v50 }
 0x42f   : > { %v3786_v43 = vsel %vm1908_vm10, %v3754_v54, %v5427_v30  ;;  %v3787_v32 = vsel %vm1908_vm10, %v3755_v38, %v5428_v12 }
 0x430   : > { %v3807_v19 = vpack.c.bf16 %v3787_v32, %v3786_v43  ;;  %v3756_v25 = vsel %vm1875_vm9, %v3724_v45, %v5452_v52  ;;  %v3757_v58 = vsel %vm1875_vm9, %v3725_v15, %v5453_v8  ;;  %v5478_v43 = vunpack.i.h.bf16 %v5476_v18 }
 0x431   : > { %v5477_v32 = vunpack.i.l.bf16 %v5476_v18 }
 0x432   : > { %v3727_v14 = vsel %vm1842_vm8, %v8212_v51, %v5478_v43 }
 0x433   : > { %4179 = vmatmul.msk.bf16.gmra.mxu3 %vm1981_vm11, %v3807_v19  ;;  %v3726_v21 = vsel %vm1842_vm8, %v8208_v31, %v5477_v32 }
 0x434   : > { %v5441_v5 = vpop.permute.xlu1 %5440  ;;  %v5491_v13 = vpop.permute.xlu2 %5490 }
 0x435   : > { %v5443_v55 = vunpack.i.h.bf16 %v5441_v5  ;;  %v5442_v16 = vunpack.i.l.bf16 %v5441_v5  ;;  %v5466_v48 = vpop.permute.xlu0 %5465  ;;  %v5492_v18 = vunpack.i.l.bf16 %v5491_v13 }
 0x436   : > { %v5468_v60 = vunpack.i.h.bf16 %v5466_v48  ;;  %v5467_v59 = vunpack.i.l.bf16 %v5466_v48 }
 0x437   : > { %v3770_v47 = vsel %vm1908_vm10, %v3738_v46, %v5442_v16  ;;  %v3771_v4 = vsel %vm1908_vm10, %v3739_v42, %v5443_v55  ;;  %v5493_v42 = vunpack.i.h.bf16 %v5491_v13  ;;  %v3710_v51 = vsel %vm1842_vm8, %v8096_v57, %v5492_v18 }
 0x438   : > { %v3799_v10 = vpack.c.bf16 %v3771_v4, %v3770_v47  ;;  %v3740_v30 = vsel %vm1875_vm9, %v3708_v56, %v5467_v59  ;;  %v3741_v50 = vsel %vm1875_vm9, %v3709_v49, %v5468_v60 }
 0x43a   : > { %4171 = vmatmul.msk.bf16.gmra.mxu1 %vm1981_vm11, %v3799_v10  ;;  %v3711_v10 = vsel %vm1842_vm8, %v8099_v34, %v5493_v42 }
 0x43c   : > { %v5456_v62 = vpop.permute.xlu1 %5455  ;;  %v5506_v3 = vpop.permute.xlu2 %5505 }
 0x43d   : > { %v5458_v20 = vunpack.i.h.bf16 %v5456_v62  ;;  %v5457_v53 = vunpack.i.l.bf16 %v5456_v62  ;;  %v5481_v1 = vpop.permute.xlu0 %5480 }
 0x43e   : > { %v5483_v19 = vunpack.i.h.bf16 %v5481_v1  ;;  %v5482_v6 = vunpack.i.l.bf16 %v5481_v1  ;;  %v5508_v1 = vunpack.i.h.bf16 %v5506_v3 }
 0x43f   : > { %v3788_v27 = vsel %vm1908_vm10, %v3756_v25, %v5457_v53  ;;  %v3789_v61 = vsel %vm1908_vm10, %v3757_v58, %v5458_v20  ;;  %v5507_v25 = vunpack.i.l.bf16 %v5506_v3 }
 0x440   : > { %v3808_v39 = vpack.c.bf16 %v3789_v61, %v3788_v27  ;;  %v3758_v36 = vsel %vm1875_vm9, %v3726_v21, %v5482_v6  ;;  %v3759_v55 = vsel %vm1875_vm9, %v3727_v14, %v5483_v19  ;;  %v3697_v61 = vsel %vm1809_vm6, %v8120_v9, %v5508_v1 }
 0x441   : > { %v3696_v27 = vsel %vm1809_vm6, %v8116_v35, %v5507_v25 }
 0x443   : > { %4180 = vmatmul.msk.bf16.gmra.mxu3 %vm1981_vm11, %v3808_v39 }
 0x444   : > { %v5471_v0 = vpop.permute.xlu1 %5470  ;;  %v5521_v28 = vpop.permute.xlu2 %5520 }
 0x445   : > { %v5473_v7 = vunpack.i.h.bf16 %v5471_v0  ;;  %v5472_v40 = vunpack.i.l.bf16 %v5471_v0  ;;  %v5496_v12 = vpop.permute.xlu0 %5495  ;;  %v5523_v41 = vunpack.i.h.bf16 %v5521_v28  ;;  %v5522_v13 = vunpack.i.l.bf16 %v5521_v28 }
 0x446   : > { %v5498_v47 = vunpack.i.h.bf16 %v5496_v12  ;;  %v5497_v4 = vunpack.i.l.bf16 %v5496_v12 }
 0x447   : > { %v3772_v63 = vsel %vm1908_vm10, %v3740_v30, %v5472_v40  ;;  %v3773_v54 = vsel %vm1908_vm10, %v3741_v50, %v5473_v7 }
 0x448   : > { %v3800_v38 = vpack.c.bf16 %v3773_v54, %v3772_v63  ;;  %v3742_v52 = vsel %vm1875_vm9, %v3710_v51, %v5497_v4  ;;  %v3743_v62 = vsel %vm1875_vm9, %v3711_v10, %v5498_v47 }
 0x44a   : > { %4172 = vmatmul.msk.bf16.gmra.mxu1 %vm1981_vm11, %v3800_v38 }
 0x44c   : > { %v5486_v37 = vpop.permute.xlu1 %5485  ;;  %v5536_v0 = vpop.permute.xlu2 %5535 }
 0x44d   : > { %v5488_v24 = vunpack.i.h.bf16 %v5486_v37  ;;  %v5487_v5 = vunpack.i.l.bf16 %v5486_v37  ;;  %v5511_v26 = vpop.permute.xlu0 %5510  ;;  %v5538_v38 = vunpack.i.h.bf16 %v5536_v0  ;;  %v5537_v43 = vunpack.i.l.bf16 %v5536_v0 }
 0x44e   : > { %v5513_v58 = vunpack.i.h.bf16 %v5511_v26  ;;  %v5512_v57 = vunpack.i.l.bf16 %v5511_v26 }
 0x44f   : > { %v3790_v16 = vsel %vm1908_vm10, %v3758_v36, %v5487_v5  ;;  %v3791_v48 = vsel %vm1908_vm10, %v3759_v55, %v5488_v24 }
 0x450   : > { %v3809_v46 = vpack.c.bf16 %v3791_v48, %v3790_v16  ;;  %v3728_v60 = vsel %vm1842_vm8, %v3696_v27, %v5512_v57  ;;  %v3729_v59 = vsel %vm1842_vm8, %v3697_v61, %v5513_v58 }
 0x453   : > { %4181 = vmatmul.msk.bf16.gmra.mxu3 %vm1981_vm11, %v3809_v46 }
 0x454   : > { %v5501_v31 = vpop.permute.xlu1 %5500  ;;  %v5551_v14 = vpop.permute.xlu2 %5550 }
 0x455   : > { %v5503_v44 = vunpack.i.h.bf16 %v5501_v31  ;;  %v5502_v8 = vunpack.i.l.bf16 %v5501_v31  ;;  %v5526_v45 = vpop.permute.xlu0 %5525  ;;  %v5553_v55 = vunpack.i.h.bf16 %v5551_v14 }
 0x456   : > { %v5528_v9 = vunpack.i.h.bf16 %v5526_v45  ;;  %v5527_v30 = vunpack.i.l.bf16 %v5526_v45 }
 0x457   : > { %v3774_v15 = vsel %vm1908_vm10, %v3742_v52, %v5502_v8  ;;  %v3775_v20 = vsel %vm1908_vm10, %v3743_v62, %v5503_v44 }
 0x458   : > { %v3801_v53 = vpack.c.bf16 %v3775_v20, %v3774_v15  ;;  %v3712_v32 = vsel %vm1842_vm8, %v8142_v33, %v5527_v30  ;;  %v3713_v19 = vsel %vm1842_vm8, %v8146_v2, %v5528_v9  ;;  %v5552_v33 = vunpack.i.l.bf16 %v5551_v14  ;;  %v8993_v14 = vld [vmem:[#allocation14_spill] sm:$0xff] }
 0x45a   : > { %4173 = vmatmul.msk.bf16.gmra.mxu1 %vm1981_vm11, %v3801_v53 }
 0x45c   : > { %v5516_v34 = vpop.permute.xlu1 %5515  ;;  %v5566_v52 = vpop.permute.xlu2 %5565 }
 0x45d   : > { %v5518_v39 = vunpack.i.h.bf16 %v5516_v34  ;;  %v5517_v11 = vunpack.i.l.bf16 %v5516_v34  ;;  %v5541_v7 = vpop.permute.xlu0 %5540  ;;  %v5568_v15 = vunpack.i.h.bf16 %v5566_v52  ;;  %v5567_v20 = vunpack.i.l.bf16 %v5566_v52 }
 0x45e   : > { %v5543_v5 = vunpack.i.h.bf16 %v5541_v7  ;;  %v5542_v26 = vunpack.i.l.bf16 %v5541_v7 }
 0x45f   : > { %v3760_v56 = vsel %vm1875_vm9, %v3728_v60, %v5517_v11  ;;  %v3761_v49 = vsel %vm1875_vm9, %v3729_v59, %v5518_v39  ;;  %v8420_v11 = vld [vmem:[%s8595_s4] ss:$0 sm:$0xff] }
 0x460   : > { %v3792_v40 = vsel %vm1908_vm10, %v3760_v56, %v5522_v13  ;;  %v3793_v35 = vsel %vm1908_vm10, %v3761_v49, %v5523_v41  ;;  %v3698_v18 = vsel %vm1809_vm6, %v8053_v29, %v5542_v26  ;;  %v3699_v47 = vsel %vm1809_vm6, %v8056_v22, %v5543_v5  ;;  %v8987_v60 = vld [vmem:[#allocation12_spill] sm:$0xff]  ;;  %v8989_v56 = vld [vmem:[#allocation6_spill] sm:$0xff]  ;;  %v8995_v26 = vld [vmem:[#allocation5_spill] sm:$0xff] }
 0x461   : > { %v3810_v12 = vpack.c.bf16 %v3793_v35, %v3792_v40  ;;  %v8988_v59 = vunpack.c.l.bf16 %v8987_v60  ;;  %v8990_v49 = vunpack.c.l.bf16 %v8989_v56 }
 0x463   : > { %4182 = vmatmul.msk.bf16.gmra.mxu3 %vm1981_vm11, %v3810_v12 }
 0x464   : > { %v5531_v50 = vpop.permute.xlu1 %5530 }
 0x465   : > { %v5533_v63 = vunpack.i.h.bf16 %v5531_v50  ;;  %v5532_v54 = vunpack.i.l.bf16 %v5531_v50  ;;  %v5556_v36 = vpop.permute.xlu0 %5555 }
 0x466   : > { %v5558_v48 = vunpack.i.h.bf16 %v5556_v36  ;;  %v5557_v2 = vunpack.i.l.bf16 %v5556_v36  ;;  %v8996_v36 = vunpack.c.l.bf16 %v8995_v26 }
 0x467   : > { %v3744_v6 = vsel %vm1875_vm9, %v3712_v32, %v5532_v54  ;;  %v3745_v3 = vsel %vm1875_vm9, %v3713_v19, %v5533_v63  ;;  %v8991_v63 = vunpack.c.h.bf16 %v8987_v60 }
 0x468   : > { %v3776_v37 = vsel %vm1908_vm10, %v3744_v6, %v5537_v43  ;;  %v3777_v21 = vsel %vm1908_vm10, %v3745_v3, %v5538_v38  ;;  %v8992_v38 = vunpack.c.h.bf16 %v8989_v56  ;;  %v9005_v56 = vld [vmem:[#allocation15_spill] sm:$0xff] }
 0x469   : > { %v3802_v24 = vpack.c.bf16 %v3777_v21, %v3776_v37 }
 0x46b   : > { %4174 = vmatmul.msk.bf16.gmra.mxu1 %vm1981_vm11, %v3802_v24  ;;  %v8994_v24 = vunpack.c.l.bf16 %v8993_v14 }
 0x46c   : > { %v5546_v16 = vpop.permute.xlu1 %5545 }
 0x46d   : > { %v5548_v46 = vunpack.i.h.bf16 %v5546_v16  ;;  %v5547_v42 = vunpack.i.l.bf16 %v5546_v16  ;;  %v5571_v62 = vpop.permute.xlu0 %5570 }
 0x46e   : > { %v5573_v53 = vunpack.i.h.bf16 %v5571_v62  ;;  %v5572_v1 = vunpack.i.l.bf16 %v5571_v62  ;;  %v8999_v62 = vld [vmem:[#allocation13_spill] sm:$0xff] }
 0x46f   : > { %v3730_v4 = vsel %vm1842_vm8, %v3698_v18, %v5547_v42  ;;  %v3731_v31 = vsel %vm1842_vm8, %v3699_v47, %v5548_v46  ;;  %v8997_v18 = vunpack.c.h.bf16 %v8993_v14 }
 0x470   : > { %v3762_v51 = vsel %vm1875_vm9, %v3730_v4, %v5552_v33  ;;  %v3763_v10 = vsel %vm1875_vm9, %v3731_v31, %v5553_v55  ;;  %v8998_v4 = vunpack.c.h.bf16 %v8995_v26  ;;  %v9011_v26 = vld [vmem:[#allocation17_spill] sm:$0xff] }
 0x471   : > { %v3794_v28 = vsel %vm1908_vm10, %v3762_v51, %v5557_v2  ;;  %v3795_v44 = vsel %vm1908_vm10, %v3763_v10, %v5558_v48 }
 0x472   : > { %v3811_v8 = vpack.c.bf16 %v3795_v44, %v3794_v28 }
 0x474   : > { %v5561_v45 = vpop.permute.xlu1 %5560  ;;  %4183 = vmatmul.msk.bf16.gmra.mxu3 %vm1981_vm11, %v3811_v8 }
 0x475   : > { %v5563_v29 = vunpack.i.h.bf16 %v5561_v45  ;;  %v5562_v22 = vunpack.i.l.bf16 %v5561_v45  ;;  %v9000_v45 = vunpack.c.l.bf16 %v8999_v62 }
 0x477   : > { %v3714_v25 = vsel %vm1842_vm8, %v8177_v17, %v5562_v22  ;;  %v3715_v58 = vsel %vm1842_vm8, %v8181_v23, %v5563_v29  ;;  %v9001_v22 = vld [vmem:[#allocation8_spill] sm:$0xff] }
 0x478   : > { %v3746_v57 = vsel %vm1875_vm9, %v3714_v25, %v5567_v20  ;;  %v3747_v34 = vsel %vm1875_vm9, %v3715_v58, %v5568_v15  ;;  %v9002_v15 = vunpack.c.l.bf16 %v9001_v22 }
 0x479   : > { %v3778_v27 = vsel %vm1908_vm10, %v3746_v57, %v5572_v1  ;;  %v3779_v61 = vsel %vm1908_vm10, %v3747_v34, %v5573_v53 }
 0x47a   : > { %v3803_v39 = vpack.c.bf16 %v3779_v61, %v3778_v27  ;;  %v9003_v27 = vunpack.c.h.bf16 %v8999_v62 }
 0x47c   : > { %4175 = vmatmul.msk.bf16.gmra.mxu1 %vm1981_vm11, %v3803_v39  ;;  %v9004_v39 = vunpack.c.h.bf16 %v9001_v22  ;;  %v9017_v22 = vld [vmem:[#allocation16_spill] sm:$0xff] }
 0x486   : > { %v3936_v17 = vpop.f32.mrf.mxu3 }
 0x487   : > { %v3937_v23 = vadd.f32 %v8420_v11, %v3936_v17  ;;  %v3896_v41 = vpop.f32.mrf.mxu1 }
 0x488   : > { %v3897_v13 = vadd.f32 %v8420_v11, %v3896_v41 }
 0x489   : > { %v3992_v0 = vadd.f32 %v8988_v59, %v3937_v23 }
 0x48a   : > { %v3976_v7 = vadd.f32 %v8990_v49, %v3897_v13  ;;  %v9006_v49 = vunpack.c.l.bf16 %v9005_v56 }
 0x48b   : > { %v4024_v40 = vmax.f32 %v3992_v0, 0.0 }
 0x48c   : > { %v4008_v35 = vmax.f32 %v3976_v7, 0.0 }
 0x48d   : > { %4056 = vst.msk [vmem:[%s8430_s28 + $0x80] sm:$0xff] %vm290_vm0, %v4024_v40  ;;  %v9007_v40 = vld [vmem:[#allocation4_spill] sm:$0xff] }
 0x48e   : > { %4040 = vst.msk [vmem:[%s8430_s28] sm:$0xff] %vm290_vm0, %v4008_v35  ;;  %v3938_v12 = vpop.f32.mrf.mxu3  ;;  %v9008_v35 = vunpack.c.l.bf16 %v9007_v40 }
 0x48f   : > { %v3939_v9 = vadd.f32 %v8420_v11, %v3938_v12  ;;  %v3898_v30 = vpop.f32.mrf.mxu1 }
 0x490   : > { %v3899_v50 = vadd.f32 %v8420_v11, %v3898_v30 }
 0x491   : > { %v3993_v54 = vadd.f32 %v8991_v63, %v3939_v9 }
 0x492   : > { %v3977_v43 = vadd.f32 %v8992_v38, %v3899_v50 }
 0x493   : > { %v4025_v32 = vmax.f32 %v3993_v54, 0.0 }
 0x494   : > { %v4009_v19 = vmax.f32 %v3977_v43, 0.0  ;;  %v9009_v43 = vunpack.c.h.bf16 %v9005_v56 }
 0x495   : > { %4057 = vst.msk [vmem:[%s8430_s28 + $0x88] sm:$0xff] %vm290_vm0, %v4025_v32 }
 0x496   : > { %4041 = vst.msk [vmem:[%s8430_s28 + $0x8] sm:$0xff] %vm290_vm0, %v4009_v19  ;;  %v3941_v6 = vpop.f32.mrf.mxu3  ;;  %v9010_v19 = vunpack.c.h.bf16 %v9007_v40 }
 0x497   : > { %v3942_v3 = vadd.f32 %v8420_v11, %v3941_v6  ;;  %v3901_v37 = vpop.f32.mrf.mxu1 }
 0x498   : > { %v3902_v21 = vadd.f32 %v8420_v11, %v3901_v37 }
 0x499   : > { %v3994_v5 = vadd.f32 %v8994_v24, %v3942_v3 }
 0x49a   : > { %v3978_v55 = vadd.f32 %v8996_v36, %v3902_v21  ;;  %v9012_v36 = vunpack.c.l.bf16 %v9011_v26 }
 0x49b   : > { %v4026_v33 = vmax.f32 %v3994_v5, 0.0 }
 0x49c   : > { %v4010_v16 = vmax.f32 %v3978_v55, 0.0 }
 0x49d   : > { %4058 = vst.msk [vmem:[%s8430_s28 + $0x90] sm:$0xff] %vm290_vm0, %v4026_v33  ;;  %v9013_v33 = vld [vmem:[#allocation7_spill] sm:$0xff] }
 0x49e   : > { %4042 = vst.msk [vmem:[%s8430_s28 + $0x10] sm:$0xff] %vm290_vm0, %v4010_v16  ;;  %v3943_v48 = vpop.f32.mrf.mxu3  ;;  %v9014_v16 = vunpack.c.l.bf16 %v9013_v33 }
 0x49f   : > { %v3944_v2 = vadd.f32 %v8420_v11, %v3943_v48  ;;  %v3903_v46 = vpop.f32.mrf.mxu1 }
 0x4a0   : > { %v3904_v42 = vadd.f32 %v8420_v11, %v3903_v46 }
 0x4a1   : > { %v3995_v47 = vadd.f32 %v8997_v18, %v3944_v2 }
 0x4a2   : > { %v3979_v31 = vadd.f32 %v8998_v4, %v3904_v42 }
 0x4a3   : > { %v4027_v51 = vmax.f32 %v3995_v47, 0.0 }
 0x4a4   : > { %v4011_v10 = vmax.f32 %v3979_v31, 0.0  ;;  %v9015_v31 = vunpack.c.h.bf16 %v9011_v26 }
 0x4a5   : > { %4059 = vst.msk [vmem:[%s8430_s28 + $0x98] sm:$0xff] %vm290_vm0, %v4027_v51 }
 0x4a6   : > { %4043 = vst.msk [vmem:[%s8430_s28 + $0x18] sm:$0xff] %vm290_vm0, %v4011_v10  ;;  %v3946_v28 = vpop.f32.mrf.mxu3  ;;  %v9016_v10 = vunpack.c.h.bf16 %v9013_v33 }
 0x4a7   : > { %v3947_v44 = vadd.f32 %v8420_v11, %v3946_v28  ;;  %v3906_v8 = vpop.f32.mrf.mxu1 }
 0x4a8   : > { %v3907_v52 = vadd.f32 %v8420_v11, %v3906_v8 }
 0x4a9   : > { %v3996_v29 = vadd.f32 %v9000_v45, %v3947_v44 }
 0x4aa   : > { %v3980_v20 = vadd.f32 %v9002_v15, %v3907_v52  ;;  %v9018_v15 = vunpack.c.l.bf16 %v9017_v22 }
 0x4ab   : > { %v4028_v53 = vmax.f32 %v3996_v29, 0.0 }
 0x4ac   : > { %v4012_v1 = vmax.f32 %v3980_v20, 0.0 }
 0x4ad   : > { %4060 = vst.msk [vmem:[%s8430_s28 + $0xa0] sm:$0xff] %vm290_vm0, %v4028_v53  ;;  %v9019_v53 = vld [vmem:[#allocation9_spill] sm:$0xff] }
 0x4ae   : > { %4044 = vst.msk [vmem:[%s8430_s28 + $0x20] sm:$0xff] %vm290_vm0, %v4012_v1  ;;  %v3948_v25 = vpop.f32.mrf.mxu3  ;;  %v9020_v1 = vunpack.c.l.bf16 %v9019_v53 }
 0x4af   : > { %v3949_v58 = vadd.f32 %v8420_v11, %v3948_v25  ;;  %v3908_v57 = vpop.f32.mrf.mxu1 }
 0x4b0   : > { %v3909_v34 = vadd.f32 %v8420_v11, %v3908_v57 }
 0x4b1   : > { %v3997_v61 = vadd.f32 %v9003_v27, %v3949_v58 }
 0x4b2   : > { %v3981_v17 = vadd.f32 %v9004_v39, %v3909_v34 }
 0x4b3   : > { %v4029_v23 = vmax.f32 %v3997_v61, 0.0 }
 0x4b4   : > { %v4013_v41 = vmax.f32 %v3981_v17, 0.0  ;;  %v9021_v17 = vunpack.c.h.bf16 %v9017_v22 }
 0x4b5   : > { %4061 = vst.msk [vmem:[%s8430_s28 + $0xa8] sm:$0xff] %vm290_vm0, %v4029_v23 }
 0x4b6   : > { %4045 = vst.msk [vmem:[%s8430_s28 + $0x28] sm:$0xff] %vm290_vm0, %v4013_v41  ;;  %v3951_v13 = vpop.f32.mrf.mxu3  ;;  %v9022_v41 = vunpack.c.h.bf16 %v9019_v53 }
 0x4b7   : > { %v3952_v60 = vadd.f32 %v8420_v11, %v3951_v13  ;;  %v3911_v59 = vpop.f32.mrf.mxu1 }
 0x4b8   : > { %v3912_v0 = vadd.f32 %v8420_v11, %v3911_v59 }
 0x4b9   : > { %v3998_v7 = vadd.f32 %v9006_v49, %v3952_v60 }
 0x4ba   : > { %v3982_v12 = vadd.f32 %v9008_v35, %v3912_v0 }
 0x4bb   : > { %v4030_v9 = vmax.f32 %v3998_v7, 0.0  ;;  %v9023_v7 = vld [vmem:[#allocation18_spill] sm:$0xff] }
 0x4bc   : > { %v4014_v30 = vmax.f32 %v3982_v12, 0.0  ;;  %v9024_v40 = vunpack.c.l.bf16 %v9023_v7 }
 0x4bd   : > { %4062 = vst.msk [vmem:[%s8430_s28 + $0xb0] sm:$0xff] %vm290_vm0, %v4030_v9 }
 0x4be   : > { %4046 = vst.msk [vmem:[%s8430_s28 + $0x30] sm:$0xff] %vm290_vm0, %v4014_v30  ;;  %v3953_v50 = vpop.f32.mrf.mxu3  ;;  %v9025_v30 = vld [vmem:[#allocation11_spill] sm:$0xff] }
 0x4bf   : > { %v3954_v63 = vadd.f32 %v8420_v11, %v3953_v50  ;;  %v3913_v54 = vpop.f32.mrf.mxu1  ;;  %v9026_v50 = vunpack.c.l.bf16 %v9025_v30 }
 0x4c0   : > { %v3914_v38 = vadd.f32 %v8420_v11, %v3913_v54 }
 0x4c1   : > { %v3999_v32 = vadd.f32 %v9009_v43, %v3954_v63 }
 0x4c2   : > { %v3983_v6 = vadd.f32 %v9010_v19, %v3914_v38  ;;  %v9027_v19 = vunpack.c.h.bf16 %v9023_v7 }
 0x4c3   : > { %v4031_v3 = vmax.f32 %v3999_v32, 0.0 }
 0x4c4   : > { %v4015_v37 = vmax.f32 %v3983_v6, 0.0 }
 0x4c5   : > { %4063 = vst.msk [vmem:[%s8430_s28 + $0xb8] sm:$0xff] %vm290_vm0, %v4031_v3 }
 0x4c6   : > { %4047 = vst.msk [vmem:[%s8430_s28 + $0x38] sm:$0xff] %vm290_vm0, %v4015_v37  ;;  %v3956_v21 = vpop.f32.mrf.mxu3 }
 0x4c7   : > { %v3957_v14 = vadd.f32 %v8420_v11, %v3956_v21  ;;  %v3916_v24 = vpop.f32.mrf.mxu1  ;;  %v9028_v21 = vunpack.c.h.bf16 %v9025_v30 }
 0x4c8   : > { %v3917_v5 = vadd.f32 %v8420_v11, %v3916_v24 }
 0x4c9   : > { %v4000_v55 = vadd.f32 %v9012_v36, %v3957_v14 }
 0x4ca   : > { %v3984_v48 = vadd.f32 %v9014_v16, %v3917_v5 }
 0x4cb   : > { %v4032_v2 = vmax.f32 %v4000_v55, 0.0  ;;  %v9029_v55 = vld [vmem:[#allocation23_spill] sm:$0xff] }
 0x4cc   : > { %v4016_v46 = vmax.f32 %v3984_v48, 0.0  ;;  %v9030_v33 = vunpack.c.l.bf16 %v9029_v55 }
 0x4cd   : > { %4064 = vst.msk [vmem:[%s8430_s28 + $0xc0] sm:$0xff] %vm290_vm0, %v4032_v2 }
 0x4ce   : > { %4048 = vst.msk [vmem:[%s8430_s28 + $0x40] sm:$0xff] %vm290_vm0, %v4016_v46  ;;  %v3958_v42 = vpop.f32.mrf.mxu3  ;;  %v9031_v46 = vld [vmem:[#allocation10_spill] sm:$0xff] }
 0x4cf   : > { %v3959_v18 = vadd.f32 %v8420_v11, %v3958_v42  ;;  %v3918_v47 = vpop.f32.mrf.mxu1  ;;  %v9032_v42 = vunpack.c.l.bf16 %v9031_v46 }
 0x4d0   : > { %v3919_v4 = vadd.f32 %v8420_v11, %v3918_v47 }
 0x4d1   : > { %v4001_v51 = vadd.f32 %v9015_v31, %v3959_v18 }
 0x4d2   : > { %v3985_v28 = vadd.f32 %v9016_v10, %v3919_v4  ;;  %v9033_v10 = vunpack.c.h.bf16 %v9029_v55 }
 0x4d3   : > { %v4033_v44 = vmax.f32 %v4001_v51, 0.0 }
 0x4d4   : > { %v4017_v8 = vmax.f32 %v3985_v28, 0.0 }
 0x4d5   : > { %4065 = vst.msk [vmem:[%s8430_s28 + $0xc8] sm:$0xff] %vm290_vm0, %v4033_v44 }
 0x4d6   : > { %4049 = vst.msk [vmem:[%s8430_s28 + $0x48] sm:$0xff] %vm290_vm0, %v4017_v8  ;;  %v3961_v52 = vpop.f32.mrf.mxu3 }
 0x4d7   : > { %v3962_v62 = vadd.f32 %v8420_v11, %v3961_v52  ;;  %v3921_v45 = vpop.f32.mrf.mxu1  ;;  %v9034_v52 = vunpack.c.h.bf16 %v9031_v46 }
 0x4d8   : > { %v3922_v29 = vadd.f32 %v8420_v11, %v3921_v45 }
 0x4d9   : > { %v4002_v20 = vadd.f32 %v9018_v15, %v3962_v62 }
 0x4da   : > { %v3986_v25 = vadd.f32 %v9020_v1, %v3922_v29 }
 0x4db   : > { %v4034_v58 = vmax.f32 %v4002_v20, 0.0 }
 0x4dc   : > { %v4018_v57 = vmax.f32 %v3986_v25, 0.0 }
 0x4dd   : > { %4066 = vst.msk [vmem:[%s8430_s28 + $0xd0] sm:$0xff] %vm290_vm0, %v4034_v58 }
 0x4de   : > { %4050 = vst.msk [vmem:[%s8430_s28 + $0x50] sm:$0xff] %vm290_vm0, %v4018_v57  ;;  %v3963_v34 = vpop.f32.mrf.mxu3 }
 0x4df   : > { %v3964_v27 = vadd.f32 %v8420_v11, %v3963_v34  ;;  %v3923_v61 = vpop.f32.mrf.mxu1 }
 0x4e0   : > { %v3924_v39 = vadd.f32 %v8420_v11, %v3923_v61 }
 0x4e1   : > { %v4003_v23 = vadd.f32 %v9021_v17, %v3964_v27 }
 0x4e2   : > { %v3987_v13 = vadd.f32 %v9022_v41, %v3924_v39 }
 0x4e3   : > { %v4035_v60 = vmax.f32 %v4003_v23, 0.0 }
 0x4e4   : > { %v4019_v59 = vmax.f32 %v3987_v13, 0.0 }
 0x4e5   : > { %4067 = vst.msk [vmem:[%s8430_s28 + $0xd8] sm:$0xff] %vm290_vm0, %v4035_v60 }
 0x4e6   : > { %4051 = vst.msk [vmem:[%s8430_s28 + $0x58] sm:$0xff] %vm290_vm0, %v4019_v59  ;;  %v3966_v0 = vpop.f32.mrf.mxu3 }
 0x4e7   : > { %v3967_v56 = vadd.f32 %v8420_v11, %v3966_v0 }
 0x4e8   : > { %v3926_v49 = vpop.f32.mrf.mxu1 }
 0x4e9   : > { %v4004_v35 = vadd.f32 %v9024_v40, %v3967_v56  ;;  %v3927_v12 = vadd.f32 %v8420_v11, %v3926_v49 }
 0x4eb   : > { %v4036_v9 = vmax.f32 %v4004_v35, 0.0  ;;  %v3988_v63 = vadd.f32 %v9026_v50, %v3927_v12 }
 0x4ed   : > { %4068 = vst.msk [vmem:[%s8430_s28 + $0xe0] sm:$0xff] %vm290_vm0, %v4036_v9  ;;  %v4020_v54 = vmax.f32 %v3988_v63, 0.0 }
 0x4ee   : > { %v3968_v38 = vpop.f32.mrf.mxu3 }
 0x4ef   : > { %4052 = vst.msk [vmem:[%s8430_s28 + $0x60] sm:$0xff] %vm290_vm0, %v4020_v54  ;;  %v3969_v43 = vadd.f32 %v8420_v11, %v3968_v38 }
 0x4f0   : > { %v3928_v32 = vpop.f32.mrf.mxu1 }
 0x4f1   : > { %v4005_v6 = vadd.f32 %v9027_v19, %v3969_v43  ;;  %v3929_v3 = vadd.f32 %v8420_v11, %v3928_v32 }
 0x4f3   : > { %v4037_v37 = vmax.f32 %v4005_v6, 0.0  ;;  %v3989_v14 = vadd.f32 %v9028_v21, %v3929_v3 }
 0x4f5   : > { %4069 = vst.msk [vmem:[%s8430_s28 + $0xe8] sm:$0xff] %vm290_vm0, %v4037_v37  ;;  %v4021_v24 = vmax.f32 %v3989_v14, 0.0 }
 0x4f7   : > { %4053 = vst.msk [vmem:[%s8430_s28 + $0x68] sm:$0xff] %vm290_vm0, %v4021_v24  ;;  %v3971_v5 = vpop.f32.mrf.mxu3 }
 0x4f8   : > { %v3972_v26 = vadd.f32 %v8420_v11, %v3971_v5 }
 0x4f9   : > { %v3931_v36 = vpop.f32.mrf.mxu1 }
 0x4fa   : > { %v4006_v16 = vadd.f32 %v9030_v33, %v3972_v26  ;;  %v3932_v48 = vadd.f32 %v8420_v11, %v3931_v36 }
 0x4fc   : > { %v4038_v2 = vmax.f32 %v4006_v16, 0.0  ;;  %v3990_v18 = vadd.f32 %v9032_v42, %v3932_v48 }
 0x4fe   : > { %4070 = vst.msk [vmem:[%s8430_s28 + $0xf0] sm:$0xff] %vm290_vm0, %v4038_v2  ;;  %v4022_v47 = vmax.f32 %v3990_v18, 0.0 }
 0x4ff   : > { %v3973_v4 = vpop.f32.mrf.mxu3 }
 0x500   : > { %4054 = vst.msk [vmem:[%s8430_s28 + $0x70] sm:$0xff] %vm290_vm0, %v4022_v47  ;;  %v3974_v31 = vadd.f32 %v8420_v11, %v3973_v4 }
 0x501   : > { %v3933_v51 = vpop.f32.mrf.mxu1 }
 0x502   : > { %v4007_v28 = vadd.f32 %v9033_v10, %v3974_v31  ;;  %v3934_v44 = vadd.f32 %v8420_v11, %v3933_v51 }
 0x504   : > { %v4039_v8 = vmax.f32 %v4007_v28, 0.0  ;;  %v3991_v62 = vadd.f32 %v9034_v52, %v3934_v44 }
 0x506   : > { %4071 = vst.msk [vmem:[%s8430_s28 + $0xf8] sm:$0xff] %vm290_vm0, %v4039_v8  ;;  %v4023_v45 = vmax.f32 %v3991_v62, 0.0 }
 0x508   : > { %4055 = vst.msk [vmem:[%s8430_s28 + $0x78] sm:$0xff] %vm290_vm0, %v4023_v45 }
 0x509 PF: > { %s15_s18 = sadd.s32 1, %s5590_s18  }
 0x50a   : > { %p12_p4 = scmp.ge.s32.totalorder %s15_s18, 4  }
 0x50c   :  { %14 = sbr.rel (!%p12_p4) target bundleno = 1 (0x1), region = 76 }

</bundles_post_ra>
